<compile_context>
chip_gen: v7x
topology: tpu7x:2x2x1
jax: 0.10.0
libtpu: 0.0.40
codegen_flags: <defaults>
</compile_context>

<pallas_src>
import math

import numpy as np
import jax
import jax.numpy as jnp
from jax.experimental import pallas as pl
from jax.experimental import pallas as _pl_unused  # noqa: F401
from jax.experimental.pallas import tpu as pltpu   # noqa: F401  (not required for this tiny no-grid kernel)

# ----------------------------- config (small) --------------------------------
LATENT_DIM = 32          # d_model
NUM_HEADS = 4
HEAD_DIM = LATENT_DIM // NUM_HEADS
FF_SIZE = 64             # dim_feedforward (scaled down from 1024)
NUM_LAYERS = 2           # scaled down from 8
SEQ_LEN = 8              # sequence_length (learnable query length)
IMG_LEN = 4              # image-feature sequence length
BATCH = 2
QUERY_KEYS = ("trans", "rot")
QUERY_DIMS = (3, 6)
HEAD_HID = LATENT_DIM // 2
LN_EPS = 1e-5

S_TOTAL = SEQ_LEN + IMG_LEN              # 12 real rows per batch
S_PAD = ((S_TOTAL + 7) // 8) * 8         # 16 rows (multiple of 8 sublanes)
N_ROWS = BATCH * S_PAD                   # 32 rows, batch folded into rows
OUT_PAD = 128                            # lane-dense output slab width
NEG_INF = -1e30


# ------------------------------ kernel helpers --------------------------------
def _gelu(x):
    # TODO(synk): PyTorch F.gelu defaults to exact erf-GELU; tanh approximation
    # is used here because erf has no guaranteed Mosaic lowering (small drift).
    c = math.sqrt(2.0 / math.pi)
    return 0.5 * x * (1.0 + jnp.tanh(c * (x + 0.044715 * x * x * x)))


def _layernorm(x, g, b):
    mu = jnp.mean(x, axis=-1, keepdims=True)
    var = jnp.mean((x - mu) ** 2, axis=-1, keepdims=True)
    return (x - mu) * jax.lax.rsqrt(var + LN_EPS) * g + b


# -------------------- Pallas kernel: fully fused forward ----------------------
def fused_forward_kernel(lq_ref, pe_ref, img_ref,
                         wqkv_ref, bqkv_ref, w_out_ref, vec_ref,
                         w1_ref, b1_ref, w2_ref,
                         hw1_ref, hb1_ref, hw2_ref, hb2_ref, hw3_ref, hb3_ref,
                         o_ref):
    f32 = jnp.float32
    D = LATENT_DIM

    # ---- build padded, batch-major activations entirely in VMEM ----
    q_pe = lq_ref[...] + pe_ref[0:SEQ_LEN, :]        # (SEQ_LEN, D) learnable query + PE
    pe_img = pe_ref[0:IMG_LEN, :]                    # (IMG_LEN, D)
    zpad = jnp.zeros((S_PAD - S_TOTAL, D), f32)
    rows = []
    for b in range(BATCH):                           # static unroll (B=2)
        rows.append(q_pe)
        rows.append(img_ref[b] + pe_img)             # img_pos_emb=True
        rows.append(zpad)
    x = jnp.concatenate(rows, axis=0)                # (N_ROWS, D) = (32, 32)

    # key-padding mask, hoisted out of the layer/head loops
    key_ids = jax.lax.broadcasted_iota(jnp.int32, (BATCH, S_PAD, S_PAD), 2)
    key_valid = key_ids < S_TOTAL

    # ---- post-norm TransformerEncoder layers ----
    for l in range(NUM_LAYERS):                      # static unroll
        # one fused QKV matmul per layer (1/sqrt(dh) folded into Wq/bq at pack time)
        qkv = jnp.dot(x, wqkv_ref[l], preferred_element_type=f32) + bqkv_ref[l]   # (N_ROWS, 3D)

        attn = jnp.zeros((N_ROWS, D), f32)
        for h in range(NUM_HEADS):                   # static unroll; no concat —
            lo = h * HEAD_DIM                        # each head accumulates into Wo
            qh = qkv[:, lo:lo + HEAD_DIM].reshape(BATCH, S_PAD, HEAD_DIM)
            kh = qkv[:, D + lo:D + lo + HEAD_DIM].reshape(BATCH, S_PAD, HEAD_DIM)
            vh = qkv[:, 2 * D + lo:2 * D + lo + HEAD_DIM].reshape(BATCH, S_PAD, HEAD_DIM)
            s = jnp.einsum("bqd,bkd->bqk", qh, kh, preferred_element_type=f32)
            s = jnp.where(key_valid, s, NEG_INF)     # mask padded key rows
            s = s - jnp.max(s, axis=-1, keepdims=True)
            p = jnp.exp(s)
            p = p * pl.reciprocal(jnp.sum(p, axis=-1, keepdims=True), approx=True)
            ctx = jnp.einsum("bqk,bkd->bqd", p, vh, preferred_element_type=f32)
            attn = attn + jnp.dot(ctx.reshape(N_ROWS, HEAD_DIM),
                                  w_out_ref[l * NUM_HEADS + h],
                                  preferred_element_type=f32)
        attn = attn + vec_ref[l * 6 + 0]                                   # out-proj bias
        x = _layernorm(x + attn, vec_ref[l * 6 + 1], vec_ref[l * 6 + 2])   # LN1
        h1 = _gelu(jnp.dot(x, w1_ref[l], preferred_element_type=f32) + b1_ref[l])
        h2 = jnp.dot(h1, w2_ref[l], preferred_element_type=f32) + vec_ref[l * 6 + 3]
        x = _layernorm(x + h2, vec_ref[l * 6 + 4], vec_ref[l * 6 + 5])     # LN2

    # ---- output heads: first SEQ_LEN rows of each batch, fused & lane-dense ----
    motion = jnp.concatenate(
        [x[b * S_PAD:b * S_PAD + SEQ_LEN, :] for b in range(BATCH)], axis=0)  # (B*SEQ_LEN, D)
    out = jnp.broadcast_to(hb3_ref[...], (BATCH * SEQ_LEN, OUT_PAD))
    for i in range(len(QUERY_KEYS)):                 # static unroll (2 heads)
        t = _gelu(jnp.dot(motion, hw1_ref[i], preferred_element_type=f32) + hb1_ref[i])
        t = _gelu(jnp.dot(t, hw2_ref[i], preferred_element_type=f32) + hb2_ref[i])
        out = out + jnp.dot(t, hw3_ref[i], preferred_element_type=f32)   # disjoint lane ranges
    o_ref[...] = out.reshape(BATCH, SEQ_LEN, OUT_PAD)


# ------------------------------ parameter setup --------------------------------
def sinusoidal_pe(max_len, d_model):
    position = np.arange(max_len, dtype=np.float64)[:, None]
    div_term = np.exp(np.arange(0, d_model, 2, dtype=np.float64)
                      * (-math.log(10000.0) / d_model))
    pe = np.zeros((max_len, d_model), dtype=np.float64)
    pe[:, 0::2] = np.sin(position * div_term)
    pe[:, 1::2] = np.cos(position * div_term)
    return pe.astype(np.float32)


def init_params(seed=0):
    key = jax.random.PRNGKey(seed)

    def nxt():
        nonlocal key
        key, sub = jax.random.split(key)
        return sub

    d, f, half = LATENT_DIM, FF_SIZE, HEAD_HID
    p = {
        "learnable_query": jax.random.normal(nxt(), (SEQ_LEN, d), jnp.float32),
        "pe": jnp.asarray(sinusoidal_pe(512, d)),
        "layers": [],
        "heads": {},
    }
    for _ in range(NUM_LAYERS):
        # TODO(synk): weights stored as (in, out) and applied as x @ W; transpose
        # PyTorch's in_proj_weight / Linear.weight if loading real checkpoints.
        p["layers"].append({
            "wqkv": 0.02 * jax.random.normal(nxt(), (d, 3 * d), jnp.float32),
            "bqkv": jnp.zeros((1, 3 * d), jnp.float32),
            "wo":   0.02 * jax.random.normal(nxt(), (d, d), jnp.float32),
            "bo":   jnp.zeros((1, d), jnp.float32),
            "ln1g": jnp.ones((1, d), jnp.float32),
            "ln1b": jnp.zeros((1, d), jnp.float32),
            "w1":   0.02 * jax.random.normal(nxt(), (d, f), jnp.float32),
            "b1":   jnp.zeros((1, f), jnp.float32),
            "w2":   0.02 * jax.random.normal(nxt(), (f, d), jnp.float32),
            "b2":   jnp.zeros((1, d), jnp.float32),
            "ln2g": jnp.ones((1, d), jnp.float32),
            "ln2b": jnp.zeros((1, d), jnp.float32),
        })
    # TODO(synk): LinearBlock assumed = Linear + activation (gelu / none), no norm/dropout.
    for k, dim in zip(QUERY_KEYS, QUERY_DIMS):
        p["heads"][k] = {
            "w1": 0.02 * jax.random.normal(nxt(), (d, half), jnp.float32),
            "b1": jnp.zeros((1, half), jnp.float32),
            "w2": 0.02 * jax.random.normal(nxt(), (half, half), jnp.float32),
            "b2": jnp.zeros((1, half), jnp.float32),
            "w3": 0.02 * jax.random.normal(nxt(), (half, dim), jnp.float32),
            "b3": jnp.zeros((1, dim), jnp.float32),
        }
    return p


def pack_params(p):
    """Pack ~40 tiny tensors into a few stacked slabs, statically indexed in-kernel."""
    d = LATENT_DIM
    scale = 1.0 / math.sqrt(HEAD_DIM)
    wqkv_s, bqkv_s, w_out, vec, w1s, b1s, w2s = [], [], [], [], [], [], []
    for lp in p["layers"]:
        # fold the 1/sqrt(head_dim) attention scale into the Q columns (host-side)
        wqkv_s.append(lp["wqkv"].at[:, 0:d].multiply(scale))     # (D, 3D)
        bqkv_s.append(lp["bqkv"].at[:, 0:d].multiply(scale))     # (1, 3D)
        for h in range(NUM_HEADS):
            w_out.append(lp["wo"][h * HEAD_DIM:(h + 1) * HEAD_DIM, :])  # (HEAD_DIM, D)
        vec += [lp["bo"], lp["ln1g"], lp["ln1b"], lp["b2"], lp["ln2g"], lp["ln2b"]]
        w1s.append(lp["w1"]); b1s.append(lp["b1"]); w2s.append(lp["w2"])

    hw1 = jnp.stack([p["heads"][k]["w1"] for k in QUERY_KEYS])   # (2, D, HEAD_HID)
    hb1 = jnp.stack([p["heads"][k]["b1"] for k in QUERY_KEYS])   # (2, 1, HEAD_HID)
    hw2 = jnp.stack([p["heads"][k]["w2"] for k in QUERY_KEYS])
    hb2 = jnp.stack([p["heads"][k]["b2"] for k in QUERY_KEYS])
    # final projections placed into disjoint lane ranges of one 128-wide slab
    hw3 = jnp.zeros((len(QUERY_KEYS), HEAD_HID, OUT_PAD), jnp.float32)
    hb3 = jnp.zeros((1, OUT_PAD), jnp.float32)
    off = 0
    for i, (k, dim) in enumerate(zip(QUERY_KEYS, QUERY_DIMS)):
        hw3 = hw3.at[i, :, off:off + dim].set(p["heads"][k]["w3"])
        hb3 = hb3.at[0, off:off + dim].set(p["heads"][k]["b3"][0])
        off += dim

    return {
        "lq": p["learnable_query"],
        "pe": p["pe"][:max(SEQ_LEN, IMG_LEN)],
        "wqkv": jnp.stack(wqkv_s),   # (L, D, 3D)  scale folded into Q cols
        "bqkv": jnp.stack(bqkv_s),   # (L, 1, 3D)
        "w_out": jnp.stack(w_out),   # (L*H, HEAD_DIM, D)
        "vec": jnp.stack(vec),       # (L*6, 1, D): bo, ln1g, ln1b, b2, ln2g, ln2b
        "w1": jnp.stack(w1s), "b1": jnp.stack(b1s), "w2": jnp.stack(w2s),
        "hw1": hw1, "hb1": hb1, "hw2": hw2, "hb2": hb2, "hw3": hw3, "hb3": hb3,
    }


# ------------------------------ forward pass -----------------------------------
def transformer_predictor_forward(img_feature, packed):
    """img_feature: (S_img, B, D), sequence-first like the PyTorch module."""
    # img_guidance_rate=1.0 -> random.random() <= 1.0 is always True: concat path.
    img_b = jnp.transpose(img_feature, (1, 0, 2))    # (B, S_img, D), ~1 KB
    out = pl.pallas_call(
        fused_forward_kernel,
        out_shape=jax.ShapeDtypeStruct((BATCH, SEQ_LEN, OUT_PAD), jnp.float32),
    )(packed["lq"], packed["pe"], img_b,
      packed["wqkv"], packed["bqkv"], packed["w_out"], packed["vec"],
      packed["w1"], packed["b1"], packed["w2"],
      packed["hw1"], packed["hb1"], packed["hw2"], packed["hb2"],
      packed["hw3"], packed["hb3"])
    res, off = {}, 0
    for k, dim in zip(QUERY_KEYS, QUERY_DIMS):
        res[k] = out[:, :, off:off + dim]
        off += dim
    return res


# ----------------------------------- main ---------------------------------------
if __name__ == "__main__":
    params = init_params(seed=0)
    packed = pack_params(params)
    img_feature = jax.random.normal(jax.random.PRNGKey(0),
                                    (IMG_LEN, BATCH, LATENT_DIM), jnp.float32)

    out = transformer_predictor_forward(img_feature, packed)
    out = jax.block_until_ready(out)

    for k, dim in zip(QUERY_KEYS, QUERY_DIMS):
        assert out[k].shape == (BATCH, SEQ_LEN, dim), (k, out[k].shape)
        assert bool(jnp.all(jnp.isfinite(out[k])))
    print("KERNEL_OK")
</pallas_src>

<mosaic_0001>
module attributes {stable_mosaic.version = 11 : i64} {
  func.func @fused_forward_kernel(%arg0: memref<8x32xf32, #tpu.memory_space<vmem>>, %arg1: memref<8x32xf32, #tpu.memory_space<vmem>>, %arg2: memref<2x4x32xf32, #tpu.memory_space<vmem>>, %arg3: memref<2x32x96xf32, #tpu.memory_space<vmem>>, %arg4: memref<2x1x96xf32, #tpu.memory_space<vmem>>, %arg5: memref<8x8x32xf32, #tpu.memory_space<vmem>>, %arg6: memref<12x1x32xf32, #tpu.memory_space<vmem>>, %arg7: memref<2x32x64xf32, #tpu.memory_space<vmem>>, %arg8: memref<2x1x64xf32, #tpu.memory_space<vmem>>, %arg9: memref<2x64x32xf32, #tpu.memory_space<vmem>>, %arg10: memref<2x32x16xf32, #tpu.memory_space<vmem>>, %arg11: memref<2x1x16xf32, #tpu.memory_space<vmem>>, %arg12: memref<2x16x16xf32, #tpu.memory_space<vmem>>, %arg13: memref<2x1x16xf32, #tpu.memory_space<vmem>>, %arg14: memref<2x16x128xf32, #tpu.memory_space<vmem>>, %arg15: memref<1x128xf32, #tpu.memory_space<vmem>>, %arg16: memref<2x8x128xf32, #tpu.memory_space<vmem>>) attributes {dimension_semantics = [], scalar_prefetch = 0 : i64, scratch_operands = 0 : i64, tpu.core_type = #tpu.core_type<tc>} {
    %c0 = arith.constant 0 : index
    %c0_0 = arith.constant 0 : index
    %0 = vector.load %arg0[%c0, %c0_0] : memref<8x32xf32, #tpu.memory_space<vmem>>, vector<8x32xf32>
    %c0_1 = arith.constant 0 : index
    %c0_2 = arith.constant 0 : index
    %1 = vector.load %arg1[%c0_1, %c0_2] : memref<8x32xf32, #tpu.memory_space<vmem>>, vector<8x32xf32>
    %2 = arith.addf %0, %1 : vector<8x32xf32>
    %c0_3 = arith.constant 0 : index
    %c0_4 = arith.constant 0 : index
    %3 = vector.load %arg1[%c0_3, %c0_4] : memref<8x32xf32, #tpu.memory_space<vmem>>, vector<4x32xf32>
    %cst = arith.constant 0.000000e+00 : f32
    %4 = vector.broadcast %cst : f32 to vector<4x32xf32>
    %c0_5 = arith.constant 0 : index
    %c0_6 = arith.constant 0 : index
    %c0_7 = arith.constant 0 : index
    %5 = vector.load %arg2[%c0_5, %c0_6, %c0_7] : memref<2x4x32xf32, #tpu.memory_space<vmem>>, vector<1x4x32xf32>
    %6 = vector.shape_cast %5 : vector<1x4x32xf32> to vector<4x32xf32>
    %7 = arith.addf %6, %3 : vector<4x32xf32>
    %c1 = arith.constant 1 : index
    %c0_8 = arith.constant 0 : index
    %c0_9 = arith.constant 0 : index
    %8 = vector.load %arg2[%c1, %c0_8, %c0_9] : memref<2x4x32xf32, #tpu.memory_space<vmem>>, vector<1x4x32xf32>
    %9 = vector.shape_cast %8 : vector<1x4x32xf32> to vector<4x32xf32>
    %10 = arith.addf %9, %3 : vector<4x32xf32>
    %11 = tpu.concatenate %2, %7, %4, %2, %10, %4 in 0 : vector<8x32xf32>, vector<4x32xf32>, vector<4x32xf32>, vector<8x32xf32>, vector<4x32xf32>, vector<4x32xf32> -> vector<32x32xf32>
    %12 = tpu.iota {dimensions = array<i32: 2>} : vector<2x16x16xi32>
    %c12_i32 = arith.constant 12 : i32
    %13 = vector.broadcast %c12_i32 : i32 to vector<2x16x16xi32>
    %14 = arith.cmpi slt, %12, %13 : vector<2x16x16xi32>
    %c0_10 = arith.constant 0 : index
    %c0_11 = arith.constant 0 : index
    %c0_12 = arith.constant 0 : index
    %15 = vector.load %arg3[%c0_10, %c0_11, %c0_12] : memref<2x32x96xf32, #tpu.memory_space<vmem>>, vector<1x32x96xf32>
    %16 = vector.shape_cast %15 : vector<1x32x96xf32> to vector<32x96xf32>
    %cst_13 = arith.constant dense<0.000000e+00> : vector<32x96xf32>
    %17 = tpu.matmul %11, %16, %cst_13 {dimension_numbers = #tpu.dot_dimension_numbers<[1], [0], [0], [1], [0, 0, 1, 1], [], []>} : vector<32x32xf32>, vector<32x96xf32>, vector<32x96xf32> -> vector<32x96xf32>
    %c0_14 = arith.constant 0 : index
    %c0_15 = arith.constant 0 : index
    %c0_16 = arith.constant 0 : index
    %18 = vector.load %arg4[%c0_14, %c0_15, %c0_16] : memref<2x1x96xf32, #tpu.memory_space<vmem>>, vector<1x1x96xf32>
    %19 = vector.shape_cast %18 : vector<1x1x96xf32> to vector<1x96xf32>
    %20 = vector.broadcast %19 : vector<1x96xf32> to vector<32x96xf32>
    %21 = arith.addf %17, %20 : vector<32x96xf32>
    %cst_17 = arith.constant 0.000000e+00 : f32
    %22 = vector.broadcast %cst_17 : f32 to vector<32x32xf32>
    %23 = vector.extract_strided_slice %21 {offsets = [0, 0], sizes = [32, 8], strides = [1, 1]} : vector<32x96xf32> to vector<32x8xf32>
    %24 = vector.shape_cast %23 : vector<32x8xf32> to vector<2x16x8xf32>
    %25 = vector.extract_strided_slice %21 {offsets = [0, 32], sizes = [32, 8], strides = [1, 1]} : vector<32x96xf32> to vector<32x8xf32>
    %26 = vector.shape_cast %25 : vector<32x8xf32> to vector<2x16x8xf32>
    %27 = vector.extract_strided_slice %21 {offsets = [0, 64], sizes = [32, 8], strides = [1, 1]} : vector<32x96xf32> to vector<32x8xf32>
    %28 = vector.shape_cast %27 : vector<32x8xf32> to vector<2x16x8xf32>
    "tpu.trace_start"() <{level = 10 : i32, message = "bqd,bkd->bqk"}> : () -> ()
    %cst_18 = arith.constant dense<0.000000e+00> : vector<2x16x16xf32>
    %29 = tpu.matmul %24, %26, %cst_18 {dimension_numbers = #tpu.dot_dimension_numbers<[2], [2], [1], [1], [0, 0, 0, 1, 1, 1], [0], [0]>} : vector<2x16x8xf32>, vector<2x16x8xf32>, vector<2x16x16xf32> -> vector<2x16x16xf32>
    %cst_19 = arith.constant -1.000000e+30 : f32
    "tpu.trace_stop"() : () -> ()
    %30 = vector.broadcast %cst_19 : f32 to vector<2x16x16xf32>
    %31 = arith.select %14, %29, %30 : vector<2x16x16xi1>, vector<2x16x16xf32>
    %cst_20 = arith.constant dense<0xFF800000> : vector<2x16xf32>
    %32 = vector.multi_reduction <maximumf>, %31, %cst_20 [2] : vector<2x16x16xf32> to vector<2x16xf32>
    %33 = vector.shape_cast %32 : vector<2x16xf32> to vector<2x16x1xf32>
    %34 = vector.broadcast %33 : vector<2x16x1xf32> to vector<2x16x16xf32>
    %35 = arith.subf %31, %34 : vector<2x16x16xf32>
    %36 = math.exp %35 : vector<2x16x16xf32>
    %cst_21 = arith.constant dense<0.000000e+00> : vector<2x16xf32>
    %37 = vector.multi_reduction <add>, %36, %cst_21 [2] : vector<2x16x16xf32> to vector<2x16xf32>
    %38 = vector.shape_cast %37 : vector<2x16xf32> to vector<2x16x1xf32>
    %39 = tpu.reciprocal %38 {approx = true} : vector<2x16x1xf32> -> vector<2x16x1xf32>
    %40 = vector.broadcast %39 : vector<2x16x1xf32> to vector<2x16x16xf32>
    %41 = arith.mulf %36, %40 : vector<2x16x16xf32>
    "tpu.trace_start"() <{level = 10 : i32, message = "bqk,bkd->bqd"}> : () -> ()
    %cst_22 = arith.constant dense<0.000000e+00> : vector<2x16x8xf32>
    %42 = tpu.matmul %41, %28, %cst_22 {dimension_numbers = #tpu.dot_dimension_numbers<[2], [1], [1], [2], [0, 0, 0, 1, 1, 2], [0], [0]>} : vector<2x16x16xf32>, vector<2x16x8xf32>, vector<2x16x8xf32> -> vector<2x16x8xf32>
    "tpu.trace_stop"() : () -> ()
    %43 = vector.shape_cast %42 : vector<2x16x8xf32> to vector<32x8xf32>
    %c0_23 = arith.constant 0 : index
    %c0_24 = arith.constant 0 : index
    %c0_25 = arith.constant 0 : index
    %44 = vector.load %arg5[%c0_23, %c0_24, %c0_25] : memref<8x8x32xf32, #tpu.memory_space<vmem>>, vector<1x8x32xf32>
    %45 = vector.shape_cast %44 : vector<1x8x32xf32> to vector<8x32xf32>
    %cst_26 = arith.constant dense<0.000000e+00> : vector<32x32xf32>
    %46 = tpu.matmul %43, %45, %cst_26 {dimension_numbers = #tpu.dot_dimension_numbers<[1], [0], [0], [1], [0, 0, 1, 1], [], []>} : vector<32x8xf32>, vector<8x32xf32>, vector<32x32xf32> -> vector<32x32xf32>
    %47 = arith.addf %22, %46 : vector<32x32xf32>
    %48 = vector.extract_strided_slice %21 {offsets = [0, 8], sizes = [32, 8], strides = [1, 1]} : vector<32x96xf32> to vector<32x8xf32>
    %49 = vector.shape_cast %48 : vector<32x8xf32> to vector<2x16x8xf32>
    %50 = vector.extract_strided_slice %21 {offsets = [0, 40], sizes = [32, 8], strides = [1, 1]} : vector<32x96xf32> to vector<32x8xf32>
    %51 = vector.shape_cast %50 : vector<32x8xf32> to vector<2x16x8xf32>
    %52 = vector.extract_strided_slice %21 {offsets = [0, 72], sizes = [32, 8], strides = [1, 1]} : vector<32x96xf32> to vector<32x8xf32>
    %53 = vector.shape_cast %52 : vector<32x8xf32> to vector<2x16x8xf32>
    "tpu.trace_start"() <{level = 10 : i32, message = "bqd,bkd->bqk"}> : () -> ()
    %cst_27 = arith.constant dense<0.000000e+00> : vector<2x16x16xf32>
    %54 = tpu.matmul %49, %51, %cst_27 {dimension_numbers = #tpu.dot_dimension_numbers<[2], [2], [1], [1], [0, 0, 0, 1, 1, 1], [0], [0]>} : vector<2x16x8xf32>, vector<2x16x8xf32>, vector<2x16x16xf32> -> vector<2x16x16xf32>
    %cst_28 = arith.constant -1.000000e+30 : f32
    "tpu.trace_stop"() : () -> ()
    %55 = vector.broadcast %cst_28 : f32 to vector<2x16x16xf32>
    %56 = arith.select %14, %54, %55 : vector<2x16x16xi1>, vector<2x16x16xf32>
    %cst_29 = arith.constant dense<0xFF800000> : vector<2x16xf32>
    %57 = vector.multi_reduction <maximumf>, %56, %cst_29 [2] : vector<2x16x16xf32> to vector<2x16xf32>
    %58 = vector.shape_cast %57 : vector<2x16xf32> to vector<2x16x1xf32>
    %59 = vector.broadcast %58 : vector<2x16x1xf32> to vector<2x16x16xf32>
    %60 = arith.subf %56, %59 : vector<2x16x16xf32>
    %61 = math.exp %60 : vector<2x16x16xf32>
    %cst_30 = arith.constant dense<0.000000e+00> : vector<2x16xf32>
    %62 = vector.multi_reduction <add>, %61, %cst_30 [2] : vector<2x16x16xf32> to vector<2x16xf32>
    %63 = vector.shape_cast %62 : vector<2x16xf32> to vector<2x16x1xf32>
    %64 = tpu.reciprocal %63 {approx = true} : vector<2x16x1xf32> -> vector<2x16x1xf32>
    %65 = vector.broadcast %64 : vector<2x16x1xf32> to vector<2x16x16xf32>
    %66 = arith.mulf %61, %65 : vector<2x16x16xf32>
    "tpu.trace_start"() <{level = 10 : i32, message = "bqk,bkd->bqd"}> : () -> ()
    %cst_31 = arith.constant dense<0.000000e+00> : vector<2x16x8xf32>
    %67 = tpu.matmul %66, %53, %cst_31 {dimension_numbers = #tpu.dot_dimension_numbers<[2], [1], [1], [2], [0, 0, 0, 1, 1, 2], [0], [0]>} : vector<2x16x16xf32>, vector<2x16x8xf32>, vector<2x16x8xf32> -> vector<2x16x8xf32>
    "tpu.trace_stop"() : () -> ()
    %68 = vector.shape_cast %67 : vector<2x16x8xf32> to vector<32x8xf32>
    %c1_32 = arith.constant 1 : index
    %c0_33 = arith.constant 0 : index
    %c0_34 = arith.constant 0 : index
    %69 = vector.load %arg5[%c1_32, %c0_33, %c0_34] : memref<8x8x32xf32, #tpu.memory_space<vmem>>, vector<1x8x32xf32>
    %70 = vector.shape_cast %69 : vector<1x8x32xf32> to vector<8x32xf32>
    %cst_35 = arith.constant dense<0.000000e+00> : vector<32x32xf32>
    %71 = tpu.matmul %68, %70, %cst_35 {dimension_numbers = #tpu.dot_dimension_numbers<[1], [0], [0], [1], [0, 0, 1, 1], [], []>} : vector<32x8xf32>, vector<8x32xf32>, vector<32x32xf32> -> vector<32x32xf32>
    %72 = arith.addf %47, %71 : vector<32x32xf32>
    %73 = vector.extract_strided_slice %21 {offsets = [0, 16], sizes = [32, 8], strides = [1, 1]} : vector<32x96xf32> to vector<32x8xf32>
    %74 = vector.shape_cast %73 : vector<32x8xf32> to vector<2x16x8xf32>
    %75 = vector.extract_strided_slice %21 {offsets = [0, 48], sizes = [32, 8], strides = [1, 1]} : vector<32x96xf32> to vector<32x8xf32>
    %76 = vector.shape_cast %75 : vector<32x8xf32> to vector<2x16x8xf32>
    %77 = vector.extract_strided_slice %21 {offsets = [0, 80], sizes = [32, 8], strides = [1, 1]} : vector<32x96xf32> to vector<32x8xf32>
    %78 = vector.shape_cast %77 : vector<32x8xf32> to vector<2x16x8xf32>
    "tpu.trace_start"() <{level = 10 : i32, message = "bqd,bkd->bqk"}> : () -> ()
    %cst_36 = arith.constant dense<0.000000e+00> : vector<2x16x16xf32>
    %79 = tpu.matmul %74, %76, %cst_36 {dimension_numbers = #tpu.dot_dimension_numbers<[2], [2], [1], [1], [0, 0, 0, 1, 1, 1], [0], [0]>} : vector<2x16x8xf32>, vector<2x16x8xf32>, vector<2x16x16xf32> -> vector<2x16x16xf32>
    %cst_37 = arith.constant -1.000000e+30 : f32
    "tpu.trace_stop"() : () -> ()
    %80 = vector.broadcast %cst_37 : f32 to vector<2x16x16xf32>
    %81 = arith.select %14, %79, %80 : vector<2x16x16xi1>, vector<2x16x16xf32>
    %cst_38 = arith.constant dense<0xFF800000> : vector<2x16xf32>
    %82 = vector.multi_reduction <maximumf>, %81, %cst_38 [2] : vector<2x16x16xf32> to vector<2x16xf32>
    %83 = vector.shape_cast %82 : vector<2x16xf32> to vector<2x16x1xf32>
    %84 = vector.broadcast %83 : vector<2x16x1xf32> to vector<2x16x16xf32>
    %85 = arith.subf %81, %84 : vector<2x16x16xf32>
    %86 = math.exp %85 : vector<2x16x16xf32>
    %cst_39 = arith.constant dense<0.000000e+00> : vector<2x16xf32>
    %87 = vector.multi_reduction <add>, %86, %cst_39 [2] : vector<2x16x16xf32> to vector<2x16xf32>
    %88 = vector.shape_cast %87 : vector<2x16xf32> to vector<2x16x1xf32>
    %89 = tpu.reciprocal %88 {approx = true} : vector<2x16x1xf32> -> vector<2x16x1xf32>
    %90 = vector.broadcast %89 : vector<2x16x1xf32> to vector<2x16x16xf32>
    %91 = arith.mulf %86, %90 : vector<2x16x16xf32>
    "tpu.trace_start"() <{level = 10 : i32, message = "bqk,bkd->bqd"}> : () -> ()
    %cst_40 = arith.constant dense<0.000000e+00> : vector<2x16x8xf32>
    %92 = tpu.matmul %91, %78, %cst_40 {dimension_numbers = #tpu.dot_dimension_numbers<[2], [1], [1], [2], [0, 0, 0, 1, 1, 2], [0], [0]>} : vector<2x16x16xf32>, vector<2x16x8xf32>, vector<2x16x8xf32> -> vector<2x16x8xf32>
    "tpu.trace_stop"() : () -> ()
    %93 = vector.shape_cast %92 : vector<2x16x8xf32> to vector<32x8xf32>
    %c2 = arith.constant 2 : index
    %c0_41 = arith.constant 0 : index
    %c0_42 = arith.constant 0 : index
    %94 = vector.load %arg5[%c2, %c0_41, %c0_42] : memref<8x8x32xf32, #tpu.memory_space<vmem>>, vector<1x8x32xf32>
    %95 = vector.shape_cast %94 : vector<1x8x32xf32> to vector<8x32xf32>
    %cst_43 = arith.constant dense<0.000000e+00> : vector<32x32xf32>
    %96 = tpu.matmul %93, %95, %cst_43 {dimension_numbers = #tpu.dot_dimension_numbers<[1], [0], [0], [1], [0, 0, 1, 1], [], []>} : vector<32x8xf32>, vector<8x32xf32>, vector<32x32xf32> -> vector<32x32xf32>
    %97 = arith.addf %72, %96 : vector<32x32xf32>
    %98 = vector.extract_strided_slice %21 {offsets = [0, 24], sizes = [32, 8], strides = [1, 1]} : vector<32x96xf32> to vector<32x8xf32>
    %99 = vector.shape_cast %98 : vector<32x8xf32> to vector<2x16x8xf32>
    %100 = vector.extract_strided_slice %21 {offsets = [0, 56], sizes = [32, 8], strides = [1, 1]} : vector<32x96xf32> to vector<32x8xf32>
    %101 = vector.shape_cast %100 : vector<32x8xf32> to vector<2x16x8xf32>
    %102 = vector.extract_strided_slice %21 {offsets = [0, 88], sizes = [32, 8], strides = [1, 1]} : vector<32x96xf32> to vector<32x8xf32>
    %103 = vector.shape_cast %102 : vector<32x8xf32> to vector<2x16x8xf32>
    "tpu.trace_start"() <{level = 10 : i32, message = "bqd,bkd->bqk"}> : () -> ()
    %cst_44 = arith.constant dense<0.000000e+00> : vector<2x16x16xf32>
    %104 = tpu.matmul %99, %101, %cst_44 {dimension_numbers = #tpu.dot_dimension_numbers<[2], [2], [1], [1], [0, 0, 0, 1, 1, 1], [0], [0]>} : vector<2x16x8xf32>, vector<2x16x8xf32>, vector<2x16x16xf32> -> vector<2x16x16xf32>
    %cst_45 = arith.constant -1.000000e+30 : f32
    "tpu.trace_stop"() : () -> ()
    %105 = vector.broadcast %cst_45 : f32 to vector<2x16x16xf32>
    %106 = arith.select %14, %104, %105 : vector<2x16x16xi1>, vector<2x16x16xf32>
    %cst_46 = arith.constant dense<0xFF800000> : vector<2x16xf32>
    %107 = vector.multi_reduction <maximumf>, %106, %cst_46 [2] : vector<2x16x16xf32> to vector<2x16xf32>
    %108 = vector.shape_cast %107 : vector<2x16xf32> to vector<2x16x1xf32>
    %109 = vector.broadcast %108 : vector<2x16x1xf32> to vector<2x16x16xf32>
    %110 = arith.subf %106, %109 : vector<2x16x16xf32>
    %111 = math.exp %110 : vector<2x16x16xf32>
    %cst_47 = arith.constant dense<0.000000e+00> : vector<2x16xf32>
    %112 = vector.multi_reduction <add>, %111, %cst_47 [2] : vector<2x16x16xf32> to vector<2x16xf32>
    %113 = vector.shape_cast %112 : vector<2x16xf32> to vector<2x16x1xf32>
    %114 = tpu.reciprocal %113 {approx = true} : vector<2x16x1xf32> -> vector<2x16x1xf32>
    %115 = vector.broadcast %114 : vector<2x16x1xf32> to vector<2x16x16xf32>
    %116 = arith.mulf %111, %115 : vector<2x16x16xf32>
    "tpu.trace_start"() <{level = 10 : i32, message = "bqk,bkd->bqd"}> : () -> ()
    %cst_48 = arith.constant dense<0.000000e+00> : vector<2x16x8xf32>
    %117 = tpu.matmul %116, %103, %cst_48 {dimension_numbers = #tpu.dot_dimension_numbers<[2], [1], [1], [2], [0, 0, 0, 1, 1, 2], [0], [0]>} : vector<2x16x16xf32>, vector<2x16x8xf32>, vector<2x16x8xf32> -> vector<2x16x8xf32>
    "tpu.trace_stop"() : () -> ()
    %118 = vector.shape_cast %117 : vector<2x16x8xf32> to vector<32x8xf32>
    %c3 = arith.constant 3 : index
    %c0_49 = arith.constant 0 : index
    %c0_50 = arith.constant 0 : index
    %119 = vector.load %arg5[%c3, %c0_49, %c0_50] : memref<8x8x32xf32, #tpu.memory_space<vmem>>, vector<1x8x32xf32>
    %120 = vector.shape_cast %119 : vector<1x8x32xf32> to vector<8x32xf32>
    %cst_51 = arith.constant dense<0.000000e+00> : vector<32x32xf32>
    %121 = tpu.matmul %118, %120, %cst_51 {dimension_numbers = #tpu.dot_dimension_numbers<[1], [0], [0], [1], [0, 0, 1, 1], [], []>} : vector<32x8xf32>, vector<8x32xf32>, vector<32x32xf32> -> vector<32x32xf32>
    %122 = arith.addf %97, %121 : vector<32x32xf32>
    %c0_52 = arith.constant 0 : index
    %c0_53 = arith.constant 0 : index
    %c0_54 = arith.constant 0 : index
    %123 = vector.load %arg6[%c0_52, %c0_53, %c0_54] : memref<12x1x32xf32, #tpu.memory_space<vmem>>, vector<1x1x32xf32>
    %124 = vector.shape_cast %123 : vector<1x1x32xf32> to vector<1x32xf32>
    %125 = vector.broadcast %124 : vector<1x32xf32> to vector<32x32xf32>
    %126 = arith.addf %122, %125 : vector<32x32xf32>
    %127 = arith.addf %11, %126 : vector<32x32xf32>
    %c1_55 = arith.constant 1 : index
    %c0_56 = arith.constant 0 : index
    %c0_57 = arith.constant 0 : index
    %128 = vector.load %arg6[%c1_55, %c0_56, %c0_57] : memref<12x1x32xf32, #tpu.memory_space<vmem>>, vector<1x1x32xf32>
    %129 = vector.shape_cast %128 : vector<1x1x32xf32> to vector<1x32xf32>
    %c2_58 = arith.constant 2 : index
    %c0_59 = arith.constant 0 : index
    %c0_60 = arith.constant 0 : index
    %130 = vector.load %arg6[%c2_58, %c0_59, %c0_60] : memref<12x1x32xf32, #tpu.memory_space<vmem>>, vector<1x1x32xf32>
    %131 = vector.shape_cast %130 : vector<1x1x32xf32> to vector<1x32xf32>
    %cst_61 = arith.constant dense<0.000000e+00> : vector<32xf32>
    %132 = vector.multi_reduction <add>, %127, %cst_61 [1] : vector<32x32xf32> to vector<32xf32>
    %133 = vector.shape_cast %132 : vector<32xf32> to vector<32x1xf32>
    %cst_62 = arith.constant 3.200000e+01 : f32
    %134 = vector.broadcast %cst_62 : f32 to vector<32x1xf32>
    %135 = arith.divf %133, %134 : vector<32x1xf32>
    %136 = vector.broadcast %135 : vector<32x1xf32> to vector<32x32xf32>
    %137 = arith.subf %127, %136 : vector<32x32xf32>
    %138 = arith.mulf %137, %137 : vector<32x32xf32>
    %cst_63 = arith.constant dense<0.000000e+00> : vector<32xf32>
    %139 = vector.multi_reduction <add>, %138, %cst_63 [1] : vector<32x32xf32> to vector<32xf32>
    %140 = vector.shape_cast %139 : vector<32xf32> to vector<32x1xf32>
    %cst_64 = arith.constant 3.200000e+01 : f32
    %141 = vector.broadcast %cst_64 : f32 to vector<32x1xf32>
    %142 = arith.divf %140, %141 : vector<32x1xf32>
    %143 = vector.broadcast %135 : vector<32x1xf32> to vector<32x32xf32>
    %144 = arith.subf %127, %143 : vector<32x32xf32>
    %cst_65 = arith.constant 9.99999974E-6 : f32
    %145 = vector.broadcast %cst_65 : f32 to vector<32x1xf32>
    %146 = arith.addf %142, %145 : vector<32x1xf32>
    %147 = math.rsqrt %146 : vector<32x1xf32>
    %148 = vector.broadcast %147 : vector<32x1xf32> to vector<32x32xf32>
    %149 = arith.mulf %144, %148 : vector<32x32xf32>
    %150 = vector.broadcast %129 : vector<1x32xf32> to vector<32x32xf32>
    %151 = arith.mulf %149, %150 : vector<32x32xf32>
    %152 = vector.broadcast %131 : vector<1x32xf32> to vector<32x32xf32>
    %153 = arith.addf %151, %152 : vector<32x32xf32>
    %c0_66 = arith.constant 0 : index
    %c0_67 = arith.constant 0 : index
    %c0_68 = arith.constant 0 : index
    %154 = vector.load %arg7[%c0_66, %c0_67, %c0_68] : memref<2x32x64xf32, #tpu.memory_space<vmem>>, vector<1x32x64xf32>
    %155 = vector.shape_cast %154 : vector<1x32x64xf32> to vector<32x64xf32>
    %cst_69 = arith.constant dense<0.000000e+00> : vector<32x64xf32>
    %156 = tpu.matmul %153, %155, %cst_69 {dimension_numbers = #tpu.dot_dimension_numbers<[1], [0], [0], [1], [0, 0, 1, 1], [], []>} : vector<32x32xf32>, vector<32x64xf32>, vector<32x64xf32> -> vector<32x64xf32>
    %c0_70 = arith.constant 0 : index
    %c0_71 = arith.constant 0 : index
    %c0_72 = arith.constant 0 : index
    %157 = vector.load %arg8[%c0_70, %c0_71, %c0_72] : memref<2x1x64xf32, #tpu.memory_space<vmem>>, vector<1x1x64xf32>
    %158 = vector.shape_cast %157 : vector<1x1x64xf32> to vector<1x64xf32>
    %159 = vector.broadcast %158 : vector<1x64xf32> to vector<32x64xf32>
    %160 = arith.addf %156, %159 : vector<32x64xf32>
    %cst_73 = arith.constant 5.000000e-01 : f32
    %161 = vector.broadcast %cst_73 : f32 to vector<32x64xf32>
    %162 = arith.mulf %161, %160 : vector<32x64xf32>
    %cst_74 = arith.constant 4.471500e-02 : f32
    %163 = vector.broadcast %cst_74 : f32 to vector<32x64xf32>
    %164 = arith.mulf %163, %160 : vector<32x64xf32>
    %165 = arith.mulf %164, %160 : vector<32x64xf32>
    %166 = arith.mulf %165, %160 : vector<32x64xf32>
    %167 = arith.addf %160, %166 : vector<32x64xf32>
    %cst_75 = arith.constant 0.797884583 : f32
    %168 = vector.broadcast %cst_75 : f32 to vector<32x64xf32>
    %169 = arith.mulf %168, %167 : vector<32x64xf32>
    %170 = math.tanh %169 : vector<32x64xf32>
    %cst_76 = arith.constant 1.000000e+00 : f32
    %171 = vector.broadcast %cst_76 : f32 to vector<32x64xf32>
    %172 = arith.addf %171, %170 : vector<32x64xf32>
    %173 = arith.mulf %162, %172 : vector<32x64xf32>
    %c0_77 = arith.constant 0 : index
    %c0_78 = arith.constant 0 : index
    %c0_79 = arith.constant 0 : index
    %174 = vector.load %arg9[%c0_77, %c0_78, %c0_79] : memref<2x64x32xf32, #tpu.memory_space<vmem>>, vector<1x64x32xf32>
    %175 = vector.shape_cast %174 : vector<1x64x32xf32> to vector<64x32xf32>
    %cst_80 = arith.constant dense<0.000000e+00> : vector<32x32xf32>
    %176 = tpu.matmul %173, %175, %cst_80 {dimension_numbers = #tpu.dot_dimension_numbers<[1], [0], [0], [1], [0, 0, 1, 1], [], []>} : vector<32x64xf32>, vector<64x32xf32>, vector<32x32xf32> -> vector<32x32xf32>
    %c3_81 = arith.constant 3 : index
    %c0_82 = arith.constant 0 : index
    %c0_83 = arith.constant 0 : index
    %177 = vector.load %arg6[%c3_81, %c0_82, %c0_83] : memref<12x1x32xf32, #tpu.memory_space<vmem>>, vector<1x1x32xf32>
    %178 = vector.shape_cast %177 : vector<1x1x32xf32> to vector<1x32xf32>
    %179 = vector.broadcast %178 : vector<1x32xf32> to vector<32x32xf32>
    %180 = arith.addf %176, %179 : vector<32x32xf32>
    %181 = arith.addf %153, %180 : vector<32x32xf32>
    %c4 = arith.constant 4 : index
    %c0_84 = arith.constant 0 : index
    %c0_85 = arith.constant 0 : index
    %182 = vector.load %arg6[%c4, %c0_84, %c0_85] : memref<12x1x32xf32, #tpu.memory_space<vmem>>, vector<1x1x32xf32>
    %183 = vector.shape_cast %182 : vector<1x1x32xf32> to vector<1x32xf32>
    %c5 = arith.constant 5 : index
    %c0_86 = arith.constant 0 : index
    %c0_87 = arith.constant 0 : index
    %184 = vector.load %arg6[%c5, %c0_86, %c0_87] : memref<12x1x32xf32, #tpu.memory_space<vmem>>, vector<1x1x32xf32>
    %185 = vector.shape_cast %184 : vector<1x1x32xf32> to vector<1x32xf32>
    %cst_88 = arith.constant dense<0.000000e+00> : vector<32xf32>
    %186 = vector.multi_reduction <add>, %181, %cst_88 [1] : vector<32x32xf32> to vector<32xf32>
    %187 = vector.shape_cast %186 : vector<32xf32> to vector<32x1xf32>
    %cst_89 = arith.constant 3.200000e+01 : f32
    %188 = vector.broadcast %cst_89 : f32 to vector<32x1xf32>
    %189 = arith.divf %187, %188 : vector<32x1xf32>
    %190 = vector.broadcast %189 : vector<32x1xf32> to vector<32x32xf32>
    %191 = arith.subf %181, %190 : vector<32x32xf32>
    %192 = arith.mulf %191, %191 : vector<32x32xf32>
    %cst_90 = arith.constant dense<0.000000e+00> : vector<32xf32>
    %193 = vector.multi_reduction <add>, %192, %cst_90 [1] : vector<32x32xf32> to vector<32xf32>
    %194 = vector.shape_cast %193 : vector<32xf32> to vector<32x1xf32>
    %cst_91 = arith.constant 3.200000e+01 : f32
    %195 = vector.broadcast %cst_91 : f32 to vector<32x1xf32>
    %196 = arith.divf %194, %195 : vector<32x1xf32>
    %197 = vector.broadcast %189 : vector<32x1xf32> to vector<32x32xf32>
    %198 = arith.subf %181, %197 : vector<32x32xf32>
    %cst_92 = arith.constant 9.99999974E-6 : f32
    %199 = vector.broadcast %cst_92 : f32 to vector<32x1xf32>
    %200 = arith.addf %196, %199 : vector<32x1xf32>
    %201 = math.rsqrt %200 : vector<32x1xf32>
    %202 = vector.broadcast %201 : vector<32x1xf32> to vector<32x32xf32>
    %203 = arith.mulf %198, %202 : vector<32x32xf32>
    %204 = vector.broadcast %183 : vector<1x32xf32> to vector<32x32xf32>
    %205 = arith.mulf %203, %204 : vector<32x32xf32>
    %206 = vector.broadcast %185 : vector<1x32xf32> to vector<32x32xf32>
    %207 = arith.addf %205, %206 : vector<32x32xf32>
    %c1_93 = arith.constant 1 : index
    %c0_94 = arith.constant 0 : index
    %c0_95 = arith.constant 0 : index
    %208 = vector.load %arg3[%c1_93, %c0_94, %c0_95] : memref<2x32x96xf32, #tpu.memory_space<vmem>>, vector<1x32x96xf32>
    %209 = vector.shape_cast %208 : vector<1x32x96xf32> to vector<32x96xf32>
    %cst_96 = arith.constant dense<0.000000e+00> : vector<32x96xf32>
    %210 = tpu.matmul %207, %209, %cst_96 {dimension_numbers = #tpu.dot_dimension_numbers<[1], [0], [0], [1], [0, 0, 1, 1], [], []>} : vector<32x32xf32>, vector<32x96xf32>, vector<32x96xf32> -> vector<32x96xf32>
    %c1_97 = arith.constant 1 : index
    %c0_98 = arith.constant 0 : index
    %c0_99 = arith.constant 0 : index
    %211 = vector.load %arg4[%c1_97, %c0_98, %c0_99] : memref<2x1x96xf32, #tpu.memory_space<vmem>>, vector<1x1x96xf32>
    %212 = vector.shape_cast %211 : vector<1x1x96xf32> to vector<1x96xf32>
    %213 = vector.broadcast %212 : vector<1x96xf32> to vector<32x96xf32>
    %214 = arith.addf %210, %213 : vector<32x96xf32>
    %cst_100 = arith.constant 0.000000e+00 : f32
    %215 = vector.broadcast %cst_100 : f32 to vector<32x32xf32>
    %216 = vector.extract_strided_slice %214 {offsets = [0, 0], sizes = [32, 8], strides = [1, 1]} : vector<32x96xf32> to vector<32x8xf32>
    %217 = vector.shape_cast %216 : vector<32x8xf32> to vector<2x16x8xf32>
    %218 = vector.extract_strided_slice %214 {offsets = [0, 32], sizes = [32, 8], strides = [1, 1]} : vector<32x96xf32> to vector<32x8xf32>
    %219 = vector.shape_cast %218 : vector<32x8xf32> to vector<2x16x8xf32>
    %220 = vector.extract_strided_slice %214 {offsets = [0, 64], sizes = [32, 8], strides = [1, 1]} : vector<32x96xf32> to vector<32x8xf32>
    %221 = vector.shape_cast %220 : vector<32x8xf32> to vector<2x16x8xf32>
    "tpu.trace_start"() <{level = 10 : i32, message = "bqd,bkd->bqk"}> : () -> ()
    %cst_101 = arith.constant dense<0.000000e+00> : vector<2x16x16xf32>
    %222 = tpu.matmul %217, %219, %cst_101 {dimension_numbers = #tpu.dot_dimension_numbers<[2], [2], [1], [1], [0, 0, 0, 1, 1, 1], [0], [0]>} : vector<2x16x8xf32>, vector<2x16x8xf32>, vector<2x16x16xf32> -> vector<2x16x16xf32>
    %cst_102 = arith.constant -1.000000e+30 : f32
    "tpu.trace_stop"() : () -> ()
    %223 = vector.broadcast %cst_102 : f32 to vector<2x16x16xf32>
    %224 = arith.select %14, %222, %223 : vector<2x16x16xi1>, vector<2x16x16xf32>
    %cst_103 = arith.constant dense<0xFF800000> : vector<2x16xf32>
    %225 = vector.multi_reduction <maximumf>, %224, %cst_103 [2] : vector<2x16x16xf32> to vector<2x16xf32>
    %226 = vector.shape_cast %225 : vector<2x16xf32> to vector<2x16x1xf32>
    %227 = vector.broadcast %226 : vector<2x16x1xf32> to vector<2x16x16xf32>
    %228 = arith.subf %224, %227 : vector<2x16x16xf32>
    %229 = math.exp %228 : vector<2x16x16xf32>
    %cst_104 = arith.constant dense<0.000000e+00> : vector<2x16xf32>
    %230 = vector.multi_reduction <add>, %229, %cst_104 [2] : vector<2x16x16xf32> to vector<2x16xf32>
    %231 = vector.shape_cast %230 : vector<2x16xf32> to vector<2x16x1xf32>
    %232 = tpu.reciprocal %231 {approx = true} : vector<2x16x1xf32> -> vector<2x16x1xf32>
    %233 = vector.broadcast %232 : vector<2x16x1xf32> to vector<2x16x16xf32>
    %234 = arith.mulf %229, %233 : vector<2x16x16xf32>
    "tpu.trace_start"() <{level = 10 : i32, message = "bqk,bkd->bqd"}> : () -> ()
    %cst_105 = arith.constant dense<0.000000e+00> : vector<2x16x8xf32>
    %235 = tpu.matmul %234, %221, %cst_105 {dimension_numbers = #tpu.dot_dimension_numbers<[2], [1], [1], [2], [0, 0, 0, 1, 1, 2], [0], [0]>} : vector<2x16x16xf32>, vector<2x16x8xf32>, vector<2x16x8xf32> -> vector<2x16x8xf32>
    "tpu.trace_stop"() : () -> ()
    %236 = vector.shape_cast %235 : vector<2x16x8xf32> to vector<32x8xf32>
    %c4_106 = arith.constant 4 : index
    %c0_107 = arith.constant 0 : index
    %c0_108 = arith.constant 0 : index
    %237 = vector.load %arg5[%c4_106, %c0_107, %c0_108] : memref<8x8x32xf32, #tpu.memory_space<vmem>>, vector<1x8x32xf32>
    %238 = vector.shape_cast %237 : vector<1x8x32xf32> to vector<8x32xf32>
    %cst_109 = arith.constant dense<0.000000e+00> : vector<32x32xf32>
    %239 = tpu.matmul %236, %238, %cst_109 {dimension_numbers = #tpu.dot_dimension_numbers<[1], [0], [0], [1], [0, 0, 1, 1], [], []>} : vector<32x8xf32>, vector<8x32xf32>, vector<32x32xf32> -> vector<32x32xf32>
    %240 = arith.addf %215, %239 : vector<32x32xf32>
    %241 = vector.extract_strided_slice %214 {offsets = [0, 8], sizes = [32, 8], strides = [1, 1]} : vector<32x96xf32> to vector<32x8xf32>
    %242 = vector.shape_cast %241 : vector<32x8xf32> to vector<2x16x8xf32>
    %243 = vector.extract_strided_slice %214 {offsets = [0, 40], sizes = [32, 8], strides = [1, 1]} : vector<32x96xf32> to vector<32x8xf32>
    %244 = vector.shape_cast %243 : vector<32x8xf32> to vector<2x16x8xf32>
    %245 = vector.extract_strided_slice %214 {offsets = [0, 72], sizes = [32, 8], strides = [1, 1]} : vector<32x96xf32> to vector<32x8xf32>
    %246 = vector.shape_cast %245 : vector<32x8xf32> to vector<2x16x8xf32>
    "tpu.trace_start"() <{level = 10 : i32, message = "bqd,bkd->bqk"}> : () -> ()
    %cst_110 = arith.constant dense<0.000000e+00> : vector<2x16x16xf32>
    %247 = tpu.matmul %242, %244, %cst_110 {dimension_numbers = #tpu.dot_dimension_numbers<[2], [2], [1], [1], [0, 0, 0, 1, 1, 1], [0], [0]>} : vector<2x16x8xf32>, vector<2x16x8xf32>, vector<2x16x16xf32> -> vector<2x16x16xf32>
    %cst_111 = arith.constant -1.000000e+30 : f32
    "tpu.trace_stop"() : () -> ()
    %248 = vector.broadcast %cst_111 : f32 to vector<2x16x16xf32>
    %249 = arith.select %14, %247, %248 : vector<2x16x16xi1>, vector<2x16x16xf32>
    %cst_112 = arith.constant dense<0xFF800000> : vector<2x16xf32>
    %250 = vector.multi_reduction <maximumf>, %249, %cst_112 [2] : vector<2x16x16xf32> to vector<2x16xf32>
    %251 = vector.shape_cast %250 : vector<2x16xf32> to vector<2x16x1xf32>
    %252 = vector.broadcast %251 : vector<2x16x1xf32> to vector<2x16x16xf32>
    %253 = arith.subf %249, %252 : vector<2x16x16xf32>
    %254 = math.exp %253 : vector<2x16x16xf32>
    %cst_113 = arith.constant dense<0.000000e+00> : vector<2x16xf32>
    %255 = vector.multi_reduction <add>, %254, %cst_113 [2] : vector<2x16x16xf32> to vector<2x16xf32>
    %256 = vector.shape_cast %255 : vector<2x16xf32> to vector<2x16x1xf32>
    %257 = tpu.reciprocal %256 {approx = true} : vector<2x16x1xf32> -> vector<2x16x1xf32>
    %258 = vector.broadcast %257 : vector<2x16x1xf32> to vector<2x16x16xf32>
    %259 = arith.mulf %254, %258 : vector<2x16x16xf32>
    "tpu.trace_start"() <{level = 10 : i32, message = "bqk,bkd->bqd"}> : () -> ()
    %cst_114 = arith.constant dense<0.000000e+00> : vector<2x16x8xf32>
    %260 = tpu.matmul %259, %246, %cst_114 {dimension_numbers = #tpu.dot_dimension_numbers<[2], [1], [1], [2], [0, 0, 0, 1, 1, 2], [0], [0]>} : vector<2x16x16xf32>, vector<2x16x8xf32>, vector<2x16x8xf32> -> vector<2x16x8xf32>
    "tpu.trace_stop"() : () -> ()
    %261 = vector.shape_cast %260 : vector<2x16x8xf32> to vector<32x8xf32>
    %c5_115 = arith.constant 5 : index
    %c0_116 = arith.constant 0 : index
    %c0_117 = arith.constant 0 : index
    %262 = vector.load %arg5[%c5_115, %c0_116, %c0_117] : memref<8x8x32xf32, #tpu.memory_space<vmem>>, vector<1x8x32xf32>
    %263 = vector.shape_cast %262 : vector<1x8x32xf32> to vector<8x32xf32>
    %cst_118 = arith.constant dense<0.000000e+00> : vector<32x32xf32>
    %264 = tpu.matmul %261, %263, %cst_118 {dimension_numbers = #tpu.dot_dimension_numbers<[1], [0], [0], [1], [0, 0, 1, 1], [], []>} : vector<32x8xf32>, vector<8x32xf32>, vector<32x32xf32> -> vector<32x32xf32>
    %265 = arith.addf %240, %264 : vector<32x32xf32>
    %266 = vector.extract_strided_slice %214 {offsets = [0, 16], sizes = [32, 8], strides = [1, 1]} : vector<32x96xf32> to vector<32x8xf32>
    %267 = vector.shape_cast %266 : vector<32x8xf32> to vector<2x16x8xf32>
    %268 = vector.extract_strided_slice %214 {offsets = [0, 48], sizes = [32, 8], strides = [1, 1]} : vector<32x96xf32> to vector<32x8xf32>
    %269 = vector.shape_cast %268 : vector<32x8xf32> to vector<2x16x8xf32>
    %270 = vector.extract_strided_slice %214 {offsets = [0, 80], sizes = [32, 8], strides = [1, 1]} : vector<32x96xf32> to vector<32x8xf32>
    %271 = vector.shape_cast %270 : vector<32x8xf32> to vector<2x16x8xf32>
    "tpu.trace_start"() <{level = 10 : i32, message = "bqd,bkd->bqk"}> : () -> ()
    %cst_119 = arith.constant dense<0.000000e+00> : vector<2x16x16xf32>
    %272 = tpu.matmul %267, %269, %cst_119 {dimension_numbers = #tpu.dot_dimension_numbers<[2], [2], [1], [1], [0, 0, 0, 1, 1, 1], [0], [0]>} : vector<2x16x8xf32>, vector<2x16x8xf32>, vector<2x16x16xf32> -> vector<2x16x16xf32>
    %cst_120 = arith.constant -1.000000e+30 : f32
    "tpu.trace_stop"() : () -> ()
    %273 = vector.broadcast %cst_120 : f32 to vector<2x16x16xf32>
    %274 = arith.select %14, %272, %273 : vector<2x16x16xi1>, vector<2x16x16xf32>
    %cst_121 = arith.constant dense<0xFF800000> : vector<2x16xf32>
    %275 = vector.multi_reduction <maximumf>, %274, %cst_121 [2] : vector<2x16x16xf32> to vector<2x16xf32>
    %276 = vector.shape_cast %275 : vector<2x16xf32> to vector<2x16x1xf32>
    %277 = vector.broadcast %276 : vector<2x16x1xf32> to vector<2x16x16xf32>
    %278 = arith.subf %274, %277 : vector<2x16x16xf32>
    %279 = math.exp %278 : vector<2x16x16xf32>
    %cst_122 = arith.constant dense<0.000000e+00> : vector<2x16xf32>
    %280 = vector.multi_reduction <add>, %279, %cst_122 [2] : vector<2x16x16xf32> to vector<2x16xf32>
    %281 = vector.shape_cast %280 : vector<2x16xf32> to vector<2x16x1xf32>
    %282 = tpu.reciprocal %281 {approx = true} : vector<2x16x1xf32> -> vector<2x16x1xf32>
    %283 = vector.broadcast %282 : vector<2x16x1xf32> to vector<2x16x16xf32>
    %284 = arith.mulf %279, %283 : vector<2x16x16xf32>
    "tpu.trace_start"() <{level = 10 : i32, message = "bqk,bkd->bqd"}> : () -> ()
    %cst_123 = arith.constant dense<0.000000e+00> : vector<2x16x8xf32>
    %285 = tpu.matmul %284, %271, %cst_123 {dimension_numbers = #tpu.dot_dimension_numbers<[2], [1], [1], [2], [0, 0, 0, 1, 1, 2], [0], [0]>} : vector<2x16x16xf32>, vector<2x16x8xf32>, vector<2x16x8xf32> -> vector<2x16x8xf32>
    "tpu.trace_stop"() : () -> ()
    %286 = vector.shape_cast %285 : vector<2x16x8xf32> to vector<32x8xf32>
    %c6 = arith.constant 6 : index
    %c0_124 = arith.constant 0 : index
    %c0_125 = arith.constant 0 : index
    %287 = vector.load %arg5[%c6, %c0_124, %c0_125] : memref<8x8x32xf32, #tpu.memory_space<vmem>>, vector<1x8x32xf32>
    %288 = vector.shape_cast %287 : vector<1x8x32xf32> to vector<8x32xf32>
    %cst_126 = arith.constant dense<0.000000e+00> : vector<32x32xf32>
    %289 = tpu.matmul %286, %288, %cst_126 {dimension_numbers = #tpu.dot_dimension_numbers<[1], [0], [0], [1], [0, 0, 1, 1], [], []>} : vector<32x8xf32>, vector<8x32xf32>, vector<32x32xf32> -> vector<32x32xf32>
    %290 = arith.addf %265, %289 : vector<32x32xf32>
    %291 = vector.extract_strided_slice %214 {offsets = [0, 24], sizes = [32, 8], strides = [1, 1]} : vector<32x96xf32> to vector<32x8xf32>
    %292 = vector.shape_cast %291 : vector<32x8xf32> to vector<2x16x8xf32>
    %293 = vector.extract_strided_slice %214 {offsets = [0, 56], sizes = [32, 8], strides = [1, 1]} : vector<32x96xf32> to vector<32x8xf32>
    %294 = vector.shape_cast %293 : vector<32x8xf32> to vector<2x16x8xf32>
    %295 = vector.extract_strided_slice %214 {offsets = [0, 88], sizes = [32, 8], strides = [1, 1]} : vector<32x96xf32> to vector<32x8xf32>
    %296 = vector.shape_cast %295 : vector<32x8xf32> to vector<2x16x8xf32>
    "tpu.trace_start"() <{level = 10 : i32, message = "bqd,bkd->bqk"}> : () -> ()
    %cst_127 = arith.constant dense<0.000000e+00> : vector<2x16x16xf32>
    %297 = tpu.matmul %292, %294, %cst_127 {dimension_numbers = #tpu.dot_dimension_numbers<[2], [2], [1], [1], [0, 0, 0, 1, 1, 1], [0], [0]>} : vector<2x16x8xf32>, vector<2x16x8xf32>, vector<2x16x16xf32> -> vector<2x16x16xf32>
    %cst_128 = arith.constant -1.000000e+30 : f32
    "tpu.trace_stop"() : () -> ()
    %298 = vector.broadcast %cst_128 : f32 to vector<2x16x16xf32>
    %299 = arith.select %14, %297, %298 : vector<2x16x16xi1>, vector<2x16x16xf32>
    %cst_129 = arith.constant dense<0xFF800000> : vector<2x16xf32>
    %300 = vector.multi_reduction <maximumf>, %299, %cst_129 [2] : vector<2x16x16xf32> to vector<2x16xf32>
    %301 = vector.shape_cast %300 : vector<2x16xf32> to vector<2x16x1xf32>
    %302 = vector.broadcast %301 : vector<2x16x1xf32> to vector<2x16x16xf32>
    %303 = arith.subf %299, %302 : vector<2x16x16xf32>
    %304 = math.exp %303 : vector<2x16x16xf32>
    %cst_130 = arith.constant dense<0.000000e+00> : vector<2x16xf32>
    %305 = vector.multi_reduction <add>, %304, %cst_130 [2] : vector<2x16x16xf32> to vector<2x16xf32>
    %306 = vector.shape_cast %305 : vector<2x16xf32> to vector<2x16x1xf32>
    %307 = tpu.reciprocal %306 {approx = true} : vector<2x16x1xf32> -> vector<2x16x1xf32>
    %308 = vector.broadcast %307 : vector<2x16x1xf32> to vector<2x16x16xf32>
    %309 = arith.mulf %304, %308 : vector<2x16x16xf32>
    "tpu.trace_start"() <{level = 10 : i32, message = "bqk,bkd->bqd"}> : () -> ()
    %cst_131 = arith.constant dense<0.000000e+00> : vector<2x16x8xf32>
    %310 = tpu.matmul %309, %296, %cst_131 {dimension_numbers = #tpu.dot_dimension_numbers<[2], [1], [1], [2], [0, 0, 0, 1, 1, 2], [0], [0]>} : vector<2x16x16xf32>, vector<2x16x8xf32>, vector<2x16x8xf32> -> vector<2x16x8xf32>
    "tpu.trace_stop"() : () -> ()
    %311 = vector.shape_cast %310 : vector<2x16x8xf32> to vector<32x8xf32>
    %c7 = arith.constant 7 : index
    %c0_132 = arith.constant 0 : index
    %c0_133 = arith.constant 0 : index
    %312 = vector.load %arg5[%c7, %c0_132, %c0_133] : memref<8x8x32xf32, #tpu.memory_space<vmem>>, vector<1x8x32xf32>
    %313 = vector.shape_cast %312 : vector<1x8x32xf32> to vector<8x32xf32>
    %cst_134 = arith.constant dense<0.000000e+00> : vector<32x32xf32>
    %314 = tpu.matmul %311, %313, %cst_134 {dimension_numbers = #tpu.dot_dimension_numbers<[1], [0], [0], [1], [0, 0, 1, 1], [], []>} : vector<32x8xf32>, vector<8x32xf32>, vector<32x32xf32> -> vector<32x32xf32>
    %315 = arith.addf %290, %314 : vector<32x32xf32>
    %c6_135 = arith.constant 6 : index
    %c0_136 = arith.constant 0 : index
    %c0_137 = arith.constant 0 : index
    %316 = vector.load %arg6[%c6_135, %c0_136, %c0_137] : memref<12x1x32xf32, #tpu.memory_space<vmem>>, vector<1x1x32xf32>
    %317 = vector.shape_cast %316 : vector<1x1x32xf32> to vector<1x32xf32>
    %318 = vector.broadcast %317 : vector<1x32xf32> to vector<32x32xf32>
    %319 = arith.addf %315, %318 : vector<32x32xf32>
    %320 = arith.addf %207, %319 : vector<32x32xf32>
    %c7_138 = arith.constant 7 : index
    %c0_139 = arith.constant 0 : index
    %c0_140 = arith.constant 0 : index
    %321 = vector.load %arg6[%c7_138, %c0_139, %c0_140] : memref<12x1x32xf32, #tpu.memory_space<vmem>>, vector<1x1x32xf32>
    %322 = vector.shape_cast %321 : vector<1x1x32xf32> to vector<1x32xf32>
    %c8 = arith.constant 8 : index
    %c0_141 = arith.constant 0 : index
    %c0_142 = arith.constant 0 : index
    %323 = vector.load %arg6[%c8, %c0_141, %c0_142] : memref<12x1x32xf32, #tpu.memory_space<vmem>>, vector<1x1x32xf32>
    %324 = vector.shape_cast %323 : vector<1x1x32xf32> to vector<1x32xf32>
    %cst_143 = arith.constant dense<0.000000e+00> : vector<32xf32>
    %325 = vector.multi_reduction <add>, %320, %cst_143 [1] : vector<32x32xf32> to vector<32xf32>
    %326 = vector.shape_cast %325 : vector<32xf32> to vector<32x1xf32>
    %cst_144 = arith.constant 3.200000e+01 : f32
    %327 = vector.broadcast %cst_144 : f32 to vector<32x1xf32>
    %328 = arith.divf %326, %327 : vector<32x1xf32>
    %329 = vector.broadcast %328 : vector<32x1xf32> to vector<32x32xf32>
    %330 = arith.subf %320, %329 : vector<32x32xf32>
    %331 = arith.mulf %330, %330 : vector<32x32xf32>
    %cst_145 = arith.constant dense<0.000000e+00> : vector<32xf32>
    %332 = vector.multi_reduction <add>, %331, %cst_145 [1] : vector<32x32xf32> to vector<32xf32>
    %333 = vector.shape_cast %332 : vector<32xf32> to vector<32x1xf32>
    %cst_146 = arith.constant 3.200000e+01 : f32
    %334 = vector.broadcast %cst_146 : f32 to vector<32x1xf32>
    %335 = arith.divf %333, %334 : vector<32x1xf32>
    %336 = vector.broadcast %328 : vector<32x1xf32> to vector<32x32xf32>
    %337 = arith.subf %320, %336 : vector<32x32xf32>
    %cst_147 = arith.constant 9.99999974E-6 : f32
    %338 = vector.broadcast %cst_147 : f32 to vector<32x1xf32>
    %339 = arith.addf %335, %338 : vector<32x1xf32>
    %340 = math.rsqrt %339 : vector<32x1xf32>
    %341 = vector.broadcast %340 : vector<32x1xf32> to vector<32x32xf32>
    %342 = arith.mulf %337, %341 : vector<32x32xf32>
    %343 = vector.broadcast %322 : vector<1x32xf32> to vector<32x32xf32>
    %344 = arith.mulf %342, %343 : vector<32x32xf32>
    %345 = vector.broadcast %324 : vector<1x32xf32> to vector<32x32xf32>
    %346 = arith.addf %344, %345 : vector<32x32xf32>
    %c1_148 = arith.constant 1 : index
    %c0_149 = arith.constant 0 : index
    %c0_150 = arith.constant 0 : index
    %347 = vector.load %arg7[%c1_148, %c0_149, %c0_150] : memref<2x32x64xf32, #tpu.memory_space<vmem>>, vector<1x32x64xf32>
    %348 = vector.shape_cast %347 : vector<1x32x64xf32> to vector<32x64xf32>
    %cst_151 = arith.constant dense<0.000000e+00> : vector<32x64xf32>
    %349 = tpu.matmul %346, %348, %cst_151 {dimension_numbers = #tpu.dot_dimension_numbers<[1], [0], [0], [1], [0, 0, 1, 1], [], []>} : vector<32x32xf32>, vector<32x64xf32>, vector<32x64xf32> -> vector<32x64xf32>
    %c1_152 = arith.constant 1 : index
    %c0_153 = arith.constant 0 : index
    %c0_154 = arith.constant 0 : index
    %350 = vector.load %arg8[%c1_152, %c0_153, %c0_154] : memref<2x1x64xf32, #tpu.memory_space<vmem>>, vector<1x1x64xf32>
    %351 = vector.shape_cast %350 : vector<1x1x64xf32> to vector<1x64xf32>
    %352 = vector.broadcast %351 : vector<1x64xf32> to vector<32x64xf32>
    %353 = arith.addf %349, %352 : vector<32x64xf32>
    %cst_155 = arith.constant 5.000000e-01 : f32
    %354 = vector.broadcast %cst_155 : f32 to vector<32x64xf32>
    %355 = arith.mulf %354, %353 : vector<32x64xf32>
    %cst_156 = arith.constant 4.471500e-02 : f32
    %356 = vector.broadcast %cst_156 : f32 to vector<32x64xf32>
    %357 = arith.mulf %356, %353 : vector<32x64xf32>
    %358 = arith.mulf %357, %353 : vector<32x64xf32>
    %359 = arith.mulf %358, %353 : vector<32x64xf32>
    %360 = arith.addf %353, %359 : vector<32x64xf32>
    %cst_157 = arith.constant 0.797884583 : f32
    %361 = vector.broadcast %cst_157 : f32 to vector<32x64xf32>
    %362 = arith.mulf %361, %360 : vector<32x64xf32>
    %363 = math.tanh %362 : vector<32x64xf32>
    %cst_158 = arith.constant 1.000000e+00 : f32
    %364 = vector.broadcast %cst_158 : f32 to vector<32x64xf32>
    %365 = arith.addf %364, %363 : vector<32x64xf32>
    %366 = arith.mulf %355, %365 : vector<32x64xf32>
    %c1_159 = arith.constant 1 : index
    %c0_160 = arith.constant 0 : index
    %c0_161 = arith.constant 0 : index
    %367 = vector.load %arg9[%c1_159, %c0_160, %c0_161] : memref<2x64x32xf32, #tpu.memory_space<vmem>>, vector<1x64x32xf32>
    %368 = vector.shape_cast %367 : vector<1x64x32xf32> to vector<64x32xf32>
    %cst_162 = arith.constant dense<0.000000e+00> : vector<32x32xf32>
    %369 = tpu.matmul %366, %368, %cst_162 {dimension_numbers = #tpu.dot_dimension_numbers<[1], [0], [0], [1], [0, 0, 1, 1], [], []>} : vector<32x64xf32>, vector<64x32xf32>, vector<32x32xf32> -> vector<32x32xf32>
    %c9 = arith.constant 9 : index
    %c0_163 = arith.constant 0 : index
    %c0_164 = arith.constant 0 : index
    %370 = vector.load %arg6[%c9, %c0_163, %c0_164] : memref<12x1x32xf32, #tpu.memory_space<vmem>>, vector<1x1x32xf32>
    %371 = vector.shape_cast %370 : vector<1x1x32xf32> to vector<1x32xf32>
    %372 = vector.broadcast %371 : vector<1x32xf32> to vector<32x32xf32>
    %373 = arith.addf %369, %372 : vector<32x32xf32>
    %374 = arith.addf %346, %373 : vector<32x32xf32>
    %c10 = arith.constant 10 : index
    %c0_165 = arith.constant 0 : index
    %c0_166 = arith.constant 0 : index
    %375 = vector.load %arg6[%c10, %c0_165, %c0_166] : memref<12x1x32xf32, #tpu.memory_space<vmem>>, vector<1x1x32xf32>
    %376 = vector.shape_cast %375 : vector<1x1x32xf32> to vector<1x32xf32>
    %c11 = arith.constant 11 : index
    %c0_167 = arith.constant 0 : index
    %c0_168 = arith.constant 0 : index
    %377 = vector.load %arg6[%c11, %c0_167, %c0_168] : memref<12x1x32xf32, #tpu.memory_space<vmem>>, vector<1x1x32xf32>
    %378 = vector.shape_cast %377 : vector<1x1x32xf32> to vector<1x32xf32>
    %cst_169 = arith.constant dense<0.000000e+00> : vector<32xf32>
    %379 = vector.multi_reduction <add>, %374, %cst_169 [1] : vector<32x32xf32> to vector<32xf32>
    %380 = vector.shape_cast %379 : vector<32xf32> to vector<32x1xf32>
    %cst_170 = arith.constant 3.200000e+01 : f32
    %381 = vector.broadcast %cst_170 : f32 to vector<32x1xf32>
    %382 = arith.divf %380, %381 : vector<32x1xf32>
    %383 = vector.broadcast %382 : vector<32x1xf32> to vector<32x32xf32>
    %384 = arith.subf %374, %383 : vector<32x32xf32>
    %385 = arith.mulf %384, %384 : vector<32x32xf32>
    %cst_171 = arith.constant dense<0.000000e+00> : vector<32xf32>
    %386 = vector.multi_reduction <add>, %385, %cst_171 [1] : vector<32x32xf32> to vector<32xf32>
    %387 = vector.shape_cast %386 : vector<32xf32> to vector<32x1xf32>
    %cst_172 = arith.constant 3.200000e+01 : f32
    %388 = vector.broadcast %cst_172 : f32 to vector<32x1xf32>
    %389 = arith.divf %387, %388 : vector<32x1xf32>
    %390 = vector.broadcast %382 : vector<32x1xf32> to vector<32x32xf32>
    %391 = arith.subf %374, %390 : vector<32x32xf32>
    %cst_173 = arith.constant 9.99999974E-6 : f32
    %392 = vector.broadcast %cst_173 : f32 to vector<32x1xf32>
    %393 = arith.addf %389, %392 : vector<32x1xf32>
    %394 = math.rsqrt %393 : vector<32x1xf32>
    %395 = vector.broadcast %394 : vector<32x1xf32> to vector<32x32xf32>
    %396 = arith.mulf %391, %395 : vector<32x32xf32>
    %397 = vector.broadcast %376 : vector<1x32xf32> to vector<32x32xf32>
    %398 = arith.mulf %396, %397 : vector<32x32xf32>
    %399 = vector.broadcast %378 : vector<1x32xf32> to vector<32x32xf32>
    %400 = arith.addf %398, %399 : vector<32x32xf32>
    %401 = vector.extract_strided_slice %400 {offsets = [0, 0], sizes = [8, 32], strides = [1, 1]} : vector<32x32xf32> to vector<8x32xf32>
    %402 = vector.extract_strided_slice %400 {offsets = [16, 0], sizes = [8, 32], strides = [1, 1]} : vector<32x32xf32> to vector<8x32xf32>
    %403 = tpu.concatenate %401, %402 in 0 : vector<8x32xf32>, vector<8x32xf32> -> vector<16x32xf32>
    %c0_174 = arith.constant 0 : index
    %c0_175 = arith.constant 0 : index
    %404 = vector.load %arg15[%c0_174, %c0_175] : memref<1x128xf32, #tpu.memory_space<vmem>>, vector<1x128xf32>
    %405 = vector.shape_cast %404 : vector<1x128xf32> to vector<1x128xf32>
    %406 = vector.broadcast %405 : vector<1x128xf32> to vector<16x128xf32>
    %c0_176 = arith.constant 0 : index
    %c0_177 = arith.constant 0 : index
    %c0_178 = arith.constant 0 : index
    %407 = vector.load %arg10[%c0_176, %c0_177, %c0_178] : memref<2x32x16xf32, #tpu.memory_space<vmem>>, vector<1x32x16xf32>
    %408 = vector.shape_cast %407 : vector<1x32x16xf32> to vector<32x16xf32>
    %cst_179 = arith.constant dense<0.000000e+00> : vector<16x16xf32>
    %409 = tpu.matmul %403, %408, %cst_179 {dimension_numbers = #tpu.dot_dimension_numbers<[1], [0], [0], [1], [0, 0, 1, 1], [], []>} : vector<16x32xf32>, vector<32x16xf32>, vector<16x16xf32> -> vector<16x16xf32>
    %c0_180 = arith.constant 0 : index
    %c0_181 = arith.constant 0 : index
    %c0_182 = arith.constant 0 : index
    %410 = vector.load %arg11[%c0_180, %c0_181, %c0_182] : memref<2x1x16xf32, #tpu.memory_space<vmem>>, vector<1x1x16xf32>
    %411 = vector.shape_cast %410 : vector<1x1x16xf32> to vector<1x16xf32>
    %412 = vector.broadcast %411 : vector<1x16xf32> to vector<16x16xf32>
    %413 = arith.addf %409, %412 : vector<16x16xf32>
    %cst_183 = arith.constant 5.000000e-01 : f32
    %414 = vector.broadcast %cst_183 : f32 to vector<16x16xf32>
    %415 = arith.mulf %414, %413 : vector<16x16xf32>
    %cst_184 = arith.constant 4.471500e-02 : f32
    %416 = vector.broadcast %cst_184 : f32 to vector<16x16xf32>
    %417 = arith.mulf %416, %413 : vector<16x16xf32>
    %418 = arith.mulf %417, %413 : vector<16x16xf32>
    %419 = arith.mulf %418, %413 : vector<16x16xf32>
    %420 = arith.addf %413, %419 : vector<16x16xf32>
    %cst_185 = arith.constant 0.797884583 : f32
    %421 = vector.broadcast %cst_185 : f32 to vector<16x16xf32>
    %422 = arith.mulf %421, %420 : vector<16x16xf32>
    %423 = math.tanh %422 : vector<16x16xf32>
    %cst_186 = arith.constant 1.000000e+00 : f32
    %424 = vector.broadcast %cst_186 : f32 to vector<16x16xf32>
    %425 = arith.addf %424, %423 : vector<16x16xf32>
    %426 = arith.mulf %415, %425 : vector<16x16xf32>
    %c0_187 = arith.constant 0 : index
    %c0_188 = arith.constant 0 : index
    %c0_189 = arith.constant 0 : index
    %427 = vector.load %arg12[%c0_187, %c0_188, %c0_189] : memref<2x16x16xf32, #tpu.memory_space<vmem>>, vector<1x16x16xf32>
    %428 = vector.shape_cast %427 : vector<1x16x16xf32> to vector<16x16xf32>
    %cst_190 = arith.constant dense<0.000000e+00> : vector<16x16xf32>
    %429 = tpu.matmul %426, %428, %cst_190 {dimension_numbers = #tpu.dot_dimension_numbers<[1], [0], [0], [1], [0, 0, 1, 1], [], []>} : vector<16x16xf32>, vector<16x16xf32>, vector<16x16xf32> -> vector<16x16xf32>
    %c0_191 = arith.constant 0 : index
    %c0_192 = arith.constant 0 : index
    %c0_193 = arith.constant 0 : index
    %430 = vector.load %arg13[%c0_191, %c0_192, %c0_193] : memref<2x1x16xf32, #tpu.memory_space<vmem>>, vector<1x1x16xf32>
    %431 = vector.shape_cast %430 : vector<1x1x16xf32> to vector<1x16xf32>
    %432 = vector.broadcast %431 : vector<1x16xf32> to vector<16x16xf32>
    %433 = arith.addf %429, %432 : vector<16x16xf32>
    %cst_194 = arith.constant 5.000000e-01 : f32
    %434 = vector.broadcast %cst_194 : f32 to vector<16x16xf32>
    %435 = arith.mulf %434, %433 : vector<16x16xf32>
    %cst_195 = arith.constant 4.471500e-02 : f32
    %436 = vector.broadcast %cst_195 : f32 to vector<16x16xf32>
    %437 = arith.mulf %436, %433 : vector<16x16xf32>
    %438 = arith.mulf %437, %433 : vector<16x16xf32>
    %439 = arith.mulf %438, %433 : vector<16x16xf32>
    %440 = arith.addf %433, %439 : vector<16x16xf32>
    %cst_196 = arith.constant 0.797884583 : f32
    %441 = vector.broadcast %cst_196 : f32 to vector<16x16xf32>
    %442 = arith.mulf %441, %440 : vector<16x16xf32>
    %443 = math.tanh %442 : vector<16x16xf32>
    %cst_197 = arith.constant 1.000000e+00 : f32
    %444 = vector.broadcast %cst_197 : f32 to vector<16x16xf32>
    %445 = arith.addf %444, %443 : vector<16x16xf32>
    %446 = arith.mulf %435, %445 : vector<16x16xf32>
    %c0_198 = arith.constant 0 : index
    %c0_199 = arith.constant 0 : index
    %c0_200 = arith.constant 0 : index
    %447 = vector.load %arg14[%c0_198, %c0_199, %c0_200] : memref<2x16x128xf32, #tpu.memory_space<vmem>>, vector<1x16x128xf32>
    %448 = vector.shape_cast %447 : vector<1x16x128xf32> to vector<16x128xf32>
    %cst_201 = arith.constant dense<0.000000e+00> : vector<16x128xf32>
    %449 = tpu.matmul %446, %448, %cst_201 {dimension_numbers = #tpu.dot_dimension_numbers<[1], [0], [0], [1], [0, 0, 1, 1], [], []>} : vector<16x16xf32>, vector<16x128xf32>, vector<16x128xf32> -> vector<16x128xf32>
    %450 = arith.addf %406, %449 : vector<16x128xf32>
    %c1_202 = arith.constant 1 : index
    %c0_203 = arith.constant 0 : index
    %c0_204 = arith.constant 0 : index
    %451 = vector.load %arg10[%c1_202, %c0_203, %c0_204] : memref<2x32x16xf32, #tpu.memory_space<vmem>>, vector<1x32x16xf32>
    %452 = vector.shape_cast %451 : vector<1x32x16xf32> to vector<32x16xf32>
    %cst_205 = arith.constant dense<0.000000e+00> : vector<16x16xf32>
    %453 = tpu.matmul %403, %452, %cst_205 {dimension_numbers = #tpu.dot_dimension_numbers<[1], [0], [0], [1], [0, 0, 1, 1], [], []>} : vector<16x32xf32>, vector<32x16xf32>, vector<16x16xf32> -> vector<16x16xf32>
    %c1_206 = arith.constant 1 : index
    %c0_207 = arith.constant 0 : index
    %c0_208 = arith.constant 0 : index
    %454 = vector.load %arg11[%c1_206, %c0_207, %c0_208] : memref<2x1x16xf32, #tpu.memory_space<vmem>>, vector<1x1x16xf32>
    %455 = vector.shape_cast %454 : vector<1x1x16xf32> to vector<1x16xf32>
    %456 = vector.broadcast %455 : vector<1x16xf32> to vector<16x16xf32>
    %457 = arith.addf %453, %456 : vector<16x16xf32>
    %cst_209 = arith.constant 5.000000e-01 : f32
    %458 = vector.broadcast %cst_209 : f32 to vector<16x16xf32>
    %459 = arith.mulf %458, %457 : vector<16x16xf32>
    %cst_210 = arith.constant 4.471500e-02 : f32
    %460 = vector.broadcast %cst_210 : f32 to vector<16x16xf32>
    %461 = arith.mulf %460, %457 : vector<16x16xf32>
    %462 = arith.mulf %461, %457 : vector<16x16xf32>
    %463 = arith.mulf %462, %457 : vector<16x16xf32>
    %464 = arith.addf %457, %463 : vector<16x16xf32>
    %cst_211 = arith.constant 0.797884583 : f32
    %465 = vector.broadcast %cst_211 : f32 to vector<16x16xf32>
    %466 = arith.mulf %465, %464 : vector<16x16xf32>
    %467 = math.tanh %466 : vector<16x16xf32>
    %cst_212 = arith.constant 1.000000e+00 : f32
    %468 = vector.broadcast %cst_212 : f32 to vector<16x16xf32>
    %469 = arith.addf %468, %467 : vector<16x16xf32>
    %470 = arith.mulf %459, %469 : vector<16x16xf32>
    %c1_213 = arith.constant 1 : index
    %c0_214 = arith.constant 0 : index
    %c0_215 = arith.constant 0 : index
    %471 = vector.load %arg12[%c1_213, %c0_214, %c0_215] : memref<2x16x16xf32, #tpu.memory_space<vmem>>, vector<1x16x16xf32>
    %472 = vector.shape_cast %471 : vector<1x16x16xf32> to vector<16x16xf32>
    %cst_216 = arith.constant dense<0.000000e+00> : vector<16x16xf32>
    %473 = tpu.matmul %470, %472, %cst_216 {dimension_numbers = #tpu.dot_dimension_numbers<[1], [0], [0], [1], [0, 0, 1, 1], [], []>} : vector<16x16xf32>, vector<16x16xf32>, vector<16x16xf32> -> vector<16x16xf32>
    %c1_217 = arith.constant 1 : index
    %c0_218 = arith.constant 0 : index
    %c0_219 = arith.constant 0 : index
    %474 = vector.load %arg13[%c1_217, %c0_218, %c0_219] : memref<2x1x16xf32, #tpu.memory_space<vmem>>, vector<1x1x16xf32>
    %475 = vector.shape_cast %474 : vector<1x1x16xf32> to vector<1x16xf32>
    %476 = vector.broadcast %475 : vector<1x16xf32> to vector<16x16xf32>
    %477 = arith.addf %473, %476 : vector<16x16xf32>
    %cst_220 = arith.constant 5.000000e-01 : f32
    %478 = vector.broadcast %cst_220 : f32 to vector<16x16xf32>
    %479 = arith.mulf %478, %477 : vector<16x16xf32>
    %cst_221 = arith.constant 4.471500e-02 : f32
    %480 = vector.broadcast %cst_221 : f32 to vector<16x16xf32>
    %481 = arith.mulf %480, %477 : vector<16x16xf32>
    %482 = arith.mulf %481, %477 : vector<16x16xf32>
    %483 = arith.mulf %482, %477 : vector<16x16xf32>
    %484 = arith.addf %477, %483 : vector<16x16xf32>
    %cst_222 = arith.constant 0.797884583 : f32
    %485 = vector.broadcast %cst_222 : f32 to vector<16x16xf32>
    %486 = arith.mulf %485, %484 : vector<16x16xf32>
    %487 = math.tanh %486 : vector<16x16xf32>
    %cst_223 = arith.constant 1.000000e+00 : f32
    %488 = vector.broadcast %cst_223 : f32 to vector<16x16xf32>
    %489 = arith.addf %488, %487 : vector<16x16xf32>
    %490 = arith.mulf %479, %489 : vector<16x16xf32>
    %c1_224 = arith.constant 1 : index
    %c0_225 = arith.constant 0 : index
    %c0_226 = arith.constant 0 : index
    %491 = vector.load %arg14[%c1_224, %c0_225, %c0_226] : memref<2x16x128xf32, #tpu.memory_space<vmem>>, vector<1x16x128xf32>
    %492 = vector.shape_cast %491 : vector<1x16x128xf32> to vector<16x128xf32>
    %cst_227 = arith.constant dense<0.000000e+00> : vector<16x128xf32>
    %493 = tpu.matmul %490, %492, %cst_227 {dimension_numbers = #tpu.dot_dimension_numbers<[1], [0], [0], [1], [0, 0, 1, 1], [], []>} : vector<16x16xf32>, vector<16x128xf32>, vector<16x128xf32> -> vector<16x128xf32>
    %494 = arith.addf %450, %493 : vector<16x128xf32>
    %495 = vector.shape_cast %494 : vector<16x128xf32> to vector<2x8x128xf32>
    %c0_228 = arith.constant 0 : index
    %c0_229 = arith.constant 0 : index
    %c0_230 = arith.constant 0 : index
    %496 = vector.load %arg16[%c0_228, %c0_229, %c0_230] : memref<2x8x128xf32, #tpu.memory_space<vmem>>, vector<2x8x128xf32>
    tpu.vector_store %arg16[%c0_228, %c0_229, %c0_230], %495 {strides = array<i32>} : memref<2x8x128xf32, #tpu.memory_space<vmem>>, vector<2x8x128xf32>,
    return
  }
}

</mosaic_0001>

<bundles_post_ra>
// kernel: tpu_custom_call.1
= control target key start
LH: loop header
LB: loop body
LE: loop exit
PB: predicated region body
PF: predicated region fallthrough
CT: control target
= control target key end

     0   :  { %s8533_s0 = inlined_call_operand.hbm [shape: f32[8,32], index: 0, kind: input, shape index: {}]   ;;  %s8534_s1 = inlined_call_operand.hbm [shape: f32[8,32], index: 1, kind: input, shape index: {}]   ;;  %s8535_s2 = inlined_call_operand.hbm [shape: f32[2,4,32], index: 2, kind: input, shape index: {}]   ;;  %s8536_s3 = inlined_call_operand.vmem [shape: f32[2,32,96], index: 3, kind: input, shape index: {}]   ;;  %s8537_s4 = inlined_call_operand.vmem [shape: f32[2,1,96], index: 4, kind: input, shape index: {}]   ;;  %s8538_s5 = inlined_call_operand.vmem [shape: f32[8,8,32], index: 5, kind: input, shape index: {}]   ;;  %s8539_s6 = inlined_call_operand.hbm [shape: f32[12,1,32], index: 6, kind: input, shape index: {}]   ;;  %s8540_s7 = inlined_call_operand.vmem [shape: f32[2,32,64], index: 7, kind: input, shape index: {}]   ;;  %s8541_s8 = inlined_call_operand.vmem [shape: f32[2,1,64], index: 8, kind: input, shape index: {}]   ;;  %s8542_s9 = inlined_call_operand.vmem [shape: f32[2,64,32], index: 9, kind: input, shape index: {}]   ;;  %s8543_s10 = inlined_call_operand.vmem [shape: f32[2,32,16], index: 10, kind: input, shape index: {}]   ;;  %s8544_s11 = inlined_call_operand.vmem [shape: f32[2,1,16], index: 11, kind: input, shape index: {}]   ;;  %s8545_s12 = inlined_call_operand.vmem [shape: f32[2,16,16], index: 12, kind: input, shape index: {}]   ;;  %s8546_s13 = inlined_call_operand.vmem [shape: f32[2,1,16], index: 13, kind: input, shape index: {}]   ;;  %s8547_s14 = inlined_call_operand.hbm [shape: f32[2,16,128], index: 14, kind: input, shape index: {}]   ;;  %s8548_s15 = inlined_call_operand.vmem [shape: f32[1,128], index: 15, kind: input, shape index: {}]   ;;  %s8549_s16 = inlined_call_operand.hbm [shape: f32[2,8,128], index: 16, kind: output, shape index: {}]  }
   0x1   :  { %8553 = sst [smem:[#allocation16_spill]] %s8533_s0 }
   0x2   :  { %8554 = sst [smem:[#allocation17_spill]] %s8549_s16 }
   0x3   :  { %21 = vsyncpa [#allocation3], 0 }
   0x4   :  { %22 = vsyncpa [#allocation6], 0 }
   0x5   :  { %23 = vsyncpa [#allocation9], 0 }
   0x6   :  { %24 = vsyncpa [#allocation4], 0  ;;  %s7545_s21 = smov [#allocation5]   ;;  %s7546_s23 = smov [#allocation8]  }
   0x7   :  { %s41_s22 = sshll.u32 %s7545_s21, 4  ;;  %s68_s24 = sshll.u32 %s7546_s23, 4  ;;  %s42_s22 = int_to_ptr.vmem [resolvable:$true] %s41_s22  ;;  %s7652_s24 = int_to_ptr.vmem [resolvable:$true] %s68_s24 }
   0x8   :  { %s7405_s27 = scalar_lea.hbm %s8534_s1, 128 }
   0x9   :  { %p7406_p0 = scmp.ne.s32.totalorder %s8534_s1, %s7405_s27  ;;  %p7409_p1 = scmp.lt.u32.totalorder %s7405_s27, %s8534_s1 }
   0xb   :  { %p7411_p2 = pnand %p7409_p1, %p7406_p0 }
   0xd   :  { %7414 = shalt.err (!%p7411_p2)
}
   0xe   :  { %s7415_s17 = scalar_lea.vmem %s42_s22, 128  ;;  %p7420_p4 = scmp.lt.s32.totalorder %s42_s22, %s42_s22 }
   0xf   :  { %p7416_p3 = scmp.ne.s32.totalorder %s42_s22, %s7415_s17  ;;  %p7421_p5 = scmp.lt.s32.totalorder %s7415_s17, %s7415_s17 }
  0x11   :  { %p7422_p6 = por %p7421_p5, %p7420_p4 }
  0x13   :  { %p7423_p7 = pnand %p7422_p6, %p7416_p3 }
  0x15   :  { %7426 = shalt.err (!%p7423_p7)
}
  0x16   :  { %44 = dma.hbm_to_vmem [thread:$0]  %s8534_s1, 128, %s42_s22, [#allocation6]  }
  0x17   :  { %s7427_s23 = scalar_lea.hbm %s8539_s6, 192 }
  0x18   :  { %p7428_p8 = scmp.ne.s32.totalorder %s8539_s6, %s7427_s23  ;;  %p7431_p9 = scmp.lt.u32.totalorder %s7427_s23, %s8539_s6 }
  0x1a   :  { %p7433_p10 = pnand %p7431_p9, %p7428_p8 }
  0x1c   :  { %7436 = shalt.err (!%p7433_p10)
}
  0x1d   :  { %s7437_s29 = scalar_lea.vmem %s7652_s24, 192  ;;  %p7442_p12 = scmp.lt.s32.totalorder %s7652_s24, %s7652_s24 }
  0x1e   :  { %p7438_p11 = scmp.ne.s32.totalorder %s7652_s24, %s7437_s29  ;;  %p7443_p13 = scmp.lt.s32.totalorder %s7437_s29, %s7437_s29 }
  0x20   :  { %p7444_p0 = por %p7443_p13, %p7442_p12 }
  0x22   :  { %p7445_p1 = pnand %p7444_p0, %p7438_p11 }
  0x24   :  { %7448 = shalt.err (!%p7445_p1)
}
  0x25   :  { %s7547_s1 = smov 16   ;;  %s7548_s22 = smov 1  }
  0x26   :  { %74 = dma.hbm_to_vmem [thread:$0]  %s8539_s6, 192, %s7652_s24, [#allocation9], %s7547_s1, %s7547_s1, %s7548_s22  }
  0x27   :  { %s7549_s17 = smov [#allocation2]   ;;  %s7550_s19 = smov [#allocation7]  }
  0x28   :  { %s31_s18 = sshll.u32 %s7549_s17, 4  ;;  %s50_s20 = sshll.u32 %s7550_s19, 4  ;;  %s32_s18 = int_to_ptr.vmem [resolvable:$true] %s31_s18  ;;  %s7683_s20 = int_to_ptr.vmem [resolvable:$true] %s50_s20 }
  0x29   :  { %s8555_s25 = sld [smem:[#allocation16_spill]] }
  0x2f   :  { %s7449_s26 = scalar_lea.hbm %s8555_s25, 128 }
  0x30   :  { %p7450_p2 = scmp.ne.s32.totalorder %s8555_s25, %s7449_s26  ;;  %p7453_p3 = scmp.lt.u32.totalorder %s7449_s26, %s8555_s25 }
  0x32   :  { %p7455_p4 = pnand %p7453_p3, %p7450_p2 }
  0x34   :  { %7458 = shalt.err (!%p7455_p4)
}
  0x35   :  { %s7459_s6 = scalar_lea.vmem %s32_s18, 128  ;;  %p7464_p6 = scmp.lt.s32.totalorder %s32_s18, %s32_s18 }
  0x36   :  { %p7460_p5 = scmp.ne.s32.totalorder %s32_s18, %s7459_s6  ;;  %p7465_p7 = scmp.lt.s32.totalorder %s7459_s6, %s7459_s6 }
  0x38   :  { %p7466_p8 = por %p7465_p7, %p7464_p6 }
  0x3a   :  { %p7467_p9 = pnand %p7466_p8, %p7460_p5 }
  0x3c   :  { %7470 = shalt.err (!%p7467_p9)
}
  0x3d   :  { %34 = dma.hbm_to_vmem [thread:$0]  %s8555_s25, 128, %s32_s18, [#allocation3]  }
  0x3e   :  { %s7471_s0 = scalar_lea.hbm %s8535_s2, 128 }
  0x3f   :  { %p7472_p10 = scmp.ne.s32.totalorder %s8535_s2, %s7471_s0  ;;  %p7475_p11 = scmp.lt.u32.totalorder %s7471_s0, %s8535_s2 }
  0x41   :  { %p7477_p12 = pnand %p7475_p11, %p7472_p10 }
  0x43   :  { %7480 = shalt.err (!%p7477_p12)
}
  0x44   :  { %s7481_s23 = scalar_lea.vmem %s7683_s20, 128  ;;  %p7486_p0 = scmp.lt.s32.totalorder %s7683_s20, %s7683_s20 }
  0x45   :  { %p7482_p13 = scmp.ne.s32.totalorder %s7683_s20, %s7481_s23  ;;  %p7487_p1 = scmp.lt.s32.totalorder %s7481_s23, %s7481_s23 }
  0x47   :  { %p7488_p2 = por %p7487_p1, %p7486_p0 }
  0x49   :  { %p7489_p3 = pnand %p7488_p2, %p7482_p13 }
  0x4b   :  { %7492 = shalt.err (!%p7489_p3)
}
  0x4c   :  { %s7551_s18 = smov 64   ;;  %s7552_s25 = smov 4  }
  0x4d   :  { %56 = dma.hbm_to_vmem [thread:$0]  %s8535_s2, 128, %s7683_s20, [#allocation6], %s7551_s18, %s7551_s18, %s7552_s25  }
  0x4e   :  { %s7553_s28 = smov [#allocation10]   ;;  %s7493_s1 = scalar_lea.hbm %s8547_s14, 512 }
  0x4f   :  { %s94_s29 = sshll.u32 %s7553_s28, 4  ;;  %p7494_p4 = scmp.ne.s32.totalorder %s8547_s14, %s7493_s1  ;;  %s95_s29 = int_to_ptr.vmem [resolvable:$true] %s94_s29 }
  0x50   :  { %p7497_p5 = scmp.lt.u32.totalorder %s7493_s1, %s8547_s14 }
  0x52   :  { %p7499_p6 = pnand %p7497_p5, %p7494_p4 }
  0x54   :  { %7502 = shalt.err (!%p7499_p6)
}
  0x55   :  { %s7503_s16 = scalar_lea.vmem %s95_s29, 512  ;;  %p7508_p8 = scmp.lt.s32.totalorder %s95_s29, %s95_s29 }
  0x56   :  { %p7504_p7 = scmp.ne.s32.totalorder %s95_s29, %s7503_s16  ;;  %p7509_p9 = scmp.lt.s32.totalorder %s7503_s16, %s7503_s16 }
  0x58   :  { %p7510_p10 = por %p7509_p9, %p7508_p8 }
  0x5a   :  { %p7511_p11 = pnand %p7510_p10, %p7504_p7 }
  0x5c   :  { %7514 = shalt.err (!%p7511_p11)
}
  0x5d   :  { %s8552_s2 = smov 128   ;;  %s7555_s20 = smov 8  }
  0x5e   :  { %100 = dma.hbm_to_vmem [thread:$0]  %s8547_s14, 512, %s95_s29, [#allocation9], %s8552_s2, %s8552_s2, %s7555_s20  }
  0x5f   :  { %7537 = dma.done.wait [#allocation3], 128  }
  0x60   :  { %7538 = vsyncadd [#allocation3], 4294967168 }
  0x61   :  { %7539 = dma.done.wait [#allocation6], 256  }
  0x62   :  { %7540 = vsyncadd [#allocation6], 4294967040 }
  0x63   :  { %7541 = dma.done.wait [#allocation9], 704  }
  0x64   :  { %7542 = vsyncadd [#allocation9], 4294966592  ;;  %v133_v0 = vld [vmem:[%s8536_s3] sm:$0xff]  ;;  %v134_v1 = vld [vmem:[%s8536_s3 + $0x8] sm:$0xff]  ;;  %vm144_vm0 = vcmask 261120   ;;  %vm127_vm1 = vcmask 1043456   ;;  %v130_v36 = vlaneseq }
  0x65   :  { %v135_v2 = vld [vmem:[%s8536_s3 + $0x10] sm:$0xff]  ;;  %v6751_v3 = vpack.c.bf16 %v134_v1, %v133_v0  ;;  %v136_v4 = vld [vmem:[%s8536_s3 + $0x18] sm:$0xff]  ;;  %v118_v5 = vld [vmem:[#allocation2] sm:$0xff]  ;;  %vm245_vm2 = vcmask 64512   ;;  %s7556_s22 = smov 96   ;;  %vm422_vm5 = vcmask 130048  }
  0x66   :  { %v119_v6 = vld [vmem:[#allocation5] sm:$0xff]  ;;  %v6755_v7 = vpack.c.bf16 %v136_v4, %v135_v2  ;;  %v122_v10 = vld [vmem:[#allocation7] sm:$0xf]  ;;  %v125_v12 = vld [vmem:[#allocation7 + $0x4] sm:$0xf]  ;;  %v7802_v37 = vand.u32 127, %v130_v36 }
  0x67   :  { %v7743_v8 = vadd.f32 %v119_v6, %v118_v5  ;;  %v121_v9 = vld [vmem:[#allocation5] sm:$0xf]  ;;  %6752 = vmatprep.subr.bf16.mxu0 %v6751_v3  ;;  %v5843_v16 = vld [vmem:[%s8537_s4] ss:$0 sm:$0xff]  ;;  %vm7786_vm3 = vmpackc.low %vm245_vm2, %vm245_vm2  ;;  %s7557_s30 = smov 88   ;;  %s7558_s0 = smov 120  }
  0x68   :  { %6754 = vmatpush3.bf16.msra.mxu0 %v6751_v3  ;;  %v123_v11 = vadd.f32 %v122_v10, %v121_v9  ;;  %v126_v14 = vadd.f32 %v125_v12, %v121_v9  ;;  %vm132_vm4 = vcmp.lt.s32.totalorder %v7802_v37, 12  ;;  %s7559_s17 = smov 56   ;;  %s7560_s16 = smov 80   ;;  %vm2508_vm6 = vcmask 523264  }
  0x69   :  { %6321 = vmatprep.mubr.msk.f32.mxu0 %vm144_vm0, %v7743_v8  ;;  %6756 = vmatprep.subr.bf16.mxu0 %v6755_v7  ;;  %s7561_s19 = smov 112   ;;  %s7562_s27 = smov 48  }
  0x6a   :  { %v7747_v13 = vsel %vm127_vm1, %v123_v11, 0.0  ;;  %v7753_v15 = vsel %vm127_vm1, %v126_v14, 0.0  ;;  %s7563_s28 = smov 104   ;;  %s7564_s6 = smov 72  }
  0x6b   :  { %s7565_s24 = smov 40   ;;  %s7566_s14 = smov [#allocation11]  }
  0x6c   :  { %6758 = vmatpush3.bf16.msra.mxu0 %v6755_v7  ;;  %s5829_s29 = sshll.u32 %s7566_s14, 4  ;;  %s5830_s29 = int_to_ptr.vmem [resolvable:$true] %s5829_s29 }
  0x6d   :  { %p7520_p13 = scmp.lt.s32.totalorder %s5830_s29, %s5830_s29 }
  0x6f   :  { %6322 = vmatmul.mubr.msk.f32.vlgmr.msra.gmra.mrb[0].mxu0 %vm144_vm0, %v7747_v13 }
  0x70   :  { %6324 = vmatprep.mubr.msk.f32.mxu0 %vm144_vm0, %v7743_v8 }
  0x73   :  { %6325 = vmatmul.mubr.msk.f32.gmra.mrb[2].mxu0 %vm144_vm0, %v7753_v15 }
 0x142   :  { %v6323_v17 = vpop.f32.mrb[0].mxu0 }
 0x143   :  { %v7760_v18 = vadd.f32 %v6323_v17, %v5843_v16  ;;  %v220_v19 = vpop.f32.mrb[1].mxu0 }
 0x144   :  { %v7762_v20 = vadd.f32 %v5843_v16, %v220_v19 }
 0x146   :  { %v6326_v21 = vpop.f32.mrb[2].mxu0  ;;  %6331 = vmatprep.mubr.msk.f32.mxu1 %vm245_vm2, %v7762_v20  ;;  %v7768_v22 = vpack.i.bf16 %v7760_v18, %v7762_v20 }
 0x147   :  { %v7770_v23 = vadd.f32 %v6326_v21, %v5843_v16  ;;  %v230_v24 = vpop.f32.mrb[3].mxu0 }
 0x148   :  { %v7772_v25 = vadd.f32 %v5843_v16, %v230_v24  ;;  %7058 = vrot.lane.b32.xlu0 %v7768_v22, %s7556_s22 }
 0x14a   :  { %v7778_v26 = vpack.i.bf16 %v7770_v23, %v7772_v25  ;;  %6338 = vmatprep.mubr.msk.f32.mxu0 %vm245_vm2, %v7772_v25 }
 0x14c   :  { %7063 = vrot.lane.b32.xlu0 %v7778_v26, %s7556_s22 }
 0x1ba   :  { %v7059_v27 = vpop.permute.xlu0 %7058 }
 0x1bb   :  { %v7061_v28 = vunpack.i.h.bf16 %v7059_v27  ;;  %v7060_v29 = vunpack.i.l.bf16 %v7059_v27 }
 0x1bd   :  { %v6759_v31 = vpack.c.bf16 %v7061_v28, %v7060_v29 }
 0x1be   :  { %v7064_v32 = vpop.permute.xlu0 %7063 }
 0x1bf   :  { %v7066_v33 = vunpack.i.h.bf16 %v7064_v32  ;;  %v7065_v34 = vunpack.i.l.bf16 %v7064_v32  ;;  %6761 = vmatprep.subr.msk.bf16.mxu1 %vm7786_vm3, %v6759_v31 }
 0x1c0   :  { %6764 = vmatpush3.bf16.xpose.msk.msra.mxu1 %vm7786_vm3, %v6759_v31 }
 0x1c1   :  { %v6765_v35 = vpack.c.bf16 %v7066_v33, %v7065_v34 }
 0x1c3   :  { %6767 = vmatprep.subr.msk.bf16.mxu0 %vm7786_vm3, %v6765_v35 }
 0x1c4   :  { %6770 = vmatpush3.bf16.xpose.msk.msra.mxu0 %vm7786_vm3, %v6765_v35 }
 0x1c7   :  { %6332 = vmatmul.mubr.msk.f32.vlgmr.msra.gmra.mrb[0].mxu1 %vm245_vm2, %v7760_v18 }
 0x1cb   :  { %6339 = vmatmul.mubr.msk.f32.vlgmr.msra.gmra.mrb[4].mxu0 %vm245_vm2, %v7770_v23 }
 0x29a   :  { %v6333_v38 = vpop.f32.mrb[0].mxu1 }
 0x29b   :  { %v320_v39 = vpop.f32.mrb[1].mxu1  ;;  %v419_v42 = vsel %vm132_vm4, %v6333_v38, -1e+30 }
 0x29c   :  { %v418_v40 = vsel %vm132_vm4, %v320_v39, -1e+30  ;;  %v426_v47 = vsel %vm422_vm5, %v419_v42, -inf }
 0x29d   :  { %v423_v41 = vsel %vm422_vm5, %v418_v40, -inf }
 0x29e   :  { %v6340_v43 = vpop.f32.mrb[4].mxu0  ;;  %424 = vmax.xlane.f32.xlu1 %v423_v41 }
 0x29f   :  { %v409_v44 = vpop.f32.mrb[5].mxu0  ;;  %v421_v48 = vsel %vm132_vm4, %v6340_v43, -1e+30 }
 0x2a0   :  { %v420_v45 = vsel %vm132_vm4, %v409_v44, -1e+30  ;;  %v432_v49 = vsel %vm422_vm5, %v421_v48, -inf }
 0x2a1   :  { %v429_v46 = vsel %vm422_vm5, %v420_v45, -inf }
 0x2a2   :  { %430 = vmax.xlane.f32.xlu0 %v429_v46  ;;  %427 = vmax.xlane.f32.xlu1 %v426_v47 }
 0x2a6   :  { %433 = vmax.xlane.f32.xlu1 %v432_v49 }
 0x2b7   :  { %7068 = vrot.lane.b32.xlu1 %v7768_v22, %s7551_s18 }
 0x2b8   :  { %7073 = vrot.lane.b32.xlu0 %v7778_v26, %s7551_s18 }
 0x2bb   :  { %7078 = vrot.lane.b32.xlu1 %v7778_v26, %s7557_s30 }
 0x2bc   :  { %642 = vrot.lane.b32.xlu0 %v7762_v20, %s7558_s0 }
 0x2bf   :  { %733 = vrot.lane.b32.xlu1 %v7772_v25, %s7558_s0 }
 0x32b   :  { %v425_v50 = vpop.xlane.xlu1 %424 }
 0x32c   :  { %v435_v51 = vsub.f32 %v418_v40, %v425_v50 }
 0x32e   :  { %v439_v56 = vmul.f32 1.442695, %v435_v51 }
 0x32f   :  { %v431_v52 = vpop.xlane.xlu0 %430  ;;  %v428_v53 = vpop.xlane.xlu1 %427 }
 0x330   :  { %v436_v54 = vsub.f32 %v419_v42, %v428_v53  ;;  %v437_v60 = vsub.f32 %v420_v45, %v431_v52 }
 0x332   :  { %v441_v55 = vmul.f32 1.442695, %v436_v54  ;;  %v443_v5 = vmul.f32 1.442695, %v437_v60 }
 0x333   :  { %v7074_v57 = vpop.permute.xlu0 %7073  ;;  %v434_v58 = vpop.xlane.xlu1 %433 }
 0x334   :  { %v438_v59 = vsub.f32 %v421_v48, %v434_v58  ;;  %7217 = vpow2.f32 %v441_v55  ;;  %v7076_v0 = vunpack.i.h.bf16 %v7074_v57  ;;  %v7075_v1 = vunpack.i.l.bf16 %v7074_v57 }
 0x335   :  { %7219 = vpow2.f32 %v439_v56 }
 0x336   :  { %v445_v61 = vmul.f32 1.442695, %v438_v59  ;;  %v6775_v6 = vpack.c.bf16 %v7076_v0, %v7075_v1 }
 0x337   :  { %v643_v62 = vpop.permute.xlu0 %642  ;;  %v7069_v63 = vpop.permute.xlu1 %7068 }
 0x338   :  { %v7071_v2 = vunpack.i.h.bf16 %v7069_v63  ;;  %v7070_v3 = vunpack.i.l.bf16 %v7069_v63  ;;  %6359 = vmatprep.mubr.msk.f32.mxu0 %vm245_vm2, %v643_v62  ;;  %7221 = vpow2.f32 %v445_v61 }
 0x339   :  { %7223 = vpow2.f32 %v443_v5 }
 0x33a   :  { %v6771_v4 = vpack.c.bf16 %v7071_v2, %v7070_v3 }
 0x33b   :  { %v7079_v19 = vpop.permute.xlu1 %7078 }
 0x33c   :  { %6772 = vmatprep.subr.bf16.mxu1 %v6771_v4  ;;  %v7081_v33 = vunpack.i.h.bf16 %v7079_v19  ;;  %v7080_v34 = vunpack.i.l.bf16 %v7079_v19 }
 0x33d   :  { %6774 = vmatpush3.bf16.msra.mxu1 %v6771_v4 }
 0x33e   :  { %6776 = vmatprep.subr.bf16.mxu1 %v6775_v6  ;;  %v7218_v7 = vpop.eup %7217  ;;  %v6785_v39 = vpack.c.bf16 %v7081_v33, %v7080_v34 }
 0x33f   :  { %v450_v9 = vsel %vm422_vm5, %v7218_v7, 0.0  ;;  %v7220_v10 = vpop.eup %7219  ;;  %v734_v21 = vpop.permute.xlu1 %733 }
 0x340   :  { %451 = vadd.xlane.f32.xlu1 %v450_v9  ;;  %v447_v11 = vsel %vm422_vm5, %v7220_v10, 0.0 }
 0x342   :  { %v7222_v12 = vpop.eup %7221 }
 0x343   :  { %v456_v14 = vsel %vm422_vm5, %v7222_v12, 0.0  ;;  %v7224_v16 = vpop.eup %7223 }
 0x344   :  { %448 = vadd.xlane.f32.xlu1 %v447_v11  ;;  %v453_v17 = vsel %vm422_vm5, %v7224_v16, 0.0 }
 0x348   :  { %457 = vadd.xlane.f32.xlu1 %v456_v14 }
 0x34c   :  { %454 = vadd.xlane.f32.xlu1 %v453_v17 }
 0x35d   :  { %735 = vrot.lane.b32.xlu1 %v7770_v23, %s7558_s0 }
 0x361   :  { %7083 = vrot.lane.b32.xlu1 %v7768_v22, %s7557_s30 }
 0x365   :  { %644 = vrot.lane.b32.xlu1 %v7760_v18, %s7558_s0 }
 0x3cd   :  { %v452_v24 = vpop.xlane.xlu1 %451 }
 0x3ce   :  { %7225 = vrcp.f32 %v452_v24 }
 0x3d1   :  { %v449_v27 = vpop.xlane.xlu1 %448 }
 0x3d2   :  { %7227 = vrcp.f32 %v449_v27 }
 0x3d5   :  { %v458_v28 = vpop.xlane.xlu1 %457 }
 0x3d6   :  { %7229 = vrcp.f32 %v458_v28 }
 0x3d8   :  { %v7226_v31 = vpop.eup %7225 }
 0x3d9   :  { %v455_v29 = vpop.xlane.xlu1 %454  ;;  %v464_v38 = vmul.f32 %v7226_v31, %v7218_v7 }
 0x3da   :  { %7231 = vrcp.f32 %v455_v29 }
 0x3dc   :  { %v7228_v32 = vpop.eup %7227 }
 0x3dd   :  { %v736_v35 = vpop.permute.xlu1 %735  ;;  %v463_v36 = vmul.f32 %v7228_v32, %v7220_v10 }
 0x3df   :  { %6345 = vmatprep.mubr.msk.f32.mxu1 %vm422_vm5, %v463_v36 }
 0x3e0   :  { %6346 = vmatmul.mubr.msk.f32.vlgmr.msra.gmra.mrb[2].mxu1 %vm422_vm5, %v464_v38  ;;  %v7230_v43 = vpop.eup %7229 }
 0x3e1   :  { %6778 = vmatpush3.bf16.msra.mxu1 %v6775_v6  ;;  %v7084_v40 = vpop.permute.xlu1 %7083  ;;  %v466_v47 = vmul.f32 %v7230_v43, %v7222_v12 }
 0x3e2   :  { %v7086_v41 = vunpack.i.h.bf16 %v7084_v40  ;;  %v7085_v42 = vunpack.i.l.bf16 %v7084_v40  ;;  %6787 = vmatprep.subr.msk.bf16.mxu1 %vm7786_vm3, %v6785_v39 }
 0x3e4   :  { %v7232_v44 = vpop.eup %7231  ;;  %v6779_v45 = vpack.c.bf16 %v7086_v41, %v7085_v42 }
 0x3e5   :  { %v465_v46 = vmul.f32 %v7232_v44, %v7224_v16  ;;  %v645_v48 = vpop.permute.xlu1 %644 }
 0x3e6   :  { %6781 = vmatprep.subr.msk.bf16.mxu0 %vm7786_vm3, %v6779_v45 }
 0x3e7   :  { %6352 = vmatprep.mubr.msk.f32.mxu1 %vm422_vm5, %v465_v46  ;;  %6784 = vmatpush3.bf16.xpose.msk.msra.mxu0 %vm7786_vm3, %v6779_v45 }
 0x3e8   :  { %6353 = vmatmul.mubr.msk.f32.vlgmr.msra.gmra.mrb[4].mxu1 %vm422_vm5, %v466_v47 }
 0x3e9   :  { %6366 = vmatprep.mubr.msk.f32.mxu1 %vm245_vm2, %v734_v21 }
 0x3ea   :  { %6790 = vmatpush3.bf16.xpose.msk.msra.mxu1 %vm7786_vm3, %v6785_v39 }
 0x3ee   :  { %6360 = vmatmul.mubr.msk.f32.vlgmr.msra.gmra.mrb[6].mxu0 %vm245_vm2, %v645_v48 }
 0x3f1   :  { %6367 = vmatmul.mubr.msk.f32.vlgmr.msra.gmra.mrb[6].mxu1 %vm245_vm2, %v736_v35 }
 0x4b3   :  { %v7853_v49 = vpop.f32.mrb[2].mxu1 }
 0x4b4   :  { %v7855_v50 = vpop.f32.mrb[3].mxu1 }
 0x4bb   :  { %v7857_v51 = vpop.f32.mrb[4].mxu1 }
 0x4bc   :  { %v7859_v52 = vpop.f32.mrb[5].mxu1 }
 0x4c1   :  { %v6361_v53 = vpop.f32.mrb[6].mxu0 }
 0x4c2   :  { %v724_v54 = vpop.f32.mrb[7].mxu0  ;;  %v825_v28 = vsel %vm132_vm4, %v6361_v53, -1e+30 }
 0x4c3   :  { %v824_v61 = vsel %vm132_vm4, %v724_v54, -1e+30  ;;  %v831_v29 = vsel %vm422_vm5, %v825_v28, -inf }
 0x4c4   :  { %v6368_v55 = vpop.f32.mrb[6].mxu1  ;;  %v828_v62 = vsel %vm422_vm5, %v824_v61, -inf }
 0x4c5   :  { %v827_v56 = vsel %vm132_vm4, %v6368_v55, -1e+30  ;;  %v815_v57 = vpop.f32.mrb[7].mxu1 }
 0x4c6   :  { %v826_v58 = vsel %vm132_vm4, %v815_v57, -1e+30  ;;  %v837_v59 = vsel %vm422_vm5, %v827_v56, -inf }
 0x4c7   :  { %838 = vmax.xlane.f32.xlu1 %v837_v59  ;;  %v834_v60 = vsel %vm422_vm5, %v826_v58, -inf }
 0x4c8   :  { %835 = vmax.xlane.f32.xlu0 %v834_v60 }
 0x4d8   :  { %7088 = vrot.lane.b32.xlu1 %v7778_v26, %s7559_s17 }
 0x4dc   :  { %7098 = vrot.lane.b32.xlu1 %v7778_v26, %s7560_s16 }
 0x4e0   :  { %1242 = vrot.lane.b32.xlu1 %v7762_v20, %s7561_s19 }
 0x4e4   :  { %1333 = vrot.lane.b32.xlu1 %v7772_v25, %s7561_s19 }
 0x508   :  { %829 = vmax.xlane.f32.xlu1 %v828_v62 }
 0x554   :  { %v839_v63 = vpop.xlane.xlu1 %838 }
 0x555   :  { %v843_v0 = vsub.f32 %v827_v56, %v839_v63  ;;  %v836_v1 = vpop.xlane.xlu0 %835 }
 0x556   :  { %v842_v2 = vsub.f32 %v826_v58, %v836_v1 }
 0x557   :  { %v850_v3 = vmul.f32 1.442695, %v843_v0 }
 0x558   :  { %v848_v4 = vmul.f32 1.442695, %v842_v2  ;;  %v7089_v5 = vpop.permute.xlu1 %7088 }
 0x559   :  { %7233 = vpow2.f32 %v850_v3  ;;  %v7091_v6 = vunpack.i.h.bf16 %v7089_v5  ;;  %v7090_v7 = vunpack.i.l.bf16 %v7089_v5 }
 0x55a   :  { %7235 = vpow2.f32 %v848_v4 }
 0x55b   :  { %v6795_v9 = vpack.c.bf16 %v7091_v6, %v7090_v7 }
 0x55c   :  { %v7099_v16 = vpop.permute.xlu1 %7098 }
 0x55d   :  { %6796 = vmatprep.subr.bf16.mxu1 %v6795_v9  ;;  %v7101_v42 = vunpack.i.h.bf16 %v7099_v16  ;;  %v7100_v43 = vunpack.i.l.bf16 %v7099_v16 }
 0x55e   :  { %6798 = vmatpush3.bf16.msra.mxu1 %v6795_v9 }
 0x55f   :  { %v6805_v46 = vpack.c.bf16 %v7101_v42, %v7100_v43 }
 0x560   :  { %v1243_v17 = vpop.permute.xlu1 %1242 }
 0x563   :  { %v7234_v10 = vpop.eup %7233 }
 0x564   :  { %v861_v11 = vsel %vm422_vm5, %v7234_v10, 0.0  ;;  %v7236_v12 = vpop.eup %7235  ;;  %v1334_v19 = vpop.permute.xlu1 %1333 }
 0x565   :  { %862 = vadd.xlane.f32.xlu0 %v861_v11  ;;  %v858_v14 = vsel %vm422_vm5, %v7236_v12, 0.0 }
 0x569   :  { %859 = vadd.xlane.f32.xlu0 %v858_v14 }
 0x57f   :  { %7093 = vrot.lane.b32.xlu0 %v7768_v22, %s7560_s16 }
 0x583   :  { %1244 = vrot.lane.b32.xlu0 %v7760_v18, %s7561_s19 }
 0x587   :  { %1335 = vrot.lane.b32.xlu0 %v7770_v23, %s7561_s19 }
 0x595   :  { %v830_v21 = vpop.xlane.xlu1 %829 }
 0x596   :  { %v840_v24 = vsub.f32 %v824_v61, %v830_v21 }
 0x598   :  { %v844_v27 = vmul.f32 1.442695, %v840_v24 }
 0x59a   :  { %7237 = vpow2.f32 %v844_v27  ;;  %v5872_v27 = vld [vmem:[%s8538_s5 + $0x8] sm:$0xff] }
 0x5a4   :  { %v7238_v31 = vpop.eup %7237 }
 0x5a5   :  { %v852_v32 = vsel %vm422_vm5, %v7238_v31, 0.0 }
 0x5a6   :  { %832 = vmax.xlane.f32.xlu0 %v831_v29 }
 0x5aa   :  { %853 = vadd.xlane.f32.xlu0 %v852_v32 }
 0x5c0   :  { %7103 = vrot.lane.b32.xlu0 %v7768_v22, %s7559_s17 }
 0x5f2   :  { %v863_v33 = vpop.xlane.xlu0 %862 }
 0x5f3   :  { %7239 = vrcp.f32 %v863_v33 }
 0x5f6   :  { %v860_v34 = vpop.xlane.xlu0 %859 }
 0x5f7   :  { %7241 = vrcp.f32 %v860_v34 }
 0x5fa   :  { %v7094_v35 = vpop.permute.xlu0 %7093 }
 0x5fb   :  { %v7096_v36 = vunpack.i.h.bf16 %v7094_v35  ;;  %v7095_v38 = vunpack.i.l.bf16 %v7094_v35 }
 0x5fd   :  { %v6799_v39 = vpack.c.bf16 %v7096_v36, %v7095_v38  ;;  %v7240_v40 = vpop.eup %7239 }
 0x5fe   :  { %v871_v45 = vmul.f32 %v7240_v40, %v7234_v10  ;;  %v1245_v47 = vpop.permute.xlu0 %1244 }
 0x5ff   :  { %6801 = vmatprep.subr.msk.bf16.mxu1 %vm7786_vm3, %v6799_v39 }
 0x601   :  { %v7242_v41 = vpop.eup %7241 }
 0x602   :  { %v870_v44 = vmul.f32 %v7242_v41, %v7236_v12  ;;  %v1336_v48 = vpop.permute.xlu0 %1335 }
 0x604   :  { %6380 = vmatprep.mubr.msk.f32.mxu1 %vm422_vm5, %v870_v44 }
 0x605   :  { %6381 = vmatmul.mubr.msk.f32.vlgmr.msra.gmra.mrb[8].mxu1 %vm422_vm5, %v871_v45 }
 0x606   :  { %6804 = vmatpush3.bf16.xpose.msk.msra.mxu1 %vm7786_vm3, %v6799_v39  ;;  %6403 = vmatprep.mubr.msk.f32.mxu1 %vm245_vm2, %v1243_v17 }
 0x607   :  { %6807 = vmatprep.subr.msk.bf16.mxu1 %vm7786_vm3, %v6805_v46 }
 0x60d   :  { %6404 = vmatmul.mubr.msk.f32.vlgmr.msra.gmra.mrb[10].mxu1 %vm245_vm2, %v1245_v47 }
 0x60e   :  { %6810 = vmatpush3.bf16.xpose.msk.msra.mxu1 %vm7786_vm3, %v6805_v46  ;;  %6410 = vmatprep.mubr.msk.f32.mxu1 %vm245_vm2, %v1334_v19 }
 0x615   :  { %6411 = vmatmul.mubr.msk.f32.vlgmr.msra.gmra.mrb[12].mxu1 %vm245_vm2, %v1336_v48 }
 0x633   :  { %v833_v53 = vpop.xlane.xlu0 %832 }
 0x634   :  { %v841_v54 = vsub.f32 %v825_v28, %v833_v53  ;;  %v641_v28 = vld [vmem:[%s8538_s5] sm:$0xff] }
 0x636   :  { %v846_v55 = vmul.f32 1.442695, %v841_v54 }
 0x637   :  { %v854_v56 = vpop.xlane.xlu0 %853 }
 0x638   :  { %7243 = vpow2.f32 %v846_v55 }
 0x639   :  { %7245 = vrcp.f32 %v854_v56 }
 0x63b   :  { %v7104_v57 = vpop.permute.xlu0 %7103 }
 0x63c   :  { %v7106_v58 = vunpack.i.h.bf16 %v7104_v57  ;;  %v7105_v59 = vunpack.i.l.bf16 %v7104_v57 }
 0x63e   :  { %v6791_v60 = vpack.c.bf16 %v7106_v58, %v7105_v59 }
 0x640   :  { %6792 = vmatprep.subr.bf16.mxu0 %v6791_v60 }
 0x641   :  { %6794 = vmatpush3.bf16.msra.mxu0 %v6791_v60 }
 0x642   :  { %v7244_v61 = vpop.eup %7243  ;;  %6383 = vmatprep.subr.mxu0 %v5872_v27 }
 0x643   :  { %v7246_v62 = vpop.eup %7245  ;;  %v855_v63 = vsel %vm422_vm5, %v7244_v61, 0.0 }
 0x644   :  { %856 = vadd.xlane.f32.xlu1 %v855_v63  ;;  %v868_v0 = vmul.f32 %v7246_v62, %v7238_v31  ;;  %v5893_v63 = vld [vmem:[%s8538_s5 + $0x10] sm:$0xff] }
 0x646   :  { %6373 = vmatprep.mubr.msk.f32.mxu0 %vm422_vm5, %v868_v0 }
 0x6d1   :  { %v857_v1 = vpop.xlane.xlu1 %856 }
 0x6d2   :  { %7247 = vrcp.f32 %v857_v1 }
 0x6d8   :  { %v7908_v2 = vpop.f32.mrb[8].mxu1 }
 0x6d9   :  { %v7910_v3 = vpop.f32.mrb[9].mxu1 }
 0x6dc   :  { %v7248_v4 = vpop.eup %7247 }
 0x6dd   :  { %v869_v5 = vmul.f32 %v7248_v4, %v7244_v61 }
 0x6df   :  { %6374 = vmatmul.mubr.msk.f32.vlgmr.msra.gmra.mrb[8].mxu0 %vm422_vm5, %v869_v5 }
 0x6e0   :  { %v6405_v6 = vpop.f32.mrb[10].mxu1  ;;  %6384 = vmatpush3.msra.mxu0 %v5872_v27 }
 0x6e1   :  { %v1425_v7 = vsel %vm132_vm4, %v6405_v6, -1e+30  ;;  %v1324_v9 = vpop.f32.mrb[11].mxu1  ;;  %6391 = vmatprep.subr.mxu0 %v641_v28 }
 0x6e2   :  { %v1431_v10 = vsel %vm422_vm5, %v1425_v7, -inf  ;;  %v1424_v11 = vsel %vm132_vm4, %v1324_v9, -1e+30 }
 0x6e3   :  { %1432 = vmax.xlane.f32.xlu1 %v1431_v10  ;;  %v1428_v12 = vsel %vm422_vm5, %v1424_v11, -inf }
 0x6e7   :  { %1429 = vmax.xlane.f32.xlu1 %v1428_v12 }
 0x6e8   :  { %v6412_v14 = vpop.f32.mrb[12].mxu1 }
 0x6e9   :  { %v1415_v16 = vpop.f32.mrb[13].mxu1  ;;  %v1427_v21 = vsel %vm132_vm4, %v6412_v14, -1e+30 }
 0x6ea   :  { %v1426_v17 = vsel %vm132_vm4, %v1415_v16, -1e+30  ;;  %v1437_v24 = vsel %vm422_vm5, %v1427_v21, -inf }
 0x6eb   :  { %v1434_v19 = vsel %vm422_vm5, %v1426_v17, -inf }
 0x6ec   :  { %1435 = vmax.xlane.f32.xlu1 %v1434_v19 }
 0x6f0   :  { %1438 = vmax.xlane.f32.xlu1 %v1437_v24 }
 0x770   :  { %v1433_v29 = vpop.xlane.xlu1 %1432 }
 0x771   :  { %v1441_v31 = vsub.f32 %v1425_v7, %v1433_v29 }
 0x773   :  { %v1446_v32 = vmul.f32 1.442695, %v1441_v31 }
 0x774   :  { %v1430_v33 = vpop.xlane.xlu1 %1429 }
 0x775   :  { %7249 = vpow2.f32 %v1446_v32  ;;  %v1440_v34 = vsub.f32 %v1424_v11, %v1430_v33 }
 0x777   :  { %v1444_v35 = vmul.f32 1.442695, %v1440_v34 }
 0x779   :  { %7251 = vpow2.f32 %v1444_v35  ;;  %v1436_v36 = vpop.xlane.xlu1 %1435 }
 0x77a   :  { %v1442_v38 = vsub.f32 %v1426_v17, %v1436_v36 }
 0x77c   :  { %v1448_v39 = vmul.f32 1.442695, %v1442_v38 }
 0x77d   :  { %v1439_v40 = vpop.xlane.xlu1 %1438 }
 0x77e   :  { %7253 = vpow2.f32 %v1448_v39  ;;  %v1443_v41 = vsub.f32 %v1427_v21, %v1439_v40 }
 0x77f   :  { %v7250_v42 = vpop.eup %7249 }
 0x780   :  { %v1450_v43 = vmul.f32 1.442695, %v1443_v41  ;;  %v1455_v44 = vsel %vm422_vm5, %v7250_v42, 0.0 }
 0x781   :  { %1456 = vadd.xlane.f32.xlu1 %v1455_v44 }
 0x782   :  { %7255 = vpow2.f32 %v1450_v43 }
 0x783   :  { %v7252_v45 = vpop.eup %7251 }
 0x784   :  { %v1452_v46 = vsel %vm422_vm5, %v7252_v45, 0.0 }
 0x785   :  { %1453 = vadd.xlane.f32.xlu1 %v1452_v46 }
 0x788   :  { %v7254_v47 = vpop.eup %7253 }
 0x789   :  { %v1458_v48 = vsel %vm422_vm5, %v7254_v47, 0.0 }
 0x78a   :  { %1459 = vadd.xlane.f32.xlu0 %v1458_v48 }
 0x78c   :  { %v7256_v53 = vpop.eup %7255 }
 0x78d   :  { %v1461_v54 = vsel %vm422_vm5, %v7256_v53, 0.0 }
 0x78e   :  { %1462 = vadd.xlane.f32.xlu1 %v1461_v54 }
 0x79f   :  { %7108 = vrot.lane.b32.xlu1 %v7768_v22, %s7562_s27 }
 0x7a0   :  { %1749 = vrot.lane.b32.xlu0 %v7762_v20, %s7563_s28 }
 0x7a3   :  { %7113 = vrot.lane.b32.xlu1 %v7778_v26, %s7562_s27 }
 0x7a7   :  { %7118 = vrot.lane.b32.xlu1 %v7768_v22, %s7564_s6 }
 0x7ab   :  { %7123 = vrot.lane.b32.xlu1 %v7778_v26, %s7564_s6 }
 0x7af   :  { %1751 = vrot.lane.b32.xlu1 %v7760_v18, %s7563_s28 }
 0x7b2   :  { %v6375_v55 = vpop.f32.mrb[8].mxu0 }
 0x7b3   :  { %1840 = vrot.lane.b32.xlu1 %v7772_v25, %s7563_s28  ;;  %v950_v56 = vpop.f32.mrb[9].mxu0 }
 0x7b4   :  { %6385 = vmatprep.mubr.msk.f32.mxu0 %vm245_vm2, %v950_v56 }
 0x7b5   :  { %6386 = vmatmul.mubr.msk.f32.vlgmr.msra.gmra.mrb[10].mxu0 %vm245_vm2, %v6375_v55 }
 0x7b6   :  { %6388 = vmatprep.mubr.msk.f32.mxu0 %vm245_vm2, %v7910_v3  ;;  %6392 = vmatpush3.msra.mxu0 %v641_v28 }
 0x7b7   :  { %1842 = vrot.lane.b32.xlu1 %v7770_v23, %s7563_s28 }
 0x7b9   :  { %6389 = vmatmul.mubr.msk.f32.gmra.mrb[12].mxu0 %vm245_vm2, %v7908_v2 }
 0x7ba   :  { %6393 = vmatprep.mubr.msk.f32.mxu0 %vm245_vm2, %v7855_v50 }
 0x7bd   :  { %6394 = vmatmul.mubr.msk.f32.vlgmr.msra.gmra.mrb[10].mxu0 %vm245_vm2, %v7853_v49 }
 0x7be   :  { %6396 = vmatprep.mubr.msk.f32.mxu0 %vm245_vm2, %v7859_v52 }
 0x7c1   :  { %6397 = vmatmul.mubr.msk.f32.gmra.mrb[12].mxu0 %vm245_vm2, %v7857_v51 }
 0x80e   :  { %v1457_v18 = vpop.xlane.xlu1 %1456 }
 0x812   :  { %v1454_v20 = vpop.xlane.xlu1 %1453 }
 0x813   :  { %7257 = vrcp.f32 %v1454_v20 }
 0x817   :  { %v1460_v25 = vpop.xlane.xlu0 %1459 }
 0x818   :  { %7259 = vrcp.f32 %v1460_v25 }
 0x819   :  { %7261 = vrcp.f32 %v1457_v18 }
 0x81b   :  { %v1463_v23 = vpop.xlane.xlu1 %1462  ;;  %v1750_v12 = vpop.permute.xlu0 %1749 }
 0x81c   :  { %7263 = vrcp.f32 %v1463_v23 }
 0x81d   :  { %v7258_v57 = vpop.eup %7257 }
 0x81e   :  { %v1468_v58 = vmul.f32 %v7258_v57, %v7252_v45 }
 0x81f   :  { %v7109_v50 = vpop.permute.xlu1 %7108 }
 0x820   :  { %v7111_v59 = vunpack.i.h.bf16 %v7109_v50  ;;  %v7110_v60 = vunpack.i.l.bf16 %v7109_v50  ;;  %6417 = vmatprep.mubr.msk.f32.mxu0 %vm422_vm5, %v1468_v58 }
 0x822   :  { %v7260_v49 = vpop.eup %7259  ;;  %v6811_v52 = vpack.c.bf16 %v7111_v59, %v7110_v60 }
 0x823   :  { %v7262_v61 = vpop.eup %7261  ;;  %v7114_v62 = vpop.permute.xlu1 %7113  ;;  %v1470_v51 = vmul.f32 %v7260_v49, %v7254_v47 }
 0x824   :  { %v7116_v0 = vunpack.i.h.bf16 %v7114_v62  ;;  %v7115_v1 = vunpack.i.l.bf16 %v7114_v62  ;;  %6812 = vmatprep.subr.bf16.mxu0 %v6811_v52  ;;  %v1469_v2 = vmul.f32 %v7262_v61, %v7250_v42 }
 0x825   :  { %6814 = vmatpush3.bf16.msra.mxu0 %v6811_v52  ;;  %6424 = vmatprep.mubr.msk.f32.mxu1 %vm422_vm5, %v1470_v51 }
 0x826   :  { %v6815_v3 = vpack.c.bf16 %v7116_v0, %v7115_v1  ;;  %6427 = vmatprep.subr.mxu0 %v5893_v63  ;;  %v7264_v4 = vpop.eup %7263 }
 0x827   :  { %v7119_v5 = vpop.permute.xlu1 %7118  ;;  %v1471_v10 = vmul.f32 %v7264_v4, %v7256_v53 }
 0x828   :  { %v7121_v6 = vunpack.i.h.bf16 %v7119_v5  ;;  %v7120_v7 = vunpack.i.l.bf16 %v7119_v5  ;;  %6418 = vmatmul.mubr.msk.f32.vlgmr.msra.gmra.mrb[14].mxu0 %vm422_vm5, %v1469_v2  ;;  %6816 = vmatprep.subr.bf16.mxu1 %v6815_v3 }
 0x829   :  { %6818 = vmatpush3.bf16.msra.mxu1 %v6815_v3  ;;  %6428 = vmatpush3.msra.mxu0 %v5893_v63 }
 0x82a   :  { %v6819_v9 = vpack.c.bf16 %v7121_v6, %v7120_v7 }
 0x82b   :  { %v7124_v11 = vpop.permute.xlu1 %7123 }
 0x82c   :  { %v7126_v14 = vunpack.i.h.bf16 %v7124_v11  ;;  %v7125_v16 = vunpack.i.l.bf16 %v7124_v11  ;;  %6425 = vmatmul.mubr.msk.f32.vlgmr.msra.gmra.mrb[14].mxu1 %vm422_vm5, %v1471_v10  ;;  %6821 = vmatprep.subr.msk.bf16.mxu1 %vm7786_vm3, %v6819_v9 }
 0x82d   :  { %6439 = vmatprep.mubr.msk.f32.mxu1 %vm245_vm2, %v1750_v12 }
 0x82e   :  { %v6825_v17 = vpack.c.bf16 %v7126_v14, %v7125_v16 }
 0x82f   :  { %v1752_v19 = vpop.permute.xlu1 %1751 }
 0x830   :  { %6827 = vmatprep.subr.msk.bf16.mxu0 %vm7786_vm3, %v6825_v17 }
 0x832   :  { %6824 = vmatpush3.bf16.xpose.msk.msra.mxu1 %vm7786_vm3, %v6819_v9 }
 0x833   :  { %v1841_v27 = vpop.permute.xlu1 %1840 }
 0x837   :  { %v1843_v31 = vpop.permute.xlu1 %1842 }
 0x839   :  { %6440 = vmatmul.mubr.msk.f32.vlgmr.msra.gmra.mrb[16].mxu1 %vm245_vm2, %v1752_v19  ;;  %v5910_v19 = vld [vmem:[%s8538_s5 + $0x18] sm:$0xff] }
 0x8fb   :  { %v6419_v21 = vpop.f32.mrb[14].mxu0 }
 0x8fc   :  { %v1550_v24 = vpop.f32.mrb[15].mxu0 }
 0x8fd   :  { %6429 = vmatprep.mubr.msk.f32.mxu0 %vm245_vm2, %v1550_v24 }
 0x8fe   :  { %6430 = vmatmul.mubr.msk.f32.vlgmr.msra.gmra.mrb[10].mxu0 %vm245_vm2, %v6419_v21 }
 0x8ff   :  { %6830 = vmatpush3.bf16.xpose.msk.msra.mxu0 %vm7786_vm3, %v6825_v17  ;;  %v6426_v28 = vpop.f32.mrb[14].mxu1 }
 0x900   :  { %v1637_v29 = vpop.f32.mrb[15].mxu1 }
 0x901   :  { %6432 = vmatprep.mubr.msk.f32.mxu0 %vm245_vm2, %v1637_v29  ;;  %v5915_v29 = vld [vmem:[#allocation8] ss:$0 sm:$0xff] }
 0x902   :  { %6433 = vmatmul.mubr.msk.f32.gmra.mrb[12].mxu0 %vm245_vm2, %v6426_v28 }
 0x903   :  { %6446 = vmatprep.mubr.msk.f32.mxu0 %vm245_vm2, %v1841_v27 }
 0x906   :  { %6447 = vmatmul.mubr.msk.f32.vlgmr.msra.gmra.mrb[16].mxu0 %vm245_vm2, %v1843_v31 }
 0x90c   :  { %v6441_v32 = vpop.f32.mrb[16].mxu1 }
 0x90d   :  { %v1932_v33 = vsel %vm132_vm4, %v6441_v32, -1e+30  ;;  %v1831_v34 = vpop.f32.mrb[17].mxu1 }
 0x90e   :  { %v1931_v35 = vsel %vm132_vm4, %v1831_v34, -1e+30  ;;  %v1938_v36 = vsel %vm422_vm5, %v1932_v33, -inf }
 0x90f   :  { %1939 = vmax.xlane.f32.xlu0 %v1938_v36  ;;  %v1935_v38 = vsel %vm422_vm5, %v1931_v35, -inf }
 0x910   :  { %1936 = vmax.xlane.f32.xlu1 %v1935_v38 }
 0x99c   :  { %v1940_v39 = vpop.xlane.xlu0 %1939 }
 0x99d   :  { %v1937_v40 = vpop.xlane.xlu1 %1936  ;;  %v1948_v41 = vsub.f32 %v1932_v33, %v1940_v39 }
 0x99e   :  { %v1947_v42 = vsub.f32 %v1931_v35, %v1937_v40 }
 0x99f   :  { %v1953_v43 = vmul.f32 1.442695, %v1948_v41 }
 0x9a0   :  { %v1951_v44 = vmul.f32 1.442695, %v1947_v42 }
 0x9a1   :  { %7265 = vpow2.f32 %v1953_v43 }
 0x9a2   :  { %7267 = vpow2.f32 %v1951_v44 }
 0x9ab   :  { %v7266_v54 = vpop.eup %7265 }
 0x9ac   :  { %v7268_v56 = vpop.eup %7267  ;;  %v1962_v18 = vsel %vm422_vm5, %v7266_v54, 0.0 }
 0x9ad   :  { %v1959_v20 = vsel %vm422_vm5, %v7268_v56, 0.0 }
 0x9d9   :  { %v6448_v45 = vpop.f32.mrb[16].mxu0 }
 0x9da   :  { %v1934_v46 = vsel %vm132_vm4, %v6448_v45, -1e+30  ;;  %v1922_v47 = vpop.f32.mrb[17].mxu0 }
 0x9db   :  { %v1933_v48 = vsel %vm132_vm4, %v1922_v47, -1e+30  ;;  %v1944_v53 = vsel %vm422_vm5, %v1934_v46, -inf }
 0x9dc   :  { %1945 = vmax.xlane.f32.xlu1 %v1944_v53  ;;  %v1941_v55 = vsel %vm422_vm5, %v1933_v48, -inf }
 0x9dd   :  { %1942 = vmax.xlane.f32.xlu0 %v1941_v55 }
 0x9e0   :  { %1963 = vadd.xlane.f32.xlu1 %v1962_v18 }
 0x9e1   :  { %1960 = vadd.xlane.f32.xlu0 %v1959_v20 }
 0xa69   :  { %v1946_v25 = vpop.xlane.xlu1 %1945 }
 0xa6a   :  { %v1950_v23 = vsub.f32 %v1934_v46, %v1946_v25  ;;  %v1943_v57 = vpop.xlane.xlu0 %1942 }
 0xa6b   :  { %v1949_v58 = vsub.f32 %v1933_v48, %v1943_v57 }
 0xa6c   :  { %v1957_v50 = vmul.f32 1.442695, %v1950_v23 }
 0xa6d   :  { %v1955_v59 = vmul.f32 1.442695, %v1949_v58  ;;  %v1964_v0 = vpop.xlane.xlu1 %1963 }
 0xa6e   :  { %7269 = vpow2.f32 %v1957_v50  ;;  %v1961_v60 = vpop.xlane.xlu0 %1960 }
 0xa6f   :  { %7271 = vpow2.f32 %v1955_v59 }
 0xa70   :  { %7273 = vrcp.f32 %v1961_v60 }
 0xa71   :  { %7275 = vrcp.f32 %v1964_v0  ;;  %v2350_v0 = vld [vmem:[%s8540_s7 + $0x10] sm:$0xff] }
 0xa78   :  { %v7270_v49 = vpop.eup %7269 }
 0xa79   :  { %v7272_v52 = vpop.eup %7271  ;;  %v1968_v61 = vsel %vm422_vm5, %v7270_v49, 0.0 }
 0xa7a   :  { %1969 = vadd.xlane.f32.xlu1 %v1968_v61  ;;  %v1965_v62 = vsel %vm422_vm5, %v7272_v52, 0.0  ;;  %v7274_v51 = vpop.eup %7273 }
 0xa7b   :  { %1966 = vadd.xlane.f32.xlu0 %v1965_v62  ;;  %v1975_v63 = vmul.f32 %v7274_v51, %v7268_v56  ;;  %v7276_v12 = vpop.eup %7275  ;;  %v2348_v62 = vld [vmem:[%s8540_s7] sm:$0xff]  ;;  %v2349_v51 = vld [vmem:[%s8540_s7 + $0x8] sm:$0xff] }
 0xa7c   :  { %v1976_v14 = vmul.f32 %v7276_v12, %v7266_v54 }
 0xa7d   :  { %6453 = vmatprep.mubr.msk.f32.mxu1 %vm422_vm5, %v1975_v63  ;;  %v6839_v63 = vpack.c.bf16 %v2349_v51, %v2348_v62 }
 0xa8b   :  { %7133 = vrot.lane.b32.xlu1 %v7778_v26, %s7565_s24 }
 0xa91   :  { %7128 = vrot.lane.b32.xlu0 %v7768_v22, %s7565_s24 }
 0xb07   :  { %v1970_v1 = vpop.xlane.xlu1 %1969 }
 0xb08   :  { %7277 = vrcp.f32 %v1970_v1  ;;  %v1967_v2 = vpop.xlane.xlu0 %1966  ;;  %v2351_v1 = vld [vmem:[%s8540_s7 + $0x18] sm:$0xff] }
 0xb09   :  { %7279 = vrcp.f32 %v1967_v2  ;;  %v6843_v2 = vpack.c.bf16 %v2351_v1, %v2350_v0 }
 0xb0b   :  { %v7134_v3 = vpop.permute.xlu1 %7133 }
 0xb0c   :  { %v7136_v4 = vunpack.i.h.bf16 %v7134_v3  ;;  %v7135_v5 = vunpack.i.l.bf16 %v7134_v3  ;;  %v7129_v6 = vpop.permute.xlu0 %7128 }
 0xb0d   :  { %v7131_v7 = vunpack.i.h.bf16 %v7129_v6  ;;  %v7130_v9 = vunpack.i.l.bf16 %v7129_v6 }
 0xb0e   :  { %v6835_v10 = vpack.c.bf16 %v7136_v4, %v7135_v5 }
 0xb0f   :  { %v6831_v11 = vpack.c.bf16 %v7131_v7, %v7130_v9 }
 0xb10   :  { %6836 = vmatprep.subr.bf16.mxu0 %v6835_v10 }
 0xb11   :  { %6832 = vmatprep.subr.bf16.mxu1 %v6831_v11  ;;  %6838 = vmatpush3.bf16.msra.mxu0 %v6835_v10 }
 0xb12   :  { %v7278_v26 = vpop.eup %7277  ;;  %6834 = vmatpush3.bf16.msra.mxu1 %v6831_v11  ;;  %6463 = vmatprep.subr.mxu0 %v5910_v19 }
 0xb13   :  { %v7280_v22 = vpop.eup %7279  ;;  %v1978_v17 = vmul.f32 %v7278_v26, %v7270_v49  ;;  %6840 = vmatprep.subr.bf16.mxu1 %v6839_v63 }
 0xb14   :  { %v1977_v16 = vmul.f32 %v7280_v22, %v7272_v52 }
 0xb15   :  { %6454 = vmatmul.mubr.msk.f32.vlgmr.msra.gmra.mrb[18].mxu1 %vm422_vm5, %v1976_v14 }
 0xb16   :  { %6460 = vmatprep.mubr.msk.f32.mxu0 %vm422_vm5, %v1977_v16  ;;  %6842 = vmatpush3.bf16.msra.mxu1 %v6839_v63 }
 0xb17   :  { %6461 = vmatmul.mubr.msk.f32.vlgmr.msra.gmra.mrb[18].mxu0 %vm422_vm5, %v1978_v17  ;;  %6844 = vmatprep.subr.bf16.mxu1 %v6843_v2  ;;  %v5916_v17 = vld [vmem:[#allocation8 + $0x1] ss:$0 sm:$0xff] }
 0xb18   :  { %6464 = vmatpush3.msra.mxu0 %v5910_v19 }
 0xb1a   :  { %6846 = vmatpush3.bf16.msra.mxu1 %v6843_v2 }
 0xbe8   :  { %v6455_v21 = vpop.f32.mrb[18].mxu1 }
 0xbe9   :  { %v2057_v24 = vpop.f32.mrb[19].mxu1 }
 0xbea   :  { %v6462_v27 = vpop.f32.mrb[18].mxu0  ;;  %6465 = vmatprep.mubr.msk.f32.mxu0 %vm245_vm2, %v2057_v24 }
 0xbeb   :  { %v2144_v28 = vpop.f32.mrb[19].mxu0  ;;  %6466 = vmatmul.mubr.msk.f32.vlgmr.msra.gmra.mrb[10].mxu0 %vm245_vm2, %v6455_v21 }
 0xbec   :  { %6468 = vmatprep.mubr.msk.f32.mxu0 %vm245_vm2, %v2144_v28 }
 0xbef   :  { %6469 = vmatmul.mubr.msk.f32.gmra.mrb[12].mxu0 %vm245_vm2, %v6462_v27  ;;  %v5917_v27 = vld [vmem:[#allocation8 + $0x2] ss:$0 sm:$0xff] }
 0xcbe   :  { %v6467_v31 = vpop.f32.mrb[10].mxu0 }
 0xcbf   :  { %v2264_v32 = vadd.f32 %v6467_v31, %v5915_v29  ;;  %v2233_v33 = vpop.f32.mrb[11].mxu0 }
 0xcc0   :  { %v2263_v34 = vadd.f32 %v5915_v29, %v2233_v33 }
 0xcc1   :  { %v2268_v35 = vadd.f32 %v2264_v32, %v7747_v13 }
 0xcc2   :  { %v6470_v36 = vpop.f32.mrb[12].mxu0  ;;  %v2267_v38 = vadd.f32 %v2263_v34, %v7743_v8 }
 0xcc3   :  { %v2266_v39 = vadd.f32 %v6470_v36, %v5915_v29  ;;  %v2243_v40 = vpop.f32.mrb[13].mxu0  ;;  %v2278_v41 = vsel %vm144_vm0, %v2268_v35, 0.0 }
 0xcc4   :  { %v2265_v42 = vadd.f32 %v5915_v29, %v2243_v40  ;;  %2279 = vadd.xlane.f32.xlu0 %v2278_v41  ;;  %v2275_v43 = vsel %vm144_vm0, %v2267_v38, 0.0 }
 0xcc5   :  { %2276 = vadd.xlane.f32.xlu1 %v2275_v43  ;;  %v2270_v44 = vadd.f32 %v2266_v39, %v7753_v15  ;;  %v2493_v43 = vld [vmem:[%s8542_s9 + $0x8] sm:$0xff] }
 0xcc6   :  { %v2269_v45 = vadd.f32 %v2265_v42, %v7743_v8  ;;  %v2492_v42 = vld [vmem:[%s8542_s9] sm:$0xff] }
 0xcc7   :  { %v2284_v46 = vsel %vm144_vm0, %v2270_v44, 0.0 }
 0xcc8   :  { %v2281_v13 = vsel %vm144_vm0, %v2269_v45, 0.0 }
 0xcc9   :  { %2285 = vadd.xlane.f32.xlu1 %v2284_v46  ;;  %2282 = vadd.xlane.f32.xlu0 %v2281_v13  ;;  %v2495_v46 = vld [vmem:[%s8542_s9 + $0x18] sm:$0xff] }
 0xd51   :  { %v2280_v47 = vpop.xlane.xlu0 %2279 }
 0xd52   :  { %v2289_v48 = vmul.f32 0.03125, %v2280_v47  ;;  %v2277_v53 = vpop.xlane.xlu1 %2276  ;;  %v2496_v47 = vld [vmem:[%s8542_s9 + $0x20] sm:$0xff] }
 0xd53   :  { %v2288_v54 = vmul.f32 0.03125, %v2277_v53 }
 0xd54   :  { %v2293_v55 = vsub.f32 %v2268_v35, %v2289_v48  ;;  %v2497_v48 = vld [vmem:[%s8542_s9 + $0x28] sm:$0xff] }
 0xd55   :  { %v2292_v56 = vsub.f32 %v2267_v38, %v2288_v54  ;;  %v6855_v53 = vpack.c.bf16 %v2497_v48, %v2496_v47  ;;  %v2498_v54 = vld [vmem:[%s8542_s9 + $0x30] sm:$0xff] }
 0xd56   :  { %v2286_v18 = vpop.xlane.xlu1 %2285  ;;  %v2283_v20 = vpop.xlane.xlu0 %2282  ;;  %v2297_v25 = vmul.f32 %v2293_v55, %v2293_v55 }
 0xd57   :  { %v2291_v23 = vmul.f32 0.03125, %v2286_v18  ;;  %v2290_v57 = vmul.f32 0.03125, %v2283_v20  ;;  %v2296_v15 = vmul.f32 %v2292_v56, %v2292_v56  ;;  %v5918_v18 = vld [vmem:[%s8541_s8] ss:$0 sm:$0xff] }
 0xd58   :  { %v2303_v8 = vsel %vm144_vm0, %v2297_v25, 0.0 }
 0xd59   :  { %v2295_v58 = vsub.f32 %v2270_v44, %v2291_v23  ;;  %v2294_v50 = vsub.f32 %v2269_v45, %v2290_v57  ;;  %2304 = vadd.xlane.f32.xlu1 %v2303_v8  ;;  %v2300_v59 = vsel %vm144_vm0, %v2296_v15, 0.0  ;;  %v6847_v44 = vpack.c.bf16 %v2493_v43, %v2492_v42  ;;  %v2494_v45 = vld [vmem:[%s8542_s9 + $0x10] sm:$0xff] }
 0xd5a   :  { %2301 = vadd.xlane.f32.xlu0 %v2300_v59  ;;  %v6851_v13 = vpack.c.bf16 %v2495_v46, %v2494_v45 }
 0xd5b   :  { %v2299_v60 = vmul.f32 %v2295_v58, %v2295_v58  ;;  %v2298_v49 = vmul.f32 %v2294_v50, %v2294_v50  ;;  %6848 = vmatprep.subr.bf16.mxu0 %v6847_v44 }
 0xd5c   :  { %6850 = vmatpush3.bf16.msra.mxu0 %v6847_v44 }
 0xd5d   :  { %v2309_v52 = vsel %vm144_vm0, %v2299_v60, 0.0  ;;  %v2306_v61 = vsel %vm144_vm0, %v2298_v49, 0.0  ;;  %6852 = vmatprep.subr.bf16.mxu0 %v6851_v13 }
 0xd5e   :  { %2310 = vadd.xlane.f32.xlu1 %v2309_v52  ;;  %2307 = vadd.xlane.f32.xlu0 %v2306_v61 }
 0xd60   :  { %6854 = vmatpush3.bf16.msra.mxu0 %v6851_v13 }
 0xd61   :  { %6856 = vmatprep.subr.bf16.mxu0 %v6855_v53 }
 0xd64   :  { %6858 = vmatpush3.bf16.msra.mxu0 %v6855_v53 }
 0xde6   :  { %v2305_v3 = vpop.xlane.xlu1 %2304 }
 0xde7   :  { %v2313_v4 = vmul.f32 0.03125, %v2305_v3  ;;  %v2302_v5 = vpop.xlane.xlu0 %2301 }
 0xde8   :  { %v2312_v6 = vmul.f32 0.03125, %v2302_v5 }
 0xde9   :  { %v2317_v7 = vadd.f32 1e-05, %v2313_v4 }
 0xdea   :  { %v2316_v9 = vadd.f32 1e-05, %v2312_v6 }
 0xdeb   :  { %7281 = vrsqrt.f32 %v2317_v7  ;;  %v2311_v10 = vpop.xlane.xlu1 %2310  ;;  %v2308_v11 = vpop.xlane.xlu0 %2307 }
 0xdec   :  { %7283 = vrsqrt.f32 %v2316_v9  ;;  %v2315_v12 = vmul.f32 0.03125, %v2311_v10  ;;  %v2314_v26 = vmul.f32 0.03125, %v2308_v11 }
 0xdee   :  { %v2319_v22 = vadd.f32 1e-05, %v2315_v12  ;;  %v2318_v14 = vadd.f32 1e-05, %v2314_v26 }
 0xdf0   :  { %7285 = vrsqrt.f32 %v2319_v22 }
 0xdf1   :  { %7287 = vrsqrt.f32 %v2318_v14 }
 0xdf5   :  { %v7282_v16 = vpop.eup %7281 }
 0xdf6   :  { %v7284_v19 = vpop.eup %7283  ;;  %v2325_v21 = vmul.f32 %v7282_v16, %v2293_v55  ;;  %v2499_v55 = vld [vmem:[%s8542_s9 + $0x38] sm:$0xff] }
 0xdf7   :  { %v2324_v24 = vmul.f32 %v7284_v19, %v2292_v56  ;;  %v6859_v56 = vpack.c.bf16 %v2499_v55, %v2498_v54 }
 0xdf8   :  { %v2335_v28 = vmul.f32 %v5916_v17, %v2325_v21 }
 0xdf9   :  { %v2334_v29 = vmul.f32 %v5916_v17, %v2324_v24  ;;  %6860 = vmatprep.subr.bf16.mxu0 %v6859_v56 }
 0xdfa   :  { %v7286_v31 = vpop.eup %7285  ;;  %v8045_v35 = vadd.f32 %v5917_v27, %v2335_v28  ;;  %6862 = vmatpush3.bf16.msra.mxu0 %v6859_v56 }
 0xdfb   :  { %v7288_v32 = vpop.eup %7287  ;;  %v8043_v33 = vadd.f32 %v5917_v27, %v2334_v29  ;;  %v2327_v34 = vmul.f32 %v7286_v31, %v2295_v58 }
 0xdfc   :  { %v2326_v36 = vmul.f32 %v7288_v32, %v2294_v50 }
 0xdfd   :  { %6479 = vmatprep.mubr.msk.f32.mxu1 %vm144_vm0, %v8043_v33  ;;  %v2337_v38 = vmul.f32 %v5916_v17, %v2327_v34 }
 0xdfe   :  { %6480 = vmatmul.mubr.msk.f32.vlgmr.msra.gmra.mrb[20].mxu1 %vm144_vm0, %v8045_v35  ;;  %v2336_v39 = vmul.f32 %v5916_v17, %v2326_v36 }
 0xdff   :  { %v8051_v40 = vadd.f32 %v5917_v27, %v2337_v38 }
 0xe00   :  { %v8053_v41 = vadd.f32 %v5917_v27, %v2336_v39  ;;  %v5923_v39 = vld [vmem:[#allocation8 + $0x3] ss:$0 sm:$0xff] }
 0xe02   :  { %6482 = vmatprep.mubr.msk.f32.mxu1 %vm144_vm0, %v8053_v41 }
 0xe03   :  { %6483 = vmatmul.mubr.msk.f32.gmra.mrb[22].mxu1 %vm144_vm0, %v8051_v40 }
 0xed1   :  { %v6481_v20 = vpop.f32.mrb[20].mxu1 }
 0xed2   :  { %v2443_v25 = vadd.f32 %v6481_v20, %v5918_v18  ;;  %v2437_v23 = vpop.f32.mrb[21].mxu1 }
 0xed3   :  { %v2438_v57 = vadd.f32 %v5918_v18, %v2437_v23 }
 0xed4   :  { %v2461_v15 = vmul.f32 0.044715, %v2443_v25  ;;  %v2457_v19 = vmul.f32 0.5, %v2443_v25 }
 0xed5   :  { %v2460_v8 = vmul.f32 0.044715, %v2438_v57  ;;  %v2456_v16 = vmul.f32 0.5, %v2438_v57 }
 0xed6   :  { %v2465_v58 = vmul.f32 %v2461_v15, %v2443_v25  ;;  %v6484_v50 = vpop.f32.mrb[22].mxu1 }
 0xed7   :  { %v2464_v59 = vmul.f32 %v2460_v8, %v2438_v57  ;;  %v2453_v60 = vadd.f32 %v6484_v50, %v5918_v18  ;;  %v2447_v49 = vpop.f32.mrb[23].mxu1 }
 0xed8   :  { %v2469_v52 = vmul.f32 %v2465_v58, %v2443_v25  ;;  %v2448_v61 = vadd.f32 %v5918_v18, %v2447_v49 }
 0xed9   :  { %v2468_v62 = vmul.f32 %v2464_v59, %v2438_v57  ;;  %v2463_v51 = vmul.f32 0.044715, %v2453_v60  ;;  %v2459_v34 = vmul.f32 0.5, %v2453_v60 }
 0xeda   :  { %v2473_v63 = vadd.f32 %v2469_v52, %v2443_v25  ;;  %v2462_v0 = vmul.f32 0.044715, %v2448_v61  ;;  %v2458_v31 = vmul.f32 0.5, %v2448_v61 }
 0xedb   :  { %v2472_v1 = vadd.f32 %v2468_v62, %v2438_v57  ;;  %v2467_v2 = vmul.f32 %v2463_v51, %v2453_v60 }
 0xedc   :  { %v2477_v3 = vmul.f32 0.7978846, %v2473_v63  ;;  %v2466_v4 = vmul.f32 %v2462_v0, %v2448_v61 }
 0xedd   :  { %v2471_v5 = vmul.f32 %v2467_v2, %v2453_v60  ;;  %v2476_v6 = vmul.f32 0.7978846, %v2472_v1 }
 0xede   :  { %7289 = vtanh.f32 %v2477_v3  ;;  %v2470_v7 = vmul.f32 %v2466_v4, %v2448_v61  ;;  %v5930_v3 = vld [vmem:[%s8536_s3 + $0x20] sm:$0xff]  ;;  %v5931_v4 = vld [vmem:[%s8536_s3 + $0x28] sm:$0xff] }
 0xedf   :  { %v2475_v9 = vadd.f32 %v2471_v5, %v2453_v60  ;;  %7291 = vtanh.f32 %v2476_v6  ;;  %v6863_v5 = vpack.c.bf16 %v5931_v4, %v5930_v3  ;;  %v5932_v6 = vld [vmem:[%s8536_s3 + $0x30] sm:$0xff] }
 0xee0   :  { %v2474_v10 = vadd.f32 %v2470_v7, %v2448_v61  ;;  %v5933_v7 = vld [vmem:[%s8536_s3 + $0x38] sm:$0xff] }
 0xee1   :  { %v2479_v11 = vmul.f32 0.7978846, %v2475_v9  ;;  %v6867_v9 = vpack.c.bf16 %v5933_v7, %v5932_v6  ;;  %6864 = vmatprep.subr.bf16.mxu1 %v6863_v5 }
 0xee2   :  { %v2478_v12 = vmul.f32 0.7978846, %v2474_v10  ;;  %6866 = vmatpush3.bf16.msra.mxu1 %v6863_v5 }
 0xee3   :  { %7293 = vtanh.f32 %v2479_v11  ;;  %6868 = vmatprep.subr.bf16.mxu1 %v6867_v9 }
 0xee4   :  { %7295 = vtanh.f32 %v2478_v12 }
 0xee6   :  { %6870 = vmatpush3.bf16.msra.mxu1 %v6867_v9 }
 0xee8   :  { %v7290_v26 = vpop.eup %7289 }
 0xee9   :  { %v7292_v22 = vpop.eup %7291  ;;  %v2485_v14 = vadd.f32 1.0, %v7290_v26 }
 0xeea   :  { %v2484_v17 = vadd.f32 1.0, %v7292_v22 }
 0xeeb   :  { %v2489_v27 = vmul.f32 %v2485_v14, %v2457_v19 }
 0xeec   :  { %v2488_v21 = vmul.f32 %v2484_v17, %v2456_v16 }
 0xeed   :  { %v7294_v24 = vpop.eup %7293 }
 0xeee   :  { %v7296_v28 = vpop.eup %7295  ;;  %6501 = vmatprep.mubr.msk.f32.mxu0 %vm2508_vm6, %v2488_v21  ;;  %v2487_v29 = vadd.f32 1.0, %v7294_v24 }
 0xeef   :  { %6502 = vmatmul.mubr.msk.f32.vlgmr.msra.gmra.mrb[20].mxu0 %vm2508_vm6, %v2489_v27  ;;  %v2486_v32 = vadd.f32 1.0, %v7296_v28 }
 0xef0   :  { %v2491_v38 = vmul.f32 %v2487_v29, %v2459_v34  ;;  %v5928_v29 = vld [vmem:[#allocation8 + $0x4] ss:$0 sm:$0xff] }
 0xef1   :  { %v2490_v36 = vmul.f32 %v2486_v32, %v2458_v31 }
 0xef3   :  { %6504 = vmatprep.mubr.msk.f32.mxu0 %vm2508_vm6, %v2490_v36  ;;  %v5929_v36 = vld [vmem:[#allocation8 + $0x5] ss:$0 sm:$0xff] }
 0xef4   :  { %6505 = vmatmul.mubr.msk.f32.gmra.mrb[22].mxu0 %vm2508_vm6, %v2491_v38 }
 0xfc2   :  { %v6503_v42 = vpop.f32.mrb[20].mxu0 }
 0xfc3   :  { %v2593_v43 = vadd.f32 %v6503_v42, %v5923_v39  ;;  %v2587_v44 = vpop.f32.mrb[21].mxu0 }
 0xfc4   :  { %v2588_v45 = vadd.f32 %v5923_v39, %v2587_v44 }
 0xfc5   :  { %v2607_v46 = vadd.f32 %v2593_v43, %v8045_v35 }
 0xfc6   :  { %v2606_v13 = vadd.f32 %v2588_v45, %v8043_v33 }
 0xfc7   :  { %v6506_v47 = vpop.f32.mrb[22].mxu0  ;;  %v2617_v48 = vsel %vm144_vm0, %v2607_v46, 0.0 }
 0xfc8   :  { %v2603_v53 = vadd.f32 %v6506_v47, %v5923_v39  ;;  %v2597_v54 = vpop.f32.mrb[23].mxu0  ;;  %2618 = vadd.xlane.f32.xlu1 %v2617_v48  ;;  %v2614_v55 = vsel %vm144_vm0, %v2606_v13, 0.0 }
 0xfc9   :  { %v2598_v56 = vadd.f32 %v5923_v39, %v2597_v54  ;;  %2615 = vadd.xlane.f32.xlu0 %v2614_v55  ;;  %v5935_v55 = vld [vmem:[%s8537_s4 + $0x1] ss:$0 sm:$0xff] }
 0xfca   :  { %v2609_v18 = vadd.f32 %v2603_v53, %v8051_v40 }
 0xfcb   :  { %v2608_v20 = vadd.f32 %v2598_v56, %v8053_v41 }
 0xfcc   :  { %v2623_v25 = vsel %vm144_vm0, %v2609_v18, 0.0 }
 0xfcd   :  { %2624 = vadd.xlane.f32.xlu1 %v2623_v25  ;;  %v2620_v35 = vsel %vm144_vm0, %v2608_v20, 0.0 }
 0xfce   :  { %2621 = vadd.xlane.f32.xlu0 %v2620_v35 }
0x1055   :  { %v2619_v33 = vpop.xlane.xlu1 %2618 }
0x1056   :  { %v2627_v23 = vmul.f32 0.03125, %v2619_v33  ;;  %v2616_v57 = vpop.xlane.xlu0 %2615 }
0x1057   :  { %v2626_v15 = vmul.f32 0.03125, %v2616_v57 }
0x1058   :  { %v2631_v8 = vsub.f32 %v2607_v46, %v2627_v23 }
0x1059   :  { %v2630_v58 = vsub.f32 %v2606_v13, %v2626_v15 }
0x105a   :  { %v2625_v50 = vpop.xlane.xlu1 %2624  ;;  %v2635_v59 = vmul.f32 %v2631_v8, %v2631_v8 }
0x105b   :  { %v2629_v60 = vmul.f32 0.03125, %v2625_v50  ;;  %v2622_v49 = vpop.xlane.xlu0 %2621  ;;  %v2634_v52 = vmul.f32 %v2630_v58, %v2630_v58 }
0x105c   :  { %v2628_v40 = vmul.f32 0.03125, %v2622_v49  ;;  %v2641_v41 = vsel %vm144_vm0, %v2635_v59, 0.0 }
0x105d   :  { %v2633_v61 = vsub.f32 %v2609_v18, %v2629_v60  ;;  %2642 = vadd.xlane.f32.xlu1 %v2641_v41  ;;  %v2638_v62 = vsel %vm144_vm0, %v2634_v52, 0.0 }
0x105e   :  { %v2632_v51 = vsub.f32 %v2608_v20, %v2628_v40  ;;  %2639 = vadd.xlane.f32.xlu0 %v2638_v62 }
0x105f   :  { %v2637_v63 = vmul.f32 %v2633_v61, %v2633_v61 }
0x1060   :  { %v2636_v0 = vmul.f32 %v2632_v51, %v2632_v51 }
0x1061   :  { %v2647_v1 = vsel %vm144_vm0, %v2637_v63, 0.0 }
0x1062   :  { %2648 = vadd.xlane.f32.xlu1 %v2647_v1  ;;  %v2644_v2 = vsel %vm144_vm0, %v2636_v0, 0.0 }
0x1063   :  { %2645 = vadd.xlane.f32.xlu0 %v2644_v2 }
0x10ea   :  { %v2643_v10 = vpop.xlane.xlu1 %2642 }
0x10eb   :  { %v2651_v11 = vmul.f32 0.03125, %v2643_v10  ;;  %v2640_v12 = vpop.xlane.xlu0 %2639 }
0x10ec   :  { %v2650_v26 = vmul.f32 0.03125, %v2640_v12 }
0x10ed   :  { %v2655_v22 = vadd.f32 1e-05, %v2651_v11 }
0x10ee   :  { %v2654_v14 = vadd.f32 1e-05, %v2650_v26 }
0x10ef   :  { %7297 = vrsqrt.f32 %v2655_v22  ;;  %v2649_v16 = vpop.xlane.xlu1 %2648 }
0x10f0   :  { %7299 = vrsqrt.f32 %v2654_v14  ;;  %v2653_v17 = vmul.f32 0.03125, %v2649_v16  ;;  %v2646_v19 = vpop.xlane.xlu0 %2645 }
0x10f1   :  { %v2652_v21 = vmul.f32 0.03125, %v2646_v19 }
0x10f2   :  { %v2657_v24 = vadd.f32 1e-05, %v2653_v17 }
0x10f3   :  { %v2656_v27 = vadd.f32 1e-05, %v2652_v21 }
0x10f4   :  { %7301 = vrsqrt.f32 %v2657_v24 }
0x10f5   :  { %7303 = vrsqrt.f32 %v2656_v27 }
0x10f9   :  { %v7298_v28 = vpop.eup %7297 }
0x10fa   :  { %v7300_v31 = vpop.eup %7299  ;;  %v2663_v32 = vmul.f32 %v7298_v28, %v2631_v8 }
0x10fb   :  { %v2662_v34 = vmul.f32 %v7300_v31, %v2630_v58 }
0x10fc   :  { %v2673_v38 = vmul.f32 %v5928_v29, %v2663_v32 }
0x10fd   :  { %v2672_v39 = vmul.f32 %v5928_v29, %v2662_v34 }
0x10fe   :  { %v7302_v42 = vpop.eup %7301  ;;  %v8116_v46 = vadd.f32 %v5929_v36, %v2673_v38 }
0x10ff   :  { %v7304_v43 = vpop.eup %7303  ;;  %v8114_v44 = vadd.f32 %v5929_v36, %v2672_v39  ;;  %v2665_v45 = vmul.f32 %v7302_v42, %v2633_v61 }
0x1100   :  { %v2664_v13 = vmul.f32 %v7304_v43, %v2632_v51 }
0x1101   :  { %6515 = vmatprep.mubr.msk.f32.mxu1 %vm144_vm0, %v8114_v44  ;;  %v2675_v47 = vmul.f32 %v5928_v29, %v2665_v45 }
0x1102   :  { %6516 = vmatmul.mubr.msk.f32.vlgmr.msra.gmra.mrb[24].mxu1 %vm144_vm0, %v8116_v46  ;;  %v2674_v48 = vmul.f32 %v5928_v29, %v2664_v13 }
0x1103   :  { %v8124_v54 = vadd.f32 %v5929_v36, %v2675_v47 }
0x1104   :  { %v8122_v53 = vadd.f32 %v5929_v36, %v2674_v48 }
0x1106   :  { %6518 = vmatprep.mubr.msk.f32.mxu1 %vm144_vm0, %v8122_v53 }
0x1107   :  { %6519 = vmatmul.mubr.msk.f32.gmra.mrb[26].mxu1 %vm144_vm0, %v8124_v54 }
0x11d5   :  { %v6517_v56 = vpop.f32.mrb[24].mxu1 }
0x11d6   :  { %v8133_v18 = vadd.f32 %v6517_v56, %v5935_v55  ;;  %v2777_v20 = vpop.f32.mrb[25].mxu1 }
0x11d7   :  { %v8135_v25 = vadd.f32 %v5935_v55, %v2777_v20 }
0x11d9   :  { %6525 = vmatprep.mubr.msk.f32.mxu1 %vm245_vm2, %v8135_v25  ;;  %v8141_v35 = vpack.i.bf16 %v8133_v18, %v8135_v25 }
0x11da   :  { %v6520_v33 = vpop.f32.mrb[26].mxu1 }
0x11db   :  { %v8143_v23 = vadd.f32 %v6520_v33, %v5935_v55  ;;  %v2787_v57 = vpop.f32.mrb[27].mxu1  ;;  %7138 = vrot.lane.b32.xlu0 %v8141_v35, %s7556_s22 }
0x11dc   :  { %v8147_v15 = vadd.f32 %v5935_v55, %v2787_v57 }
0x11de   :  { %6532 = vmatprep.mubr.msk.f32.mxu0 %vm245_vm2, %v8147_v15  ;;  %v8153_v8 = vpack.i.bf16 %v8143_v23, %v8147_v15 }
0x11e0   :  { %7143 = vrot.lane.b32.xlu1 %v8153_v8, %s7556_s22 }
0x124d   :  { %v7139_v58 = vpop.permute.xlu0 %7138 }
0x124e   :  { %v7141_v50 = vunpack.i.h.bf16 %v7139_v58  ;;  %v7140_v59 = vunpack.i.l.bf16 %v7139_v58 }
0x1250   :  { %v6871_v60 = vpack.c.bf16 %v7141_v50, %v7140_v59 }
0x1252   :  { %v7144_v49 = vpop.permute.xlu1 %7143  ;;  %6873 = vmatprep.subr.msk.bf16.mxu1 %vm7786_vm3, %v6871_v60 }
0x1253   :  { %v7146_v52 = vunpack.i.h.bf16 %v7144_v49  ;;  %v7145_v40 = vunpack.i.l.bf16 %v7144_v49  ;;  %6876 = vmatpush3.bf16.xpose.msk.msra.mxu1 %vm7786_vm3, %v6871_v60 }
0x1255   :  { %v6877_v41 = vpack.c.bf16 %v7146_v52, %v7145_v40 }
0x1257   :  { %6879 = vmatprep.subr.msk.bf16.mxu0 %vm7786_vm3, %v6877_v41 }
0x1258   :  { %6882 = vmatpush3.bf16.xpose.msk.msra.mxu0 %vm7786_vm3, %v6877_v41 }
0x125a   :  { %6526 = vmatmul.mubr.msk.f32.vlgmr.msra.gmra.mrb[28].mxu1 %vm245_vm2, %v8133_v18 }
0x125f   :  { %6533 = vmatmul.mubr.msk.f32.vlgmr.msra.gmra.mrb[24].mxu0 %vm245_vm2, %v8143_v23 }
0x132d   :  { %v6527_v61 = vpop.f32.mrb[28].mxu1 }
0x132e   :  { %v2975_v62 = vsel %vm132_vm4, %v6527_v61, -1e+30  ;;  %v2876_v51 = vpop.f32.mrb[29].mxu1 }
0x132f   :  { %v2974_v63 = vsel %vm132_vm4, %v2876_v51, -1e+30  ;;  %v2981_v0 = vsel %vm422_vm5, %v2975_v62, -inf }
0x1330   :  { %2982 = vmax.xlane.f32.xlu0 %v2981_v0  ;;  %v2978_v1 = vsel %vm422_vm5, %v2974_v63, -inf }
0x1331   :  { %2979 = vmax.xlane.f32.xlu1 %v2978_v1 }
0x1332   :  { %v6534_v2 = vpop.f32.mrb[24].mxu0 }
0x1333   :  { %v2977_v3 = vsel %vm132_vm4, %v6534_v2, -1e+30  ;;  %v2965_v4 = vpop.f32.mrb[25].mxu0 }
0x1334   :  { %v2987_v5 = vsel %vm422_vm5, %v2977_v3, -inf  ;;  %v2976_v6 = vsel %vm132_vm4, %v2965_v4, -1e+30 }
0x1335   :  { %v2984_v7 = vsel %vm422_vm5, %v2976_v6, -inf  ;;  %2988 = vmax.xlane.f32.xlu1 %v2987_v5 }
0x1336   :  { %2985 = vmax.xlane.f32.xlu0 %v2984_v7 }
0x13bd   :  { %v2983_v9 = vpop.xlane.xlu0 %2982 }
0x13be   :  { %v2991_v10 = vsub.f32 %v2975_v62, %v2983_v9  ;;  %v2980_v11 = vpop.xlane.xlu1 %2979 }
0x13bf   :  { %v2990_v12 = vsub.f32 %v2974_v63, %v2980_v11 }
0x13c0   :  { %v2996_v26 = vmul.f32 1.442695, %v2991_v10 }
0x13c1   :  { %v2994_v22 = vmul.f32 1.442695, %v2990_v12 }
0x13c2   :  { %7305 = vpow2.f32 %v2996_v26  ;;  %v2989_v14 = vpop.xlane.xlu1 %2988 }
0x13c3   :  { %7307 = vpow2.f32 %v2994_v22  ;;  %v2986_v16 = vpop.xlane.xlu0 %2985  ;;  %v2993_v17 = vsub.f32 %v2977_v3, %v2989_v14 }
0x13c4   :  { %v2992_v19 = vsub.f32 %v2976_v6, %v2986_v16 }
0x13c5   :  { %v3000_v21 = vmul.f32 1.442695, %v2993_v17 }
0x13c6   :  { %v2998_v24 = vmul.f32 1.442695, %v2992_v19 }
0x13c7   :  { %7309 = vpow2.f32 %v3000_v21 }
0x13c8   :  { %7311 = vpow2.f32 %v2998_v24 }
0x13cc   :  { %v7306_v27 = vpop.eup %7305 }
0x13cd   :  { %v7308_v28 = vpop.eup %7307  ;;  %v3005_v29 = vsel %vm422_vm5, %v7306_v27, 0.0 }
0x13ce   :  { %3006 = vadd.xlane.f32.xlu1 %v3005_v29  ;;  %v3002_v31 = vsel %vm422_vm5, %v7308_v28, 0.0 }
0x13cf   :  { %3003 = vadd.xlane.f32.xlu0 %v3002_v31 }
0x13d1   :  { %v7310_v32 = vpop.eup %7309 }
0x13d2   :  { %v7312_v34 = vpop.eup %7311  ;;  %v3011_v36 = vsel %vm422_vm5, %v7310_v32, 0.0 }
0x13d3   :  { %v3008_v38 = vsel %vm422_vm5, %v7312_v34, 0.0  ;;  %3012 = vadd.xlane.f32.xlu1 %v3011_v36 }
0x13d4   :  { %3009 = vadd.xlane.f32.xlu0 %v3008_v38 }
0x13e4   :  { %7153 = vrot.lane.b32.xlu1 %v8153_v8, %s7551_s18 }
0x13e8   :  { %7158 = vrot.lane.b32.xlu1 %v8153_v8, %s7557_s30 }
0x13ea   :  { %7148 = vrot.lane.b32.xlu0 %v8141_v35, %s7551_s18 }
0x13ec   :  { %3289 = vrot.lane.b32.xlu1 %v8147_v15, %s7558_s0 }
0x13ee   :  { %3291 = vrot.lane.b32.xlu0 %v8143_v23, %s7558_s0 }
0x13f0   :  { %7163 = vrot.lane.b32.xlu1 %v8141_v35, %s7557_s30 }
0x13f2   :  { %3198 = vrot.lane.b32.xlu0 %v8135_v25, %s7558_s0 }
0x13f4   :  { %3200 = vrot.lane.b32.xlu1 %v8133_v18, %s7558_s0 }
0x145b   :  { %v3007_v39 = vpop.xlane.xlu1 %3006 }
0x145c   :  { %v3004_v42 = vpop.xlane.xlu0 %3003 }
0x145d   :  { %7313 = vrcp.f32 %v3004_v42 }
0x145e   :  { %7315 = vrcp.f32 %v3007_v39 }
0x1460   :  { %v3013_v43 = vpop.xlane.xlu1 %3012 }
0x1461   :  { %v3010_v45 = vpop.xlane.xlu0 %3009 }
0x1462   :  { %7317 = vrcp.f32 %v3010_v45 }
0x1463   :  { %7319 = vrcp.f32 %v3013_v43 }
0x1464   :  { %v7154_v13 = vpop.permute.xlu1 %7153 }
0x1465   :  { %v7149_v47 = vpop.permute.xlu0 %7148  ;;  %v7156_v56 = vunpack.i.h.bf16 %v7154_v13  ;;  %v7155_v20 = vunpack.i.l.bf16 %v7154_v13 }
0x1466   :  { %v7151_v48 = vunpack.i.h.bf16 %v7149_v47  ;;  %v7150_v55 = vunpack.i.l.bf16 %v7149_v47 }
0x1467   :  { %v7314_v33 = vpop.eup %7313  ;;  %v6887_v49 = vpack.c.bf16 %v7156_v56, %v7155_v20 }
0x1468   :  { %v6883_v57 = vpack.c.bf16 %v7151_v48, %v7150_v55  ;;  %v7159_v58 = vpop.permute.xlu1 %7158  ;;  %v3018_v50 = vmul.f32 %v7314_v33, %v7308_v28  ;;  %v7316_v59 = vpop.eup %7315 }
0x1469   :  { %v3292_v60 = vpop.permute.xlu0 %3291  ;;  %v7161_v52 = vunpack.i.h.bf16 %v7159_v58  ;;  %v7160_v40 = vunpack.i.l.bf16 %v7159_v58  ;;  %v3019_v61 = vmul.f32 %v7316_v59, %v7306_v27 }
0x146a   :  { %6884 = vmatprep.subr.bf16.mxu1 %v6883_v57  ;;  %6539 = vmatprep.mubr.msk.f32.mxu1 %vm422_vm5, %v3018_v50 }
0x146b   :  { %6886 = vmatpush3.bf16.msra.mxu1 %v6883_v57  ;;  %v6897_v1 = vpack.c.bf16 %v7161_v52, %v7160_v40 }
0x146c   :  { %v7318_v41 = vpop.eup %7317  ;;  %6888 = vmatprep.subr.bf16.mxu1 %v6887_v49  ;;  %v3290_v62 = vpop.permute.xlu1 %3289 }
0x146d   :  { %v7320_v51 = vpop.eup %7319  ;;  %v3199_v63 = vpop.permute.xlu0 %3198  ;;  %v3020_v0 = vmul.f32 %v7318_v41, %v7312_v34 }
0x146e   :  { %6540 = vmatmul.mubr.msk.f32.vlgmr.msra.gmra.mrb[30].mxu1 %vm422_vm5, %v3019_v61  ;;  %6553 = vmatprep.mubr.msk.f32.mxu0 %vm245_vm2, %v3199_v63  ;;  %v3021_v2 = vmul.f32 %v7320_v51, %v7310_v32 }
0x146f   :  { %6890 = vmatpush3.bf16.msra.mxu1 %v6887_v49  ;;  %6546 = vmatprep.mubr.msk.f32.mxu1 %vm422_vm5, %v3020_v0 }
0x1470   :  { %6899 = vmatprep.subr.msk.bf16.mxu1 %vm7786_vm3, %v6897_v1  ;;  %v7164_v3 = vpop.permute.xlu1 %7163 }
0x1471   :  { %v7166_v4 = vunpack.i.h.bf16 %v7164_v3  ;;  %v7165_v5 = vunpack.i.l.bf16 %v7164_v3 }
0x1472   :  { %6547 = vmatmul.mubr.msk.f32.vlgmr.msra.gmra.mrb[32].mxu1 %vm422_vm5, %v3021_v2 }
0x1473   :  { %v6891_v6 = vpack.c.bf16 %v7166_v4, %v7165_v5  ;;  %6560 = vmatprep.mubr.msk.f32.mxu1 %vm245_vm2, %v3290_v62 }
0x1474   :  { %v3201_v7 = vpop.permute.xlu1 %3200 }
0x1475   :  { %6893 = vmatprep.subr.msk.bf16.mxu0 %vm7786_vm3, %v6891_v6 }
0x1476   :  { %6896 = vmatpush3.bf16.xpose.msk.msra.mxu0 %vm7786_vm3, %v6891_v6 }
0x1478   :  { %6902 = vmatpush3.bf16.xpose.msk.msra.mxu1 %vm7786_vm3, %v6897_v1 }
0x147d   :  { %6554 = vmatmul.mubr.msk.f32.vlgmr.msra.gmra.mrb[26].mxu0 %vm245_vm2, %v3201_v7 }
0x147f   :  { %6561 = vmatmul.mubr.msk.f32.vlgmr.msra.gmra.mrb[34].mxu1 %vm245_vm2, %v3292_v60 }
0x1541   :  { %v8217_v9 = vpop.f32.mrb[30].mxu1 }
0x1542   :  { %v8219_v10 = vpop.f32.mrb[31].mxu1 }
0x1545   :  { %v8221_v11 = vpop.f32.mrb[32].mxu1 }
0x1546   :  { %v8223_v12 = vpop.f32.mrb[33].mxu1 }
0x1550   :  { %v6555_v26 = vpop.f32.mrb[26].mxu0 }
0x1551   :  { %v3280_v22 = vpop.f32.mrb[27].mxu0  ;;  %v3381_v60 = vsel %vm132_vm4, %v6555_v26, -1e+30 }
0x1552   :  { %v6562_v14 = vpop.f32.mrb[34].mxu1  ;;  %v3380_v27 = vsel %vm132_vm4, %v3280_v22, -1e+30  ;;  %v3387_v49 = vsel %vm422_vm5, %v3381_v60, -inf }
0x1553   :  { %v3383_v16 = vsel %vm132_vm4, %v6562_v14, -1e+30  ;;  %v3371_v17 = vpop.f32.mrb[35].mxu1  ;;  %v3384_v28 = vsel %vm422_vm5, %v3380_v27, -inf }
0x1554   :  { %v3393_v19 = vsel %vm422_vm5, %v3383_v16, -inf  ;;  %v3382_v21 = vsel %vm132_vm4, %v3371_v17, -1e+30 }
0x1555   :  { %3394 = vmax.xlane.f32.xlu1 %v3393_v19  ;;  %v3390_v24 = vsel %vm422_vm5, %v3382_v21, -inf }
0x1556   :  { %3391 = vmax.xlane.f32.xlu0 %v3390_v24 }
0x1566   :  { %7173 = vrot.lane.b32.xlu1 %v8141_v35, %s7560_s16 }
0x156a   :  { %7178 = vrot.lane.b32.xlu1 %v8153_v8, %s7560_s16 }
0x156e   :  { %3798 = vrot.lane.b32.xlu1 %v8135_v25, %s7561_s19 }
0x1572   :  { %3889 = vrot.lane.b32.xlu1 %v8147_v15, %s7561_s19 }
0x1596   :  { %3385 = vmax.xlane.f32.xlu1 %v3384_v28 }
0x15a7   :  { %7183 = vrot.lane.b32.xlu1 %v8141_v35, %s7559_s17 }
0x15e2   :  { %v3395_v29 = vpop.xlane.xlu1 %3394 }
0x15e3   :  { %v3399_v31 = vsub.f32 %v3383_v16, %v3395_v29  ;;  %v3392_v32 = vpop.xlane.xlu0 %3391 }
0x15e4   :  { %v3398_v34 = vsub.f32 %v3382_v21, %v3392_v32 }
0x15e5   :  { %v3406_v36 = vmul.f32 1.442695, %v3399_v31 }
0x15e6   :  { %v3404_v38 = vmul.f32 1.442695, %v3398_v34  ;;  %v7174_v13 = vpop.permute.xlu1 %7173 }
0x15e7   :  { %7321 = vpow2.f32 %v3406_v36  ;;  %v7176_v51 = vunpack.i.h.bf16 %v7174_v13  ;;  %v7175_v63 = vunpack.i.l.bf16 %v7174_v13 }
0x15e8   :  { %7323 = vpow2.f32 %v3404_v38 }
0x15e9   :  { %v6911_v3 = vpack.c.bf16 %v7176_v51, %v7175_v63 }
0x15ea   :  { %v7179_v47 = vpop.permute.xlu1 %7178 }
0x15eb   :  { %v7181_v26 = vunpack.i.h.bf16 %v7179_v47  ;;  %v7180_v22 = vunpack.i.l.bf16 %v7179_v47 }
0x15ed   :  { %v6917_v14 = vpack.c.bf16 %v7181_v26, %v7180_v22 }
0x15ee   :  { %v3799_v48 = vpop.permute.xlu1 %3798 }
0x15f1   :  { %v7322_v39 = vpop.eup %7321 }
0x15f2   :  { %v3417_v42 = vsel %vm422_vm5, %v7322_v39, 0.0  ;;  %v7324_v43 = vpop.eup %7323  ;;  %v3890_v55 = vpop.permute.xlu1 %3889 }
0x15f3   :  { %3418 = vadd.xlane.f32.xlu0 %v3417_v42  ;;  %v3414_v45 = vsel %vm422_vm5, %v7324_v43, 0.0 }
0x15f7   :  { %3415 = vadd.xlane.f32.xlu0 %v3414_v45 }
0x160d   :  { %7168 = vrot.lane.b32.xlu0 %v8153_v8, %s7559_s17 }
0x1611   :  { %3800 = vrot.lane.b32.xlu0 %v8133_v18, %s7561_s19 }
0x1615   :  { %3891 = vrot.lane.b32.xlu0 %v8143_v23, %s7561_s19 }
0x1623   :  { %v3386_v56 = vpop.xlane.xlu1 %3385 }
0x1624   :  { %v3396_v20 = vsub.f32 %v3380_v27, %v3386_v56 }
0x1626   :  { %v3400_v33 = vmul.f32 1.442695, %v3396_v20 }
0x1627   :  { %v7184_v57 = vpop.permute.xlu1 %7183 }
0x1628   :  { %v7186_v58 = vunpack.i.h.bf16 %v7184_v57  ;;  %v7185_v50 = vunpack.i.l.bf16 %v7184_v57  ;;  %7325 = vpow2.f32 %v3400_v33 }
0x162a   :  { %v6903_v59 = vpack.c.bf16 %v7186_v58, %v7185_v50 }
0x162c   :  { %6904 = vmatprep.subr.bf16.mxu0 %v6903_v59 }
0x162d   :  { %6906 = vmatpush3.bf16.msra.mxu0 %v6903_v59  ;;  %v5965_v59 = vld [vmem:[%s8538_s5 + $0x28] sm:$0xff] }
0x162e   :  { %6577 = vmatprep.subr.mxu0 %v5965_v59 }
0x1632   :  { %v7326_v52 = vpop.eup %7325 }
0x1633   :  { %v3408_v40 = vsel %vm422_vm5, %v7326_v52, 0.0 }
0x1634   :  { %3388 = vmax.xlane.f32.xlu0 %v3387_v49 }
0x1638   :  { %3409 = vadd.xlane.f32.xlu0 %v3408_v40 }
0x1680   :  { %v3419_v41 = vpop.xlane.xlu0 %3418 }
0x1681   :  { %7327 = vrcp.f32 %v3419_v41 }
0x1684   :  { %v3416_v61 = vpop.xlane.xlu0 %3415 }
0x1685   :  { %7329 = vrcp.f32 %v3416_v61 }
0x1688   :  { %v7169_v62 = vpop.permute.xlu0 %7168 }
0x1689   :  { %v7171_v0 = vunpack.i.h.bf16 %v7169_v62  ;;  %v7170_v1 = vunpack.i.l.bf16 %v7169_v62 }
0x168b   :  { %v6907_v2 = vpack.c.bf16 %v7171_v0, %v7170_v1  ;;  %v7328_v4 = vpop.eup %7327 }
0x168c   :  { %v3427_v7 = vmul.f32 %v7328_v4, %v7322_v39  ;;  %v3801_v16 = vpop.permute.xlu0 %3800 }
0x168d   :  { %6908 = vmatprep.subr.bf16.mxu1 %v6907_v2 }
0x168e   :  { %6910 = vmatpush3.bf16.msra.mxu1 %v6907_v2 }
0x168f   :  { %v7330_v5 = vpop.eup %7329  ;;  %6913 = vmatprep.subr.msk.bf16.mxu1 %vm7786_vm3, %v6911_v3 }
0x1690   :  { %v3426_v6 = vmul.f32 %v7330_v5, %v7324_v43  ;;  %v3892_v17 = vpop.permute.xlu0 %3891 }
0x1692   :  { %6574 = vmatprep.mubr.msk.f32.mxu1 %vm422_vm5, %v3426_v6 }
0x1693   :  { %6575 = vmatmul.mubr.msk.f32.vlgmr.msra.gmra.mrb[36].mxu1 %vm422_vm5, %v3427_v7 }
0x1694   :  { %6597 = vmatprep.mubr.msk.f32.mxu1 %vm245_vm2, %v3799_v48 }
0x1697   :  { %6916 = vmatpush3.bf16.xpose.msk.msra.mxu1 %vm7786_vm3, %v6911_v3 }
0x1698   :  { %6919 = vmatprep.subr.msk.bf16.mxu1 %vm7786_vm3, %v6917_v14 }
0x169e   :  { %6598 = vmatmul.mubr.msk.f32.vlgmr.msra.gmra.mrb[38].mxu1 %vm245_vm2, %v3801_v16 }
0x169f   :  { %6922 = vmatpush3.bf16.xpose.msk.msra.mxu1 %vm7786_vm3, %v6917_v14  ;;  %6604 = vmatprep.mubr.msk.f32.mxu1 %vm245_vm2, %v3890_v55 }
0x16a6   :  { %6605 = vmatmul.mubr.msk.f32.vlgmr.msra.gmra.mrb[40].mxu1 %vm245_vm2, %v3892_v17 }
0x16c1   :  { %v3389_v19 = vpop.xlane.xlu0 %3388 }
0x16c2   :  { %v3397_v21 = vsub.f32 %v3381_v60, %v3389_v19  ;;  %v5952_v60 = vld [vmem:[%s8538_s5 + $0x20] sm:$0xff] }
0x16c4   :  { %v3402_v24 = vmul.f32 1.442695, %v3397_v21 }
0x16c5   :  { %v3410_v27 = vpop.xlane.xlu0 %3409 }
0x16c6   :  { %7331 = vpow2.f32 %v3402_v24 }
0x16c7   :  { %7333 = vrcp.f32 %v3410_v27 }
0x16d0   :  { %v7332_v28 = vpop.eup %7331 }
0x16d1   :  { %v7334_v29 = vpop.eup %7333  ;;  %v3411_v31 = vsel %vm422_vm5, %v7332_v28, 0.0 }
0x16d2   :  { %3412 = vadd.xlane.f32.xlu0 %v3411_v31  ;;  %v3424_v32 = vmul.f32 %v7334_v29, %v7326_v52 }
0x16d4   :  { %6567 = vmatprep.mubr.msk.f32.mxu0 %vm422_vm5, %v3424_v32 }
0x175f   :  { %v3413_v34 = vpop.xlane.xlu0 %3412 }
0x1760   :  { %7335 = vrcp.f32 %v3413_v34 }
0x1766   :  { %v8272_v36 = vpop.f32.mrb[36].mxu1 }
0x1767   :  { %v3593_v38 = vpop.f32.mrb[37].mxu1 }
0x176a   :  { %v7336_v39 = vpop.eup %7335 }
0x176b   :  { %v3425_v42 = vmul.f32 %v7336_v39, %v7332_v28 }
0x176d   :  { %6568 = vmatmul.mubr.msk.f32.vlgmr.msra.gmra.mrb[28].mxu0 %vm422_vm5, %v3425_v42 }
0x176e   :  { %6578 = vmatpush3.msra.mxu0 %v5965_v59 }
0x176f   :  { %6585 = vmatprep.subr.mxu0 %v5952_v60 }
0x1771   :  { %v6599_v43 = vpop.f32.mrb[38].mxu1 }
0x1772   :  { %v3981_v45 = vsel %vm132_vm4, %v6599_v43, -1e+30  ;;  %v3880_v13 = vpop.f32.mrb[39].mxu1 }
0x1773   :  { %v3987_v47 = vsel %vm422_vm5, %v3981_v45, -inf  ;;  %v3980_v48 = vsel %vm132_vm4, %v3880_v13, -1e+30 }
0x1774   :  { %3988 = vmax.xlane.f32.xlu0 %v3987_v47  ;;  %v3984_v55 = vsel %vm422_vm5, %v3980_v48, -inf }
0x1778   :  { %3985 = vmax.xlane.f32.xlu0 %v3984_v55 }
0x1779   :  { %v6606_v56 = vpop.f32.mrb[40].mxu1 }
0x177a   :  { %v3971_v20 = vpop.f32.mrb[41].mxu1  ;;  %v3983_v58 = vsel %vm132_vm4, %v6606_v56, -1e+30 }
0x177b   :  { %v3982_v33 = vsel %vm132_vm4, %v3971_v20, -1e+30  ;;  %v3993_v50 = vsel %vm422_vm5, %v3983_v58, -inf }
0x177c   :  { %v3990_v57 = vsel %vm422_vm5, %v3982_v33, -inf }
0x177d   :  { %3991 = vmax.xlane.f32.xlu0 %v3990_v57 }
0x1781   :  { %3994 = vmax.xlane.f32.xlu0 %v3993_v50 }
0x1801   :  { %v3989_v49 = vpop.xlane.xlu0 %3988 }
0x1802   :  { %v3997_v52 = vsub.f32 %v3981_v45, %v3989_v49 }
0x1804   :  { %v4002_v40 = vmul.f32 1.442695, %v3997_v52 }
0x1805   :  { %v3986_v41 = vpop.xlane.xlu0 %3985 }
0x1806   :  { %7337 = vpow2.f32 %v4002_v40  ;;  %v3996_v61 = vsub.f32 %v3980_v48, %v3986_v41 }
0x1808   :  { %v4000_v62 = vmul.f32 1.442695, %v3996_v61 }
0x180a   :  { %7339 = vpow2.f32 %v4000_v62  ;;  %v3992_v51 = vpop.xlane.xlu0 %3991 }
0x180b   :  { %v3998_v63 = vsub.f32 %v3982_v33, %v3992_v51 }
0x180d   :  { %v4004_v3 = vmul.f32 1.442695, %v3998_v63 }
0x180e   :  { %v3995_v0 = vpop.xlane.xlu0 %3994 }
0x180f   :  { %v3999_v1 = vsub.f32 %v3983_v58, %v3995_v0 }
0x1810   :  { %v8293_v2 = vpop.eup %7337 }
0x1811   :  { %v4006_v4 = vmul.f32 1.442695, %v3999_v1  ;;  %v4011_v5 = vsel %vm422_vm5, %v8293_v2, 0.0 }
0x1812   :  { %4012 = vadd.xlane.f32.xlu0 %v4011_v5 }
0x1813   :  { %7341 = vpow2.f32 %v4006_v4 }
0x1814   :  { %v7340_v6 = vpop.eup %7339  ;;  %7343 = vpow2.f32 %v4004_v3 }
0x1815   :  { %v4008_v7 = vsel %vm422_vm5, %v7340_v6, 0.0 }
0x1816   :  { %4009 = vadd.xlane.f32.xlu1 %v4008_v7 }
0x181d   :  { %v7342_v26 = vpop.eup %7341 }
0x181e   :  { %v4017_v22 = vsel %vm422_vm5, %v7342_v26, 0.0  ;;  %v7344_v14 = vpop.eup %7343 }
0x181f   :  { %4018 = vadd.xlane.f32.xlu0 %v4017_v22  ;;  %v4014_v16 = vsel %vm422_vm5, %v7344_v14, 0.0 }
0x1823   :  { %4015 = vadd.xlane.f32.xlu0 %v4014_v16 }
0x1827   :  { %7193 = vrot.lane.b32.xlu1 %v8153_v8, %s7562_s27 }
0x182b   :  { %4398 = vrot.lane.b32.xlu1 %v8143_v23, %s7563_s28 }
0x1839   :  { %7188 = vrot.lane.b32.xlu0 %v8141_v35, %s7562_s27 }
0x183d   :  { %7198 = vrot.lane.b32.xlu0 %v8141_v35, %s7564_s6 }
0x1840   :  { %v6569_v17 = vpop.f32.mrb[28].mxu0 }
0x1841   :  { %v3506_v19 = vpop.f32.mrb[29].mxu0  ;;  %7203 = vrot.lane.b32.xlu0 %v8153_v8, %s7564_s6 }
0x1842   :  { %6579 = vmatprep.mubr.msk.f32.mxu0 %vm245_vm2, %v3506_v19 }
0x1843   :  { %6580 = vmatmul.mubr.msk.f32.vlgmr.msra.gmra.mrb[30].mxu0 %vm245_vm2, %v6569_v17 }
0x1844   :  { %6582 = vmatprep.mubr.msk.f32.mxu0 %vm245_vm2, %v3593_v38  ;;  %6586 = vmatpush3.msra.mxu0 %v5952_v60 }
0x1845   :  { %4305 = vrot.lane.b32.xlu0 %v8135_v25, %s7563_s28 }
0x1847   :  { %6583 = vmatmul.mubr.msk.f32.gmra.mrb[32].mxu0 %vm245_vm2, %v8272_v36  ;;  %v5986_v36 = vld [vmem:[%s8538_s5 + $0x30] sm:$0xff] }
0x1848   :  { %6587 = vmatprep.mubr.msk.f32.mxu0 %vm245_vm2, %v8219_v10 }
0x1849   :  { %4307 = vrot.lane.b32.xlu0 %v8133_v18, %s7563_s28 }
0x184b   :  { %6588 = vmatmul.mubr.msk.f32.vlgmr.msra.gmra.mrb[30].mxu0 %vm245_vm2, %v8217_v9 }
0x184c   :  { %6590 = vmatprep.mubr.msk.f32.mxu0 %vm245_vm2, %v8223_v12 }
0x184d   :  { %4396 = vrot.lane.b32.xlu0 %v8147_v15, %s7563_s28 }
0x184f   :  { %6591 = vmatmul.mubr.msk.f32.gmra.mrb[32].mxu0 %vm245_vm2, %v8221_v11 }
0x189f   :  { %v4013_v21 = vpop.xlane.xlu0 %4012 }
0x18a3   :  { %v4010_v25 = vpop.xlane.xlu1 %4009 }
0x18a4   :  { %7345 = vrcp.f32 %v4010_v25 }
0x18a5   :  { %7347 = vrcp.f32 %v4013_v21 }
0x18a7   :  { %v7194_v23 = vpop.permute.xlu1 %7193 }
0x18a8   :  { %v7196_v10 = vunpack.i.h.bf16 %v7194_v23  ;;  %v7195_v24 = vunpack.i.l.bf16 %v7194_v23 }
0x18aa   :  { %v6927_v27 = vpack.c.bf16 %v7196_v10, %v7195_v24 }
0x18ab   :  { %v4399_v40 = vpop.permute.xlu1 %4398 }
0x18ac   :  { %6928 = vmatprep.subr.bf16.mxu1 %v6927_v27  ;;  %v4019_v18 = vpop.xlane.xlu0 %4018 }
0x18ad   :  { %6930 = vmatpush3.bf16.msra.mxu1 %v6927_v27  ;;  %7349 = vrcp.f32 %v4019_v18 }
0x18ae   :  { %v7346_v9 = vpop.eup %7345 }
0x18af   :  { %v4024_v28 = vmul.f32 %v7346_v9, %v7340_v6  ;;  %v7348_v32 = vpop.eup %7347 }
0x18b0   :  { %v4016_v12 = vpop.xlane.xlu0 %4015  ;;  %v4025_v45 = vmul.f32 %v7348_v32, %v8293_v2 }
0x18b1   :  { %7351 = vrcp.f32 %v4016_v12  ;;  %6611 = vmatprep.mubr.msk.f32.mxu0 %vm422_vm5, %v4024_v28 }
0x18b4   :  { %v7189_v15 = vpop.permute.xlu0 %7188 }
0x18b5   :  { %v7191_v11 = vunpack.i.h.bf16 %v7189_v15  ;;  %v7190_v29 = vunpack.i.l.bf16 %v7189_v15 }
0x18b7   :  { %v6923_v31 = vpack.c.bf16 %v7191_v11, %v7190_v29  ;;  %v7350_v42 = vpop.eup %7349 }
0x18b8   :  { %v7199_v34 = vpop.permute.xlu0 %7198  ;;  %v4027_v55 = vmul.f32 %v7350_v42, %v7342_v26 }
0x18b9   :  { %v7201_v38 = vunpack.i.h.bf16 %v7199_v34  ;;  %v7200_v39 = vunpack.i.l.bf16 %v7199_v34  ;;  %6924 = vmatprep.subr.bf16.mxu0 %v6923_v31 }
0x18ba   :  { %6926 = vmatpush3.bf16.msra.mxu0 %v6923_v31 }
0x18bb   :  { %v7352_v43 = vpop.eup %7351  ;;  %v6931_v13 = vpack.c.bf16 %v7201_v38, %v7200_v39  ;;  %6621 = vmatprep.subr.mxu0 %v5986_v36 }
0x18bc   :  { %v7204_v47 = vpop.permute.xlu0 %7203  ;;  %v4026_v48 = vmul.f32 %v7352_v43, %v7344_v14 }
0x18bd   :  { %v7206_v56 = vunpack.i.h.bf16 %v7204_v47  ;;  %v7205_v20 = vunpack.i.l.bf16 %v7204_v47  ;;  %6612 = vmatmul.mubr.msk.f32.vlgmr.msra.gmra.mrb[34].mxu0 %vm422_vm5, %v4025_v45  ;;  %6933 = vmatprep.subr.msk.bf16.mxu1 %vm7786_vm3, %v6931_v13 }
0x18be   :  { %6618 = vmatprep.mubr.msk.f32.mxu1 %vm422_vm5, %v4026_v48  ;;  %6622 = vmatpush3.msra.mxu0 %v5986_v36 }
0x18bf   :  { %v6937_v33 = vpack.c.bf16 %v7206_v56, %v7205_v20  ;;  %6619 = vmatmul.mubr.msk.f32.vlgmr.msra.gmra.mrb[42].mxu1 %vm422_vm5, %v4027_v55 }
0x18c0   :  { %6936 = vmatpush3.bf16.xpose.msk.msra.mxu1 %vm7786_vm3, %v6931_v13  ;;  %v4306_v57 = vpop.permute.xlu0 %4305 }
0x18c1   :  { %6633 = vmatprep.mubr.msk.f32.mxu1 %vm245_vm2, %v4306_v57  ;;  %6939 = vmatprep.subr.msk.bf16.mxu0 %vm7786_vm3, %v6937_v33  ;;  %v6003_v57 = vld [vmem:[%s8538_s5 + $0x38] sm:$0xff] }
0x18c4   :  { %v4308_v58 = vpop.permute.xlu0 %4307 }
0x18c7   :  { %6634 = vmatmul.mubr.msk.f32.vlgmr.msra.gmra.mrb[44].mxu1 %vm245_vm2, %v4308_v58 }
0x18c8   :  { %v4397_v52 = vpop.permute.xlu0 %4396 }
0x1990   :  { %v6613_v50 = vpop.f32.mrb[34].mxu0 }
0x1991   :  { %v4106_v59 = vpop.f32.mrb[35].mxu0 }
0x1992   :  { %v6620_v60 = vpop.f32.mrb[42].mxu1  ;;  %6623 = vmatprep.mubr.msk.f32.mxu0 %vm245_vm2, %v4106_v59 }
0x1993   :  { %v4193_v49 = vpop.f32.mrb[43].mxu1  ;;  %6624 = vmatmul.mubr.msk.f32.vlgmr.msra.gmra.mrb[30].mxu0 %vm245_vm2, %v6613_v50 }
0x1994   :  { %6942 = vmatpush3.bf16.xpose.msk.msra.mxu0 %vm7786_vm3, %v6937_v33  ;;  %6626 = vmatprep.mubr.msk.f32.mxu0 %vm245_vm2, %v4193_v49  ;;  %v6008_v49 = vld [vmem:[#allocation8 + $0x6] ss:$0 sm:$0xff] }
0x1997   :  { %6627 = vmatmul.mubr.msk.f32.gmra.mrb[32].mxu0 %vm245_vm2, %v6620_v60 }
0x1998   :  { %6640 = vmatprep.mubr.msk.f32.mxu0 %vm245_vm2, %v4397_v52 }
0x199a   :  { %v6635_v41 = vpop.f32.mrb[44].mxu1 }
0x199b   :  { %v4488_v61 = vsel %vm132_vm4, %v6635_v41, -1e+30  ;;  %v4387_v62 = vpop.f32.mrb[45].mxu1  ;;  %6641 = vmatmul.mubr.msk.f32.vlgmr.msra.gmra.mrb[36].mxu0 %vm245_vm2, %v4399_v40 }
0x199c   :  { %v4494_v51 = vsel %vm422_vm5, %v4488_v61, -inf  ;;  %v4487_v30 = vsel %vm132_vm4, %v4387_v62, -1e+30 }
0x199d   :  { %v4491_v63 = vsel %vm422_vm5, %v4487_v30, -inf  ;;  %4495 = vmax.xlane.f32.xlu1 %v4494_v51 }
0x199e   :  { %4492 = vmax.xlane.f32.xlu0 %v4491_v63 }
0x1a2a   :  { %v4496_v5 = vpop.xlane.xlu1 %4495 }
0x1a2b   :  { %v4493_v0 = vpop.xlane.xlu0 %4492  ;;  %v4504_v6 = vsub.f32 %v4488_v61, %v4496_v5 }
0x1a2c   :  { %v4503_v1 = vsub.f32 %v4487_v30, %v4493_v0 }
0x1a2d   :  { %v4509_v7 = vmul.f32 1.442695, %v4504_v6 }
0x1a2e   :  { %v4507_v2 = vmul.f32 1.442695, %v4503_v1 }
0x1a30   :  { %7353 = vpow2.f32 %v4507_v2 }
0x1a31   :  { %7355 = vpow2.f32 %v4509_v7 }
0x1a3a   :  { %v7354_v3 = vpop.eup %7353 }
0x1a3b   :  { %v4515_v4 = vsel %vm422_vm5, %v7354_v3, 0.0  ;;  %v7356_v25 = vpop.eup %7355 }
0x1a3c   :  { %4516 = vadd.xlane.f32.xlu1 %v4515_v4  ;;  %v4518_v23 = vsel %vm422_vm5, %v7356_v25, 0.0 }
0x1a6e   :  { %v6642_v26 = vpop.f32.mrb[36].mxu0 }
0x1a6f   :  { %v4478_v22 = vpop.f32.mrb[37].mxu0  ;;  %v4490_v17 = vsel %vm132_vm4, %v6642_v26, -1e+30 }
0x1a70   :  { %v4489_v14 = vsel %vm132_vm4, %v4478_v22, -1e+30  ;;  %v4500_v19 = vsel %vm422_vm5, %v4490_v17, -inf }
0x1a71   :  { %v4497_v16 = vsel %vm422_vm5, %v4489_v14, -inf }
0x1a72   :  { %4498 = vmax.xlane.f32.xlu0 %v4497_v16 }
0x1a76   :  { %4501 = vmax.xlane.f32.xlu0 %v4500_v19 }
0x1a7a   :  { %4519 = vadd.xlane.f32.xlu0 %v4518_v23 }
0x1ac9   :  { %v4517_v21 = vpop.xlane.xlu1 %4516 }
0x1aca   :  { %7357 = vrcp.f32 %v4517_v21 }
0x1ad4   :  { %v7358_v10 = vpop.eup %7357 }
0x1ad5   :  { %v4531_v24 = vmul.f32 %v7358_v10, %v7354_v3 }
0x1ad7   :  { %6647 = vmatprep.mubr.msk.f32.mxu1 %vm422_vm5, %v4531_v24 }
0x1aff   :  { %v4499_v27 = vpop.xlane.xlu0 %4498 }
0x1b00   :  { %v4505_v18 = vsub.f32 %v4489_v14, %v4499_v27 }
0x1b02   :  { %v4511_v9 = vmul.f32 1.442695, %v4505_v18 }
0x1b03   :  { %v4502_v28 = vpop.xlane.xlu0 %4501 }
0x1b04   :  { %7359 = vpow2.f32 %v4511_v9  ;;  %v4506_v37 = vsub.f32 %v4490_v17, %v4502_v28 }
0x1b06   :  { %v4513_v12 = vmul.f32 1.442695, %v4506_v37 }
0x1b07   :  { %v4520_v32 = vpop.xlane.xlu0 %4519 }
0x1b08   :  { %7361 = vpow2.f32 %v4513_v12  ;;  %v6011_v12 = vld [vmem:[%s8540_s7 + $0x20] sm:$0xff] }
0x1b09   :  { %7363 = vrcp.f32 %v4520_v32 }
0x1b0e   :  { %v7360_v15 = vpop.eup %7359 }
0x1b0f   :  { %v4521_v11 = vsel %vm422_vm5, %v7360_v15, 0.0 }
0x1b10   :  { %4522 = vadd.xlane.f32.xlu1 %v4521_v11 }
0x1b12   :  { %v7362_v29 = vpop.eup %7361 }
0x1b13   :  { %v4524_v31 = vsel %vm422_vm5, %v7362_v29, 0.0  ;;  %v7364_v45 = vpop.eup %7363 }
0x1b14   :  { %4525 = vadd.xlane.f32.xlu0 %v4524_v31  ;;  %v4532_v55 = vmul.f32 %v7364_v45, %v7356_v25  ;;  %v6014_v31 = vld [vmem:[%s8540_s7 + $0x38] sm:$0xff] }
0x1b21   :  { %7208 = vrot.lane.b32.xlu1 %v8141_v35, %s7565_s24 }
0x1b2a   :  { %7213 = vrot.lane.b32.xlu0 %v8153_v8, %s7565_s24 }
0x1b9d   :  { %v4523_v34 = vpop.xlane.xlu1 %4522 }
0x1b9e   :  { %7365 = vrcp.f32 %v4523_v34 }
0x1ba1   :  { %v7209_v36 = vpop.permute.xlu1 %7208  ;;  %v4526_v38 = vpop.xlane.xlu0 %4525 }
0x1ba2   :  { %v7211_v39 = vunpack.i.h.bf16 %v7209_v36  ;;  %v7210_v42 = vunpack.i.l.bf16 %v7209_v36  ;;  %7367 = vrcp.f32 %v4526_v38 }
0x1ba4   :  { %v6943_v43 = vpack.c.bf16 %v7211_v39, %v7210_v42 }
0x1ba5   :  { %v7214_v13 = vpop.permute.xlu0 %7213 }
0x1ba6   :  { %v7216_v47 = vunpack.i.h.bf16 %v7214_v13  ;;  %v7215_v48 = vunpack.i.l.bf16 %v7214_v13  ;;  %6944 = vmatprep.subr.bf16.mxu1 %v6943_v43 }
0x1ba7   :  { %6946 = vmatpush3.bf16.msra.mxu1 %v6943_v43 }
0x1ba8   :  { %v7366_v35 = vpop.eup %7365  ;;  %v6947_v56 = vpack.c.bf16 %v7216_v47, %v7215_v48 }
0x1ba9   :  { %v4533_v8 = vmul.f32 %v7366_v35, %v7360_v15  ;;  %v6012_v15 = vld [vmem:[%s8540_s7 + $0x28] sm:$0xff] }
0x1baa   :  { %6648 = vmatmul.mubr.msk.f32.vlgmr.msra.gmra.mrb[46].mxu1 %vm422_vm5, %v4532_v55  ;;  %6948 = vmatprep.subr.bf16.mxu0 %v6947_v56  ;;  %v6951_v11 = vpack.c.bf16 %v6012_v15, %v6011_v12 }
0x1bab   :  { %6950 = vmatpush3.bf16.msra.mxu0 %v6947_v56  ;;  %6654 = vmatprep.mubr.msk.f32.mxu0 %vm422_vm5, %v4533_v8  ;;  %v6009_v8 = vld [vmem:[#allocation8 + $0x7] ss:$0 sm:$0xff] }
0x1bac   :  { %v7368_v20 = vpop.eup %7367  ;;  %6657 = vmatprep.subr.mxu0 %v6003_v57  ;;  %6952 = vmatprep.subr.bf16.mxu1 %v6951_v11 }
0x1bad   :  { %v4534_v33 = vmul.f32 %v7368_v20, %v7362_v29  ;;  %v6013_v29 = vld [vmem:[%s8540_s7 + $0x30] sm:$0xff]  ;;  %6954 = vmatpush3.bf16.msra.mxu1 %v6951_v11  ;;  %s7515_s7 = scalar_lea.vmem %s5830_s29, 256 }
0x1bae   :  { %v6955_v32 = vpack.c.bf16 %v6014_v31, %v6013_v29  ;;  %p7516_p12 = scmp.ne.s32.totalorder %s5830_s29, %s7515_s7  ;;  %p7521_p0 = scmp.lt.s32.totalorder %s7515_s7, %s7515_s7 }
0x1baf   :  { %6655 = vmatmul.mubr.msk.f32.vlgmr.msra.gmra.mrb[38].mxu0 %vm422_vm5, %v4534_v33 }
0x1bb0   :  { %6658 = vmatpush3.msra.mxu0 %v6003_v57  ;;  %6956 = vmatprep.subr.bf16.mxu1 %v6955_v32  ;;  %p7522_p1 = por %p7521_p0, %p7520_p13 }
0x1bb1   :  { %6958 = vmatpush3.bf16.msra.mxu1 %v6955_v32 }
0x1bb2   :  { %p7523_p2 = pnand %p7522_p1, %p7516_p12 }
0x1c7d   :  { %v6649_v58 = vpop.f32.mrb[46].mxu1 }
0x1c7e   :  { %v4613_v50 = vpop.f32.mrb[47].mxu1 }
0x1c7f   :  { %6659 = vmatprep.mubr.msk.f32.mxu0 %vm245_vm2, %v4613_v50 }
0x1c80   :  { %6660 = vmatmul.mubr.msk.f32.vlgmr.msra.gmra.mrb[30].mxu0 %vm245_vm2, %v6649_v58  ;;  %v6010_v58 = vld [vmem:[#allocation8 + $0x8] ss:$0 sm:$0xff] }
0x1c82   :  { %v6656_v59 = vpop.f32.mrb[38].mxu0 }
0x1c83   :  { %v4700_v60 = vpop.f32.mrb[39].mxu0 }
0x1c84   :  { %6662 = vmatprep.mubr.msk.f32.mxu0 %vm245_vm2, %v4700_v60 }
0x1c85   :  { %6663 = vmatmul.mubr.msk.f32.gmra.mrb[32].mxu0 %vm245_vm2, %v6656_v59 }
0x1d53   :  { %v6661_v52 = vpop.f32.mrb[30].mxu0 }
0x1d54   :  { %v4821_v40 = vadd.f32 %v6661_v52, %v6008_v49  ;;  %v4789_v41 = vpop.f32.mrb[31].mxu0 }
0x1d55   :  { %v4820_v61 = vadd.f32 %v6008_v49, %v4789_v41 }
0x1d56   :  { %v4825_v62 = vadd.f32 %v4821_v40, %v8116_v46 }
0x1d57   :  { %v4824_v51 = vadd.f32 %v4820_v61, %v8114_v44 }
0x1d58   :  { %v6664_v30 = vpop.f32.mrb[32].mxu0  ;;  %v4835_v63 = vsel %vm144_vm0, %v4825_v62, 0.0 }
0x1d59   :  { %v4823_v0 = vadd.f32 %v6664_v30, %v6008_v49  ;;  %4836 = vadd.xlane.f32.xlu0 %v4835_v63  ;;  %v4799_v1 = vpop.f32.mrb[33].mxu0  ;;  %v4832_v2 = vsel %vm144_vm0, %v4824_v51, 0.0 }
0x1d5a   :  { %v4822_v3 = vadd.f32 %v6008_v49, %v4799_v1  ;;  %4833 = vadd.xlane.f32.xlu1 %v4832_v2  ;;  %v6022_v1 = vld [vmem:[%s8542_s9 + $0x48] sm:$0xff] }
0x1d5b   :  { %v4827_v4 = vadd.f32 %v4823_v0, %v8124_v54  ;;  %v6021_v0 = vld [vmem:[%s8542_s9 + $0x40] sm:$0xff] }
0x1d5c   :  { %v4826_v5 = vadd.f32 %v4822_v3, %v8122_v53  ;;  %v6959_v2 = vpack.c.bf16 %v6022_v1, %v6021_v0  ;;  %v6023_v3 = vld [vmem:[%s8542_s9 + $0x50] sm:$0xff] }
0x1d5d   :  { %v4841_v6 = vsel %vm144_vm0, %v4827_v4, 0.0 }
0x1d5e   :  { %4842 = vadd.xlane.f32.xlu0 %v4841_v6  ;;  %v4838_v46 = vsel %vm144_vm0, %v4826_v5, 0.0  ;;  %6960 = vmatprep.subr.bf16.mxu0 %v6959_v2  ;;  %v6025_v6 = vld [vmem:[%s8542_s9 + $0x60] sm:$0xff] }
0x1d5f   :  { %4839 = vadd.xlane.f32.xlu1 %v4838_v46  ;;  %6962 = vmatpush3.bf16.msra.mxu0 %v6959_v2  ;;  %v6026_v46 = vld [vmem:[%s8542_s9 + $0x68] sm:$0xff] }
0x1de6   :  { %v4837_v44 = vpop.xlane.xlu0 %4836 }
0x1de7   :  { %v4845_v7 = vmul.f32 0.03125, %v4837_v44  ;;  %v4834_v26 = vpop.xlane.xlu1 %4833  ;;  %v6967_v44 = vpack.c.bf16 %v6026_v46, %v6025_v6 }
0x1de8   :  { %v4844_v22 = vmul.f32 0.03125, %v4834_v26  ;;  %v6028_v26 = vld [vmem:[%s8542_s9 + $0x78] sm:$0xff] }
0x1de9   :  { %v4849_v14 = vsub.f32 %v4825_v62, %v4845_v7  ;;  %v6027_v7 = vld [vmem:[%s8542_s9 + $0x70] sm:$0xff] }
0x1dea   :  { %v4848_v16 = vsub.f32 %v4824_v51, %v4844_v22  ;;  %v6971_v22 = vpack.c.bf16 %v6028_v26, %v6027_v7 }
0x1deb   :  { %v4843_v17 = vpop.xlane.xlu0 %4842  ;;  %v4853_v19 = vmul.f32 %v4849_v14, %v4849_v14 }
0x1dec   :  { %v4847_v25 = vmul.f32 0.03125, %v4843_v17  ;;  %v4840_v23 = vpop.xlane.xlu1 %4839  ;;  %v4852_v21 = vmul.f32 %v4848_v16, %v4848_v16 }
0x1ded   :  { %v4846_v54 = vmul.f32 0.03125, %v4840_v23  ;;  %v4859_v53 = vsel %vm144_vm0, %v4853_v19, 0.0 }
0x1dee   :  { %v4851_v10 = vsub.f32 %v4827_v4, %v4847_v25  ;;  %4860 = vadd.xlane.f32.xlu0 %v4859_v53  ;;  %v4856_v24 = vsel %vm144_vm0, %v4852_v21, 0.0  ;;  %v6024_v4 = vld [vmem:[%s8542_s9 + $0x58] sm:$0xff] }
0x1def   :  { %v4850_v27 = vsub.f32 %v4826_v5, %v4846_v54  ;;  %4857 = vadd.xlane.f32.xlu1 %v4856_v24  ;;  %v6963_v5 = vpack.c.bf16 %v6024_v4, %v6023_v3 }
0x1df0   :  { %v4855_v18 = vmul.f32 %v4851_v10, %v4851_v10 }
0x1df1   :  { %v4854_v9 = vmul.f32 %v4850_v27, %v4850_v27  ;;  %6964 = vmatprep.subr.bf16.mxu0 %v6963_v5 }
0x1df2   :  { %v4865_v28 = vsel %vm144_vm0, %v4855_v18, 0.0  ;;  %6966 = vmatpush3.bf16.msra.mxu0 %v6963_v5 }
0x1df3   :  { %4866 = vadd.xlane.f32.xlu0 %v4865_v28  ;;  %v4862_v37 = vsel %vm144_vm0, %v4854_v9, 0.0  ;;  %6968 = vmatprep.subr.bf16.mxu0 %v6967_v44 }
0x1df4   :  { %4863 = vadd.xlane.f32.xlu1 %v4862_v37 }
0x1df6   :  { %6970 = vmatpush3.bf16.msra.mxu0 %v6967_v44 }
0x1df7   :  { %6972 = vmatprep.subr.bf16.mxu0 %v6971_v22 }
0x1dfa   :  { %6974 = vmatpush3.bf16.msra.mxu0 %v6971_v22 }
0x1e7b   :  { %v4861_v34 = vpop.xlane.xlu0 %4860 }
0x1e7c   :  { %v4869_v36 = vmul.f32 0.03125, %v4861_v34  ;;  %v4858_v38 = vpop.xlane.xlu1 %4857 }
0x1e7d   :  { %v4868_v39 = vmul.f32 0.03125, %v4858_v38 }
0x1e7e   :  { %v4873_v42 = vadd.f32 1e-05, %v4869_v36 }
0x1e7f   :  { %v4872_v43 = vadd.f32 1e-05, %v4868_v39 }
0x1e80   :  { %7369 = vrsqrt.f32 %v4873_v42  ;;  %v4867_v45 = vpop.xlane.xlu0 %4866 }
0x1e81   :  { %7371 = vrsqrt.f32 %v4872_v43  ;;  %v4871_v13 = vmul.f32 0.03125, %v4867_v45  ;;  %v4864_v47 = vpop.xlane.xlu1 %4863 }
0x1e82   :  { %v4870_v48 = vmul.f32 0.03125, %v4864_v47 }
0x1e83   :  { %v4875_v35 = vadd.f32 1e-05, %v4871_v13 }
0x1e84   :  { %v4874_v55 = vadd.f32 1e-05, %v4870_v48 }
0x1e85   :  { %7373 = vrsqrt.f32 %v4875_v35 }
0x1e86   :  { %7375 = vrsqrt.f32 %v4874_v55 }
0x1e8a   :  { %v7370_v56 = vpop.eup %7369 }
0x1e8b   :  { %v7372_v20 = vpop.eup %7371  ;;  %v4881_v33 = vmul.f32 %v7370_v56, %v4849_v14  ;;  %v6016_v14 = vld [vmem:[%s8541_s8 + $0x1] ss:$0 sm:$0xff] }
0x1e8c   :  { %v4880_v57 = vmul.f32 %v7372_v20, %v4848_v16 }
0x1e8d   :  { %v4891_v50 = vmul.f32 %v6009_v8, %v4881_v33 }
0x1e8e   :  { %v4890_v59 = vmul.f32 %v6009_v8, %v4880_v57 }
0x1e8f   :  { %v7374_v60 = vpop.eup %7373  ;;  %v4901_v41 = vadd.f32 %v6010_v58, %v4891_v50 }
0x1e90   :  { %v7376_v49 = vpop.eup %7375  ;;  %v8408_v52 = vadd.f32 %v6010_v58, %v4890_v59  ;;  %v4883_v40 = vmul.f32 %v7374_v60, %v4851_v10 }
0x1e91   :  { %v4882_v61 = vmul.f32 %v7376_v49, %v4850_v27 }
0x1e92   :  { %6673 = vmatprep.mubr.msk.f32.mxu1 %vm144_vm0, %v8408_v52  ;;  %v4893_v62 = vmul.f32 %v6009_v8, %v4883_v40 }
0x1e93   :  { %6674 = vmatmul.mubr.msk.f32.vlgmr.msra.gmra.mrb[48].mxu1 %vm144_vm0, %v4901_v41  ;;  %v4892_v51 = vmul.f32 %v6009_v8, %v4882_v61  ;;  %v6029_v41 = vld [vmem:[#allocation8 + $0x9] ss:$0 sm:$0xff] }
0x1e94   :  { %v4903_v63 = vadd.f32 %v6010_v58, %v4893_v62 }
0x1e95   :  { %v8413_v30 = vadd.f32 %v6010_v58, %v4892_v51 }
0x1e97   :  { %6676 = vmatprep.mubr.msk.f32.mxu1 %vm144_vm0, %v8413_v30 }
0x1e98   :  { %6677 = vmatmul.mubr.msk.f32.gmra.mrb[50].mxu1 %vm144_vm0, %v4903_v63 }
0x1f66   :  { %v6675_v16 = vpop.f32.mrb[48].mxu1 }
0x1f67   :  { %v5001_v17 = vadd.f32 %v6675_v16, %v6016_v14  ;;  %v4995_v19 = vpop.f32.mrb[49].mxu1 }
0x1f68   :  { %v4996_v25 = vadd.f32 %v6016_v14, %v4995_v19  ;;  %v5218_v19 = vld [vmem:[%s8543_s10 + $0x8] sm:$0xff] }
0x1f69   :  { %v5019_v23 = vmul.f32 0.044715, %v5001_v17  ;;  %v5015_v56 = vmul.f32 0.5, %v5001_v17 }
0x1f6a   :  { %v5018_v21 = vmul.f32 0.044715, %v4996_v25  ;;  %v5014_v35 = vmul.f32 0.5, %v4996_v25 }
0x1f6b   :  { %v5023_v54 = vmul.f32 %v5019_v23, %v5001_v17  ;;  %v6678_v53 = vpop.f32.mrb[50].mxu1 }
0x1f6c   :  { %v5022_v10 = vmul.f32 %v5018_v21, %v4996_v25  ;;  %v5011_v24 = vadd.f32 %v6678_v53, %v6016_v14  ;;  %v5005_v27 = vpop.f32.mrb[51].mxu1  ;;  %v6046_v21 = vld [vmem:[%s8543_s10 + $0x28] sm:$0xff]  ;;  %v5219_v53 = vld [vmem:[%s8543_s10 + $0x10] sm:$0xff] }
0x1f6d   :  { %v5027_v18 = vmul.f32 %v5023_v54, %v5001_v17  ;;  %v5006_v9 = vadd.f32 %v6016_v14, %v5005_v27 }
0x1f6e   :  { %v5026_v28 = vmul.f32 %v5022_v10, %v4996_v25  ;;  %v5021_v37 = vmul.f32 0.044715, %v5011_v24  ;;  %v5017_v60 = vmul.f32 0.5, %v5011_v24  ;;  %v5220_v10 = vld [vmem:[%s8543_s10 + $0x18] sm:$0xff] }
0x1f6f   :  { %v5031_v12 = vadd.f32 %v5027_v18, %v5001_v17  ;;  %v5020_v15 = vmul.f32 0.044715, %v5006_v9  ;;  %v5016_v50 = vmul.f32 0.5, %v5006_v9  ;;  %v6979_v27 = vpack.c.bf16 %v5220_v10, %v5219_v53  ;;  %v6048_v18 = vld [vmem:[%s8543_s10 + $0x38] sm:$0xff] }
0x1f70   :  { %v5030_v11 = vadd.f32 %v5026_v28, %v4996_v25  ;;  %v5025_v29 = vmul.f32 %v5021_v37, %v5011_v24  ;;  %v6045_v25 = vld [vmem:[%s8543_s10 + $0x20] sm:$0xff] }
0x1f71   :  { %v5035_v31 = vmul.f32 0.7978846, %v5031_v12  ;;  %v5024_v32 = vmul.f32 %v5020_v15, %v5006_v9  ;;  %v6991_v54 = vpack.c.bf16 %v6046_v21, %v6045_v25  ;;  %v6040_v21 = vld [vmem:[%s8546_s13] ss:$0 sm:$0xff] }
0x1f72   :  { %v5029_v34 = vmul.f32 %v5025_v29, %v5011_v24  ;;  %v5034_v36 = vmul.f32 0.7978846, %v5030_v11 }
0x1f73   :  { %7377 = vtanh.f32 %v5035_v31  ;;  %v5028_v38 = vmul.f32 %v5024_v32, %v5006_v9  ;;  %6992 = vmatprep.subr.bf16.mxu0 %v6991_v54  ;;  %v6034_v32 = vld [vmem:[#allocation8 + $0xa] ss:$0 sm:$0xff] }
0x1f74   :  { %v5033_v39 = vadd.f32 %v5029_v34, %v5011_v24  ;;  %7379 = vtanh.f32 %v5034_v36  ;;  %v6047_v24 = vld [vmem:[%s8543_s10 + $0x30] sm:$0xff]  ;;  %v6035_v36 = vld [vmem:[#allocation8 + $0xb] ss:$0 sm:$0xff] }
0x1f75   :  { %v5032_v42 = vadd.f32 %v5028_v38, %v5006_v9  ;;  %v6995_v9 = vpack.c.bf16 %v6048_v18, %v6047_v24 }
0x1f76   :  { %v5037_v43 = vmul.f32 0.7978846, %v5033_v39 }
0x1f77   :  { %v5036_v45 = vmul.f32 0.7978846, %v5032_v42 }
0x1f78   :  { %7381 = vtanh.f32 %v5037_v43 }
0x1f79   :  { %7383 = vtanh.f32 %v5036_v45 }
0x1f7d   :  { %v7378_v13 = vpop.eup %7377 }
0x1f7e   :  { %v7380_v47 = vpop.eup %7379  ;;  %v5043_v48 = vadd.f32 1.0, %v7378_v13 }
0x1f7f   :  { %v5042_v55 = vadd.f32 1.0, %v7380_v47  ;;  %v5327_v47 = vld [vmem:[%s8545_s12] sm:$0xff] }
0x1f80   :  { %v5047_v33 = vmul.f32 %v5043_v48, %v5015_v56  ;;  %v5328_v48 = vld [vmem:[%s8545_s12 + $0x8] sm:$0xff] }
0x1f81   :  { %v5046_v8 = vmul.f32 %v5042_v55, %v5014_v35  ;;  %v6983_v35 = vpack.c.bf16 %v5328_v48, %v5327_v47  ;;  %v6037_v55 = vld [vmem:[%s8544_s11] ss:$0 sm:$0xff] }
0x1f82   :  { %v7382_v20 = vpop.eup %7381 }
0x1f83   :  { %v7384_v57 = vpop.eup %7383  ;;  %6695 = vmatprep.mubr.msk.f32.mxu0 %vm2508_vm6, %v5046_v8  ;;  %v5045_v58 = vadd.f32 1.0, %v7382_v20 }
0x1f84   :  { %6696 = vmatmul.mubr.msk.f32.vlgmr.msra.gmra.mrb[40].mxu0 %vm2508_vm6, %v5047_v33  ;;  %v5044_v59 = vadd.f32 1.0, %v7384_v57 }
0x1f85   :  { %v5049_v40 = vmul.f32 %v5045_v58, %v5017_v60  ;;  %6994 = vmatpush3.bf16.msra.mxu0 %v6991_v54 }
0x1f86   :  { %v5048_v49 = vmul.f32 %v5044_v59, %v5016_v50  ;;  %6996 = vmatprep.subr.bf16.mxu0 %v6995_v9 }
0x1f88   :  { %6698 = vmatprep.mubr.msk.f32.mxu0 %vm2508_vm6, %v5048_v49 }
0x1f89   :  { %6699 = vmatmul.mubr.msk.f32.gmra.mrb[42].mxu0 %vm2508_vm6, %v5049_v40 }
0x1f8a   :  { %6998 = vmatpush3.bf16.msra.mxu0 %v6995_v9 }
0x2057   :  { %v6697_v61 = vpop.f32.mrb[40].mxu0 }
0x2058   :  { %v5145_v62 = vpop.f32.mrb[41].mxu0 }
0x2059   :  { %v5146_v51 = vadd.f32 %v6029_v41, %v5145_v62 }
0x205b   :  { %v5162_v63 = vadd.f32 %v5146_v51, %v8408_v52 }
0x205c   :  { %v6700_v0 = vpop.f32.mrb[42].mxu0 }
0x205d   :  { %v5154_v1 = vpop.f32.mrb[43].mxu0  ;;  %v5168_v2 = vsel %vm144_vm0, %v5162_v63, 0.0 }
0x205e   :  { %v5155_v3 = vadd.f32 %v6029_v41, %v5154_v1  ;;  %5169 = vadd.xlane.f32.xlu1 %v5168_v2 }
0x2060   :  { %v5163_v4 = vadd.f32 %v5155_v3, %v8413_v30  ;;  %v5217_v30 = vld [vmem:[%s8543_s10] sm:$0xff] }
0x2061   :  { %v6975_v23 = vpack.c.bf16 %v5218_v19, %v5217_v30 }
0x2062   :  { %v5171_v5 = vsel %vm144_vm0, %v5163_v4, 0.0 }
0x2063   :  { %5172 = vadd.xlane.f32.xlu0 %v5171_v5  ;;  %6976 = vmatprep.subr.bf16.mxu1 %v6975_v23 }
0x2064   :  { %6978 = vmatpush3.bf16.msra.mxu1 %v6975_v23 }
0x2065   :  { %6980 = vmatprep.subr.bf16.mxu1 %v6979_v27 }
0x2068   :  { %6982 = vmatpush3.bf16.msra.mxu1 %v6979_v27 }
0x2069   :  { %6984 = vmatprep.subr.bf16.mxu1 %v6983_v35 }
0x20eb   :  { %v5170_v6 = vpop.xlane.xlu1 %5169 }
0x20ec   :  { %v5174_v46 = vmul.f32 0.03125, %v5170_v6 }
0x20ee   :  { %v5176_v44 = vsub.f32 %v5162_v63, %v5174_v46 }
0x20f0   :  { %v5173_v7 = vpop.xlane.xlu0 %5172  ;;  %v5178_v26 = vmul.f32 %v5176_v44, %v5176_v44 }
0x20f1   :  { %v5175_v22 = vmul.f32 0.03125, %v5173_v7  ;;  %v5436_v7 = vld [vmem:[#allocation10 + $0x8] sm:$0xff] }
0x20f2   :  { %v5180_v14 = vsel %vm144_vm0, %v5178_v26, 0.0 }
0x20f3   :  { %v5177_v52 = vsub.f32 %v5163_v4, %v5175_v22  ;;  %5181 = vadd.xlane.f32.xlu1 %v5180_v14  ;;  %v6053_v22 = vld [vmem:[%s8545_s12 + $0x10] sm:$0xff]  ;;  %v6054_v14 = vld [vmem:[%s8545_s12 + $0x18] sm:$0xff] }
0x20f5   :  { %v5179_v16 = vmul.f32 %v5177_v52, %v5177_v52 }
0x20f7   :  { %v5183_v17 = vsel %vm144_vm0, %v5179_v16, 0.0  ;;  %v6050_v16 = vld [vmem:[%s8544_s11 + $0x1] ss:$0 sm:$0xff] }
0x20f8   :  { %5184 = vadd.xlane.f32.xlu0 %v5183_v17 }
0x2180   :  { %v5182_v28 = vpop.xlane.xlu1 %5181 }
0x2181   :  { %v5186_v37 = vmul.f32 0.03125, %v5182_v28 }
0x2183   :  { %v5188_v12 = vadd.f32 1e-05, %v5186_v37 }
0x2185   :  { %7385 = vrsqrt.f32 %v5188_v12  ;;  %v5185_v15 = vpop.xlane.xlu0 %5184 }
0x2186   :  { %v5187_v11 = vmul.f32 0.03125, %v5185_v15 }
0x2188   :  { %v5189_v29 = vadd.f32 1e-05, %v5187_v11 }
0x218a   :  { %7387 = vrsqrt.f32 %v5189_v29 }
0x218f   :  { %v7386_v31 = vpop.eup %7385 }
0x2190   :  { %v5192_v34 = vmul.f32 %v7386_v31, %v5176_v44  ;;  %v5435_v44 = vld [vmem:[#allocation10] sm:$0xff] }
0x2191   :  { %v6987_v26 = vpack.c.bf16 %v5436_v7, %v5435_v44 }
0x2192   :  { %v5200_v38 = vmul.f32 %v6034_v32, %v5192_v34 }
0x2194   :  { %v7388_v39 = vpop.eup %7387  ;;  %v5208_v42 = vadd.f32 %v6035_v36, %v5200_v38 }
0x2195   :  { %v5193_v43 = vmul.f32 %v7388_v39, %v5177_v52  ;;  %v6999_v52 = vpack.c.bf16 %v6054_v14, %v6053_v22 }
0x2196   :  { %6709 = vmatprep.mubr.msk.f32.mxu1 %vm144_vm0, %v5208_v42  ;;  %6734 = vmatprep.mubr.msk.f32.mxu0 %vm144_vm0, %v5208_v42 }
0x2197   :  { %v5201_v45 = vmul.f32 %v6034_v32, %v5193_v43 }
0x2199   :  { %v5209_v13 = vadd.f32 %v6035_v36, %v5201_v45 }
0x219b   :  { %6710 = vmatmul.mubr.msk.f32.vlgmr.msra.gmra.mrb[52].mxu1 %vm144_vm0, %v5209_v13  ;;  %6735 = vmatmul.mubr.msk.f32.vlgmr.msra.gmra.mrb[44].mxu0 %vm144_vm0, %v5209_v13 }
0x219c   :  { %6986 = vmatpush3.bf16.msra.mxu1 %v6983_v35 }
0x219d   :  { %6988 = vmatprep.subr.bf16.mxu1 %v6987_v26 }
0x226e   :  { %v6711_v56 = vpop.f32.mrb[52].mxu1  ;;  %v6736_v8 = vpop.f32.mrb[44].mxu0 }
0x226f   :  { %v5306_v20 = vadd.f32 %v6711_v56, %v6037_v55  ;;  %v5300_v33 = vpop.f32.mrb[53].mxu1  ;;  %v5599_v57 = vpop.f32.mrb[45].mxu0  ;;  %v5605_v30 = vadd.f32 %v6736_v8, %v6050_v16 }
0x2270   :  { %v5301_v58 = vadd.f32 %v6037_v55, %v5300_v33  ;;  %v5600_v17 = vadd.f32 %v6050_v16, %v5599_v57 }
0x2271   :  { %v5312_v50 = vmul.f32 0.044715, %v5306_v20  ;;  %v5310_v5 = vmul.f32 0.5, %v5306_v20  ;;  %v5611_v25 = vmul.f32 0.044715, %v5605_v30 }
0x2272   :  { %v5311_v59 = vmul.f32 0.044715, %v5301_v58  ;;  %v5309_v3 = vmul.f32 0.5, %v5301_v58  ;;  %v5610_v19 = vmul.f32 0.044715, %v5600_v17  ;;  %v5608_v57 = vmul.f32 0.5, %v5600_v17 }
0x2273   :  { %v5314_v60 = vmul.f32 %v5312_v50, %v5306_v20  ;;  %v5613_v54 = vmul.f32 %v5611_v25, %v5605_v30 }
0x2274   :  { %v5313_v49 = vmul.f32 %v5311_v59, %v5301_v58  ;;  %v5612_v23 = vmul.f32 %v5610_v19, %v5600_v17 }
0x2275   :  { %v5316_v40 = vmul.f32 %v5314_v60, %v5306_v20  ;;  %v5615_v9 = vmul.f32 %v5613_v54, %v5605_v30  ;;  %v5609_v60 = vmul.f32 0.5, %v5605_v30 }
0x2276   :  { %v5315_v41 = vmul.f32 %v5313_v49, %v5301_v58  ;;  %v5614_v53 = vmul.f32 %v5612_v23, %v5600_v17 }
0x2277   :  { %v5318_v61 = vadd.f32 %v5316_v40, %v5306_v20  ;;  %v5617_v29 = vadd.f32 %v5615_v9, %v5605_v30  ;;  %v5737_v40 = vld [vmem:[#allocation10 + $0x10] sm:$0xff] }
0x2278   :  { %v5317_v62 = vadd.f32 %v5315_v41, %v5301_v58  ;;  %v5616_v37 = vadd.f32 %v5614_v53, %v5600_v17  ;;  %v5738_v41 = vld [vmem:[#allocation10 + $0x18] sm:$0xff] }
0x2279   :  { %v5320_v51 = vmul.f32 0.7978846, %v5318_v61  ;;  %v5619_v39 = vmul.f32 0.7978846, %v5617_v29  ;;  %v7003_v61 = vpack.c.bf16 %v5738_v41, %v5737_v40 }
0x227a   :  { %v5319_v63 = vmul.f32 0.7978846, %v5317_v62  ;;  %v5618_v34 = vmul.f32 0.7978846, %v5616_v37  ;;  %v6056_v62 = vld [vmem:[%s8546_s13 + $0x1] ss:$0 sm:$0xff] }
0x227b   :  { %7389 = vtanh.f32 %v5320_v51 }
0x227c   :  { %7391 = vtanh.f32 %v5319_v63 }
0x227d   :  { %7393 = vtanh.f32 %v5618_v34 }
0x2285   :  { %v7390_v0 = vpop.eup %7389 }
0x2286   :  { %v7392_v1 = vpop.eup %7391  ;;  %v5324_v2 = vadd.f32 1.0, %v7390_v0 }
0x2287   :  { %v5323_v4 = vadd.f32 1.0, %v7392_v1  ;;  %v7394_v45 = vpop.eup %7393 }
0x2288   :  { %v5326_v46 = vmul.f32 %v5324_v2, %v5310_v5  ;;  %v5622_v8 = vadd.f32 1.0, %v7394_v45 }
0x2289   :  { %v5325_v6 = vmul.f32 %v5323_v4, %v5309_v3 }
0x228a   :  { %v5624_v59 = vmul.f32 %v5622_v8, %v5608_v57 }
0x228b   :  { %6716 = vmatprep.mubr.msk.f32.mxu1 %vm422_vm5, %v5325_v6 }
0x228c   :  { %6717 = vmatmul.mubr.msk.f32.vlgmr.msra.gmra.mrb[54].mxu1 %vm422_vm5, %v5326_v46 }
0x228d   :  { %6990 = vmatpush3.bf16.msra.mxu1 %v6987_v26 }
0x228e   :  { %7000 = vmatprep.subr.bf16.mxu1 %v6999_v52 }
0x235f   :  { %v6718_v10 = vpop.f32.mrb[54].mxu1 }
0x2360   :  { %v5414_v24 = vadd.f32 %v6718_v10, %v6040_v21  ;;  %v5408_v27 = vpop.f32.mrb[55].mxu1 }
0x2361   :  { %v5409_v18 = vadd.f32 %v6040_v21, %v5408_v27  ;;  %v6036_v21 = vld [vmem:[%s8548_s15] ss:$0 sm:$0xff] }
0x2362   :  { %v5420_v28 = vmul.f32 0.044715, %v5414_v24  ;;  %v5418_v20 = vmul.f32 0.5, %v5414_v24 }
0x2363   :  { %v5419_v12 = vmul.f32 0.044715, %v5409_v18  ;;  %v5417_v55 = vmul.f32 0.5, %v5409_v18 }
0x2364   :  { %v5422_v15 = vmul.f32 %v5420_v28, %v5414_v24 }
0x2365   :  { %v5421_v11 = vmul.f32 %v5419_v12, %v5409_v18 }
0x2366   :  { %v5424_v31 = vmul.f32 %v5422_v15, %v5414_v24 }
0x2367   :  { %v5423_v32 = vmul.f32 %v5421_v11, %v5409_v18 }
0x2368   :  { %v5426_v36 = vadd.f32 %v5424_v31, %v5414_v24 }
0x2369   :  { %v5425_v38 = vadd.f32 %v5423_v32, %v5409_v18 }
0x236a   :  { %v5428_v42 = vmul.f32 0.7978846, %v5426_v36 }
0x236b   :  { %v5427_v43 = vmul.f32 0.7978846, %v5425_v38 }
0x236c   :  { %7395 = vtanh.f32 %v5428_v42 }
0x236d   :  { %7397 = vtanh.f32 %v5427_v43 }
0x236e   :  { %7399 = vtanh.f32 %v5619_v39 }
0x2376   :  { %v7396_v13 = vpop.eup %7395 }
0x2377   :  { %v7398_v47 = vpop.eup %7397  ;;  %v5432_v48 = vadd.f32 1.0, %v7396_v13 }
0x2378   :  { %v7400_v35 = vpop.eup %7399  ;;  %v5431_v56 = vadd.f32 1.0, %v7398_v47 }
0x2379   :  { %v5434_v58 = vmul.f32 %v5432_v48, %v5418_v20  ;;  %v5623_v50 = vadd.f32 1.0, %v7400_v35 }
0x237a   :  { %v5433_v33 = vmul.f32 %v5431_v56, %v5417_v55 }
0x237b   :  { %v5625_v49 = vmul.f32 %v5623_v50, %v5609_v60 }
0x237c   :  { %6723 = vmatprep.mubr.msk.f32.mxu1 %vm422_vm5, %v5433_v33 }
0x237d   :  { %6724 = vmatmul.mubr.msk.f32.vlgmr.msra.gmra.mrb[56].mxu1 %vm422_vm5, %v5434_v58 }
0x237e   :  { %7002 = vmatpush3.bf16.msra.mxu1 %v6999_v52  ;;  %6741 = vmatprep.mubr.msk.f32.mxu1 %vm422_vm5, %v5624_v59 }
0x237f   :  { %7004 = vmatprep.subr.bf16.mxu1 %v7003_v61 }
0x2381   :  { %6742 = vmatmul.mubr.msk.f32.vlgmr.msra.gmra.mrb[58].mxu1 %vm422_vm5, %v5625_v49 }
0x2382   :  { %7006 = vmatpush3.bf16.msra.mxu1 %v7003_v61 }
0x2454   :  { %v6743_v51 = vpop.f32.mrb[58].mxu1 }
0x2455   :  { %v5715_v63 = vadd.f32 %v6743_v51, %v6056_v62  ;;  %v5709_v0 = vpop.f32.mrb[59].mxu1 }
0x2456   :  { %v5710_v1 = vadd.f32 %v6056_v62, %v5709_v0 }
0x2457   :  { %v5721_v2 = vmul.f32 0.044715, %v5715_v63  ;;  %v5719_v19 = vmul.f32 0.5, %v5715_v63 }
0x2458   :  { %v5720_v3 = vmul.f32 0.044715, %v5710_v1  ;;  %v5718_v17 = vmul.f32 0.5, %v5710_v1 }
0x2459   :  { %v5723_v4 = vmul.f32 %v5721_v2, %v5715_v63 }
0x245a   :  { %v5722_v5 = vmul.f32 %v5720_v3, %v5710_v1 }
0x245b   :  { %v5725_v6 = vmul.f32 %v5723_v4, %v5715_v63 }
0x245c   :  { %v5724_v46 = vmul.f32 %v5722_v5, %v5710_v1 }
0x245d   :  { %v5727_v44 = vadd.f32 %v5725_v6, %v5715_v63 }
0x245e   :  { %v5726_v7 = vadd.f32 %v5724_v46, %v5710_v1 }
0x245f   :  { %v5729_v26 = vmul.f32 0.7978846, %v5727_v44 }
0x2460   :  { %v5728_v22 = vmul.f32 0.7978846, %v5726_v7 }
0x2461   :  { %7401 = vtanh.f32 %v5729_v26 }
0x2462   :  { %7403 = vtanh.f32 %v5728_v22 }
0x246b   :  { %v7402_v14 = vpop.eup %7401 }
0x246c   :  { %v7404_v52 = vpop.eup %7403  ;;  %v5733_v16 = vadd.f32 1.0, %v7402_v14 }
0x246d   :  { %v5732_v30 = vadd.f32 1.0, %v7404_v52 }
0x246e   :  { %v5735_v23 = vmul.f32 %v5733_v16, %v5719_v19 }
0x246f   :  { %v5734_v25 = vmul.f32 %v5732_v30, %v5718_v17 }
0x2471   :  { %6748 = vmatprep.mubr.msk.f32.mxu1 %vm422_vm5, %v5734_v25 }
0x2472   :  { %6749 = vmatmul.mubr.msk.f32.vlgmr.msra.gmra.mrb[56].mxu1 %vm422_vm5, %v5735_v23 }
0x2545   :  { %v6750_v54 = vpop.f32.mrb[56].mxu1 }
0x2546   :  { %v7007_v53 = vadd.f32 %v6750_v54, %v6036_v21  ;;  %v5811_v10 = vpop.f32.mrb[57].mxu1 }
0x2547   :  { %v7008_v24 = vadd.f32 %v6036_v21, %v5811_v10 }
0x2548   :  { %5823 = vst [vmem:[#allocation11 + $0x8] sm:$0xff] %v7007_v53 }
0x2549   :  { %5822 = vst [vmem:[#allocation11] sm:$0xff] %v7008_v24 }
0x254a   :  { %7526 = shalt.err (!%p7523_p2)
}
0x254b   :  { %s8558_s2 = sld [smem:[#allocation17_spill]] }
0x2551   :  { %s7527_s15 = scalar_lea.hbm %s8558_s2, 256 }
0x2552   :  { %p7528_p3 = scmp.ne.s32.totalorder %s8558_s2, %s7527_s15  ;;  %p7531_p4 = scmp.lt.u32.totalorder %s7527_s15, %s8558_s2 }
0x2554   :  { %p7533_p5 = pnand %p7531_p4, %p7528_p3 }
0x2556   :  { %7536 = shalt.err (!%p7533_p5)
}
0x2557   :  { %s8559_s18 = smov 128  }
0x2558   :  { %5835 = dma.vmem_to_hbm [thread:$0]  %s5830_s29, 256, %s8558_s2, [#allocation4], %s8559_s18, %s8559_s18, %s7555_s20  }
0x2559   :  { %7543 = dma.done.wait [#allocation4], 256  }
0x255a   :  { %7544 = vsyncadd [#allocation4], 4294967040 }
0x255b   :  { %5839 = vsyncpa [#allocation3], 1 }
0x255c   :  { %5840 = vsyncpa [#allocation6], 1 }
0x255d   :  { %5841 = vsyncpa [#allocation9], 1 }
0x255e   :  { %5842 = vsyncpa [#allocation4], 1 }

</bundles_post_ra>
